<compile_context>
chip_gen: v7x
topology: tpu7x:2x2x1
jax: 0.10.0
libtpu: 0.0.40
codegen_flags: <defaults>
</compile_context>

<pallas_src>
import functools

import jax
import jax.numpy as jnp
from jax.experimental import pallas as pl
from jax.experimental.pallas import tpu as pltpu

IN_FEATURES = 10000
HIDDEN = 64
N_CLASSES = 46

HIDDEN_PAD = 128   # lane-pad hidden width 64 -> 128
CLS_PAD = 128      # lane-pad class width 46 -> 128
NEG_BIG = -1e30    # bias for padded class columns -> exp() == 0 in softmax


def mlp_softmax_kernel(x_ref, w1_ref, b1_ref, w2_ref, b2_ref, w3_ref, b3_ref,
                       o_ref):
    # Layer 1: (tb, 10000) @ (10000, 128) + b1, ReLU  -- bf16 MXU, f32 accum
    h1 = jnp.dot(x_ref[...], w1_ref[...],
                 preferred_element_type=jnp.float32) + b1_ref[...]
    h1 = jnp.maximum(h1, 0.0)

    # Layer 2: (tb, 128) @ (128, 128) + b2, ReLU
    h2 = jnp.dot(h1.astype(w2_ref.dtype), w2_ref[...],
                 preferred_element_type=jnp.float32) + b2_ref[...]
    h2 = jnp.maximum(h2, 0.0)

    # Layer 3: (tb, 128) @ (128, 128) + b3 (padded classes biased to -1e30)
    logits = jnp.dot(h2.astype(w3_ref.dtype), w3_ref[...],
                     preferred_element_type=jnp.float32) + b3_ref[...]

    # Numerically stable softmax over the (padded) class lane axis.
    m = jnp.max(logits, axis=-1, keepdims=True)
    e = jnp.exp(logits - m)
    s = jnp.sum(e, axis=-1, keepdims=True)
    o_ref[...] = (e * pl.reciprocal(s, approx=False)).astype(o_ref.dtype)


def _round_up(x, m):
    return ((x + m - 1) // m) * m


@functools.partial(jax.jit, static_argnames=("block_b", "compute_dtype"))
def multiclassificator_forward(x, w1, b1, w2, b2, w3, b3, *, block_b=256,
                               compute_dtype=jnp.bfloat16):
    """x: (B, 10000) f32.  w*: (in, out) f32 (pre-transposed).  b*: (1, out) f32.

    Returns (B, 46) f32 softmax probabilities.
    """
    B = x.shape[0]

    # Batch tile: multiple of 8 (sublanes), and keep >=2 grid steps when the
    # batch allows it so v7x's two TensorCores both get work.
    block_b = max(8, _round_up(block_b, 8))
    if B > 8:
        block_b = min(block_b, _round_up(pl.cdiv(B, 2), 8))
    else:
        block_b = 8
    B_pad = _round_up(B, block_b)
    grid = (B_pad // block_b,)

    # Wrapper-side pad + cast (cheap XLA ops, fused under jit):
    #   x   -> (B_pad, 10000) bf16, tail rows zero
    #   w1  -> (10000, 128) bf16, extra hidden cols zero
    #   w2  -> (128, 128)  bf16, extra rows/cols zero
    #   w3  -> (128, 128)  bf16, extra rows/cols zero
    #   b3  -> (1, 128) f32 with -1e30 in padded class columns
    xp = jnp.zeros((B_pad, IN_FEATURES), compute_dtype
                   ).at[:B].set(x.astype(compute_dtype))
    w1p = jnp.zeros((IN_FEATURES, HIDDEN_PAD), compute_dtype
                    ).at[:, :HIDDEN].set(w1.astype(compute_dtype))
    b1p = jnp.zeros((1, HIDDEN_PAD), jnp.float32).at[:, :HIDDEN].set(b1)
    w2p = jnp.zeros((HIDDEN_PAD, HIDDEN_PAD), compute_dtype
                    ).at[:HIDDEN, :HIDDEN].set(w2.astype(compute_dtype))
    b2p = jnp.zeros((1, HIDDEN_PAD), jnp.float32).at[:, :HIDDEN].set(b2)
    w3p = jnp.zeros((HIDDEN_PAD, CLS_PAD), compute_dtype
                    ).at[:HIDDEN, :N_CLASSES].set(w3.astype(compute_dtype))
    b3p = jnp.full((1, CLS_PAD), NEG_BIG, jnp.float32
                   ).at[:, :N_CLASSES].set(b3)

    full = lambda shape: pl.BlockSpec(shape, lambda i: (0, 0))

    out = pl.pallas_call(
        mlp_softmax_kernel,
        out_shape=jax.ShapeDtypeStruct((B_pad, CLS_PAD), jnp.float32),
        grid_spec=pltpu.PrefetchScalarGridSpec(
            num_scalar_prefetch=0,
            grid=grid,
            in_specs=[
                pl.BlockSpec((block_b, IN_FEATURES), lambda i: (i, 0)),  # x tile
                full((IN_FEATURES, HIDDEN_PAD)),                          # w1
                full((1, HIDDEN_PAD)),                                    # b1
                full((HIDDEN_PAD, HIDDEN_PAD)),                           # w2
                full((1, HIDDEN_PAD)),                                    # b2
                full((HIDDEN_PAD, CLS_PAD)),                              # w3
                full((1, CLS_PAD)),                                       # b3
            ],
            out_specs=pl.BlockSpec((block_b, CLS_PAD), lambda i: (i, 0)),
        ),
        compiler_params=pltpu.CompilerParams(
            dimension_semantics=("parallel",),
            vmem_limit_bytes=48 * 1024 * 1024,
        ),
    )(xp, w1p, b1p, w2p, b2p, w3p, b3p)

    # Drop the row padding and the lane-padded class columns.
    return out[:B, :N_CLASSES]


def init_params(key):
    """Deterministic init mimicking PyTorch nn.Linear default (U[-1/sqrt(fan_in), +])."""
    ks = jax.random.split(key, 6)

    def linear(kw, kb, fan_in, fan_out):
        bound = 1.0 / jnp.sqrt(jnp.float32(fan_in))
        # Stored already transposed: (in, out), so kernel computes x @ W + b.
        w = jax.random.uniform(kw, (fan_in, fan_out), jnp.float32, -bound, bound)
        b = jax.random.uniform(kb, (1, fan_out), jnp.float32, -bound, bound)
        return w, b

    w1, b1 = linear(ks[0], ks[1], IN_FEATURES, HIDDEN)
    w2, b2 = linear(ks[2], ks[3], HIDDEN, HIDDEN)
    w3, b3 = linear(ks[4], ks[5], HIDDEN, N_CLASSES)
    return w1, b1, w2, b2, w3, b3


def reference_forward(x, w1, b1, w2, b2, w3, b3, compute_dtype=jnp.bfloat16):
    """Same mixed precision as the kernel (bf16 operands, f32 accumulation)."""
    xc = x.astype(compute_dtype)
    h1 = jnp.maximum(
        jnp.dot(xc, w1.astype(compute_dtype),
                preferred_element_type=jnp.float32) + b1, 0.0)
    h2 = jnp.maximum(
        jnp.dot(h1.astype(compute_dtype), w2.astype(compute_dtype),
                preferred_element_type=jnp.float32) + b2, 0.0)
    logits = jnp.dot(h2.astype(compute_dtype), w3.astype(compute_dtype),
                     preferred_element_type=jnp.float32) + b3
    return jax.nn.softmax(logits, axis=1)


if __name__ == "__main__":
    key = jax.random.PRNGKey(0)
    k_x, k_p = jax.random.split(key)

    batch = 13  # intentionally ragged & small: exercises padding + 2-step grid
    x = jax.random.normal(k_x, (batch, IN_FEATURES), dtype=jnp.float32)
    params = init_params(k_p)

    out = multiclassificator_forward(x, *params)
    out = jax.block_until_ready(out)

    ref = reference_forward(x, *params)
    assert out.shape == (batch, N_CLASSES)
    assert jnp.allclose(out, ref, atol=2e-3, rtol=2e-3), "mismatch vs JAX reference"
    assert jnp.allclose(jnp.sum(out, axis=1), 1.0, atol=1e-4), "softmax rows must sum to 1"

    print("KERNEL_OK")
</pallas_src>

<mosaic_0001>
module attributes {stable_mosaic.version = 11 : i64} {
  func.func @mlp_softmax_kernel(%arg0: i32, %arg1: memref<8x10000xbf16, #tpu.memory_space<vmem>>, %arg2: memref<10000x128xbf16, #tpu.memory_space<vmem>>, %arg3: memref<1x128xf32, #tpu.memory_space<vmem>>, %arg4: memref<128x128xbf16, #tpu.memory_space<vmem>>, %arg5: memref<1x128xf32, #tpu.memory_space<vmem>>, %arg6: memref<128x128xbf16, #tpu.memory_space<vmem>>, %arg7: memref<1x128xf32, #tpu.memory_space<vmem>>, %arg8: memref<8x128xf32, #tpu.memory_space<vmem>>) attributes {dimension_semantics = [#tpu.dimension_semantics<parallel>], iteration_bounds = array<i64: 2>, scalar_prefetch = 0 : i64, scratch_operands = 0 : i64, tpu.core_type = #tpu.core_type<tc>, window_params = [{transform_indices = @transform_0, window_bounds = array<i64: 8, 10000>}, {pipeline_mode = #tpu.pipeline_mode<synchronous>, transform_indices = @transform_1, window_bounds = array<i64: 10000, 128>}, {pipeline_mode = #tpu.pipeline_mode<synchronous>, transform_indices = @transform_2, window_bounds = array<i64: 1, 128>}, {pipeline_mode = #tpu.pipeline_mode<synchronous>, transform_indices = @transform_3, window_bounds = array<i64: 128, 128>}, {pipeline_mode = #tpu.pipeline_mode<synchronous>, transform_indices = @transform_4, window_bounds = array<i64: 1, 128>}, {pipeline_mode = #tpu.pipeline_mode<synchronous>, transform_indices = @transform_5, window_bounds = array<i64: 128, 128>}, {pipeline_mode = #tpu.pipeline_mode<synchronous>, transform_indices = @transform_6, window_bounds = array<i64: 1, 128>}, {transform_indices = @transform_7, window_bounds = array<i64: 8, 128>}]} {
    %c0 = arith.constant 0 : index
    %c0_0 = arith.constant 0 : index
    %0 = vector.load %arg1[%c0, %c0_0] : memref<8x10000xbf16, #tpu.memory_space<vmem>>, vector<8x10000xbf16>
    %c0_1 = arith.constant 0 : index
    %c0_2 = arith.constant 0 : index
    %1 = vector.load %arg2[%c0_1, %c0_2] : memref<10000x128xbf16, #tpu.memory_space<vmem>>, vector<10000x128xbf16>
    %cst = arith.constant dense<0.000000e+00> : vector<8x128xf32>
    %2 = tpu.matmul %0, %1, %cst {dimension_numbers = #tpu.dot_dimension_numbers<[1], [0], [0], [1], [0, 0, 1, 1], [], []>} : vector<8x10000xbf16>, vector<10000x128xbf16>, vector<8x128xf32> -> vector<8x128xf32>
    %c0_3 = arith.constant 0 : index
    %c0_4 = arith.constant 0 : index
    %3 = vector.load %arg3[%c0_3, %c0_4] : memref<1x128xf32, #tpu.memory_space<vmem>>, vector<1x128xf32>
    %4 = vector.broadcast %3 : vector<1x128xf32> to vector<8x128xf32>
    %5 = arith.addf %2, %4 : vector<8x128xf32>
    %cst_5 = arith.constant 0.000000e+00 : f32
    %6 = vector.broadcast %cst_5 : f32 to vector<8x128xf32>
    %7 = arith.maximumf %5, %6 : vector<8x128xf32>
    %8 = arith.truncf %7 : vector<8x128xf32> to vector<8x128xbf16>
    %c0_6 = arith.constant 0 : index
    %c0_7 = arith.constant 0 : index
    %9 = vector.load %arg4[%c0_6, %c0_7] : memref<128x128xbf16, #tpu.memory_space<vmem>>, vector<128x128xbf16>
    %cst_8 = arith.constant dense<0.000000e+00> : vector<8x128xf32>
    %10 = tpu.matmul %8, %9, %cst_8 {dimension_numbers = #tpu.dot_dimension_numbers<[1], [0], [0], [1], [0, 0, 1, 1], [], []>} : vector<8x128xbf16>, vector<128x128xbf16>, vector<8x128xf32> -> vector<8x128xf32>
    %c0_9 = arith.constant 0 : index
    %c0_10 = arith.constant 0 : index
    %11 = vector.load %arg5[%c0_9, %c0_10] : memref<1x128xf32, #tpu.memory_space<vmem>>, vector<1x128xf32>
    %12 = vector.broadcast %11 : vector<1x128xf32> to vector<8x128xf32>
    %13 = arith.addf %10, %12 : vector<8x128xf32>
    %cst_11 = arith.constant 0.000000e+00 : f32
    %14 = vector.broadcast %cst_11 : f32 to vector<8x128xf32>
    %15 = arith.maximumf %13, %14 : vector<8x128xf32>
    %16 = arith.truncf %15 : vector<8x128xf32> to vector<8x128xbf16>
    %c0_12 = arith.constant 0 : index
    %c0_13 = arith.constant 0 : index
    %17 = vector.load %arg6[%c0_12, %c0_13] : memref<128x128xbf16, #tpu.memory_space<vmem>>, vector<128x128xbf16>
    %cst_14 = arith.constant dense<0.000000e+00> : vector<8x128xf32>
    %18 = tpu.matmul %16, %17, %cst_14 {dimension_numbers = #tpu.dot_dimension_numbers<[1], [0], [0], [1], [0, 0, 1, 1], [], []>} : vector<8x128xbf16>, vector<128x128xbf16>, vector<8x128xf32> -> vector<8x128xf32>
    %c0_15 = arith.constant 0 : index
    %c0_16 = arith.constant 0 : index
    %19 = vector.load %arg7[%c0_15, %c0_16] : memref<1x128xf32, #tpu.memory_space<vmem>>, vector<1x128xf32>
    %20 = vector.broadcast %19 : vector<1x128xf32> to vector<8x128xf32>
    %21 = arith.addf %18, %20 : vector<8x128xf32>
    %cst_17 = arith.constant dense<0xFF800000> : vector<8xf32>
    %22 = vector.multi_reduction <maximumf>, %21, %cst_17 [1] : vector<8x128xf32> to vector<8xf32>
    %23 = vector.shape_cast %22 : vector<8xf32> to vector<8x1xf32>
    %24 = vector.broadcast %23 : vector<8x1xf32> to vector<8x128xf32>
    %25 = arith.subf %21, %24 : vector<8x128xf32>
    %26 = math.exp %25 : vector<8x128xf32>
    %cst_18 = arith.constant dense<0.000000e+00> : vector<8xf32>
    %27 = vector.multi_reduction <add>, %26, %cst_18 [1] : vector<8x128xf32> to vector<8xf32>
    %28 = vector.shape_cast %27 : vector<8xf32> to vector<8x1xf32>
    %29 = tpu.reciprocal %28 : vector<8x1xf32> -> vector<8x1xf32>
    %30 = vector.broadcast %29 : vector<8x1xf32> to vector<8x128xf32>
    %31 = arith.mulf %26, %30 : vector<8x128xf32>
    %c0_19 = arith.constant 0 : index
    %c0_20 = arith.constant 0 : index
    %32 = vector.load %arg8[%c0_19, %c0_20] : memref<8x128xf32, #tpu.memory_space<vmem>>, vector<8x128xf32>
    tpu.vector_store %arg8[%c0_19, %c0_20], %31 {strides = array<i32>} : memref<8x128xf32, #tpu.memory_space<vmem>>, vector<8x128xf32>,
    return
  }
  func.func @transform_0(%arg0: i32) -> (i32, i32) {
    %c0_i32 = arith.constant 0 : i32
    %c0_i32_0 = arith.constant 0 : i32
    return %arg0, %c0_i32 : i32, i32
  }
  func.func @transform_1(%arg0: i32) -> (i32, i32) {
    %c0_i32 = arith.constant 0 : i32
    %c0_i32_0 = arith.constant 0 : i32
    %c0_i32_1 = arith.constant 0 : i32
    return %c0_i32, %c0_i32_0 : i32, i32
  }
  func.func @transform_2(%arg0: i32) -> (i32, i32) {
    %c0_i32 = arith.constant 0 : i32
    %c0_i32_0 = arith.constant 0 : i32
    %c0_i32_1 = arith.constant 0 : i32
    return %c0_i32, %c0_i32_0 : i32, i32
  }
  func.func @transform_3(%arg0: i32) -> (i32, i32) {
    %c0_i32 = arith.constant 0 : i32
    %c0_i32_0 = arith.constant 0 : i32
    %c0_i32_1 = arith.constant 0 : i32
    return %c0_i32, %c0_i32_0 : i32, i32
  }
  func.func @transform_4(%arg0: i32) -> (i32, i32) {
    %c0_i32 = arith.constant 0 : i32
    %c0_i32_0 = arith.constant 0 : i32
    %c0_i32_1 = arith.constant 0 : i32
    return %c0_i32, %c0_i32_0 : i32, i32
  }
  func.func @transform_5(%arg0: i32) -> (i32, i32) {
    %c0_i32 = arith.constant 0 : i32
    %c0_i32_0 = arith.constant 0 : i32
    %c0_i32_1 = arith.constant 0 : i32
    return %c0_i32, %c0_i32_0 : i32, i32
  }
  func.func @transform_6(%arg0: i32) -> (i32, i32) {
    %c0_i32 = arith.constant 0 : i32
    %c0_i32_0 = arith.constant 0 : i32
    %c0_i32_1 = arith.constant 0 : i32
    return %c0_i32, %c0_i32_0 : i32, i32
  }
  func.func @transform_7(%arg0: i32) -> (i32, i32) {
    %c0_i32 = arith.constant 0 : i32
    %c0_i32_0 = arith.constant 0 : i32
    return %arg0, %c0_i32 : i32, i32
  }
}

</mosaic_0001>

<bundles_post_ra>
// kernel: multiclassificator_forward.1
= control target key start
LH: loop header
LB: loop body
LE: loop exit
PB: predicated region body
PF: predicated region fallthrough
CT: control target
= control target key end

     0   :  { %12 = vsyncpa [#allocation3], 0  ;;  %s12179_s0 = inlined_call_operand.vmem [shape: bf16[16,10000], index: 0, kind: input, shape index: {}]   ;;  %s12180_s1 = inlined_call_operand.vmem [shape: bf16[10000,128], index: 1, kind: input, shape index: {}]   ;;  %s12181_s2 = inlined_call_operand.vmem [shape: f32[1,128], index: 2, kind: input, shape index: {}]   ;;  %s12182_s3 = inlined_call_operand.vmem [shape: bf16[128,128], index: 3, kind: input, shape index: {}]   ;;  %s12183_s4 = inlined_call_operand.vmem [shape: f32[1,128], index: 4, kind: input, shape index: {}]   ;;  %s12184_s5 = inlined_call_operand.vmem [shape: bf16[128,128], index: 5, kind: input, shape index: {}]   ;;  %s12185_s6 = inlined_call_operand.vmem [shape: f32[1,128], index: 6, kind: input, shape index: {}]   ;;  %s12186_s7 = inlined_call_operand.hbm [shape: f32[16,128], index: 7, kind: output, shape index: {}]  }
   0x1   :  { %14 = vsyncpa [#allocation3 + $0x1], 0  ;;  %s10045_s24 = smov 0   ;;  %s10047_s25 = smov 0  }
   0x2   :  { %s10049_s26 = smov 0   ;;  %s10051_s27 = smov 0  }
   0x3 LB: > { %s10066_s28 = sadd.s32 4294967295, %s10000_s27   ;;  %s7514_s29 = sadd.s32 4294967294, %s10000_s27   ;;  %s10000_s27 = sphi %s10051_s27, %s12192_s27   ;;  %s9996_s26 = sphi %s10049_s26, %s12191_s26   ;;  %s9992_s25 = sphi %s10047_s25, %s12190_s25   ;;  %s9988_s24 = sphi %s10045_s24, %s12189_s24  }
   0x4   : > { %s10070_s30 = sadd.s32 1, %s10000_s27   ;;  %s179_s8 = sadd.s32 1, %s9996_s26 }
   0x5   : > { %s176_s9 = ssub.s32 %s10000_s27, %s10070_s30  ;;  %p189_p0 = scmp.ne.s32.totalorder %s9996_s26, %s9992_s25 }
   0x6   : > { %p177_p1 = scmp.eq.s32.totalorder %s176_s9, 0  ;;  %p190_p2 = scmp.eq.s32.totalorder %s10066_s28, 1 }
   0x7   : > { %p195_p3 = scmp.ne.s32.totalorder %s9992_s25, %s9988_s24  ;;  %p196_p4 = scmp.eq.s32.totalorder %s7514_s29, 1 }
   0x8   : > { %s10081_s10 = scalar_select %p177_p1, %s9996_s26, %s179_s8  }
   0x9   : > { %p10083_p5 = por %p190_p2, %p189_p0  ;;  %p10087_p6 = por %p196_p4, %p195_p3 }
   0xa   : > { %p7517_p7 = scmp.ge.s32.totalorder %s10000_s27, 1  ;;  %p240_p8 = scmp.lt.s32.totalorder %s10000_s27, 3 }
   0xc   : > { %p241_p9 = pnand %p7517_p7, %p240_p8 }
   0xd   : > { %v9214_v0 = vld [vmem:[%s12180_s1 + $0x40] sm:$0xff] (!%p241_p9)   ;;  %v9218_v4 = vld [vmem:[%s12180_s1 + $0x48] sm:$0xff] (!%p241_p9)   ;;  %v9222_v8 = vld [vmem:[%s12180_s1 + $0x50] sm:$0xff] (!%p241_p9)   ;;  %p272_p10 = scmp.lt.s32.totalorder (!%p241_p9), %s10066_s28, 1  ;;  %vm10003_vm0 = vmmov (!%p241_p9), 0   ;;  %vm5601_vm1 = vcmask (!%p241_p9), 130048  }
   0xe   : > { %244 = sbr.rel (%p241_p9) target bundleno = 1635 (0x663), region = 48  ;;  %v9215_v1 = vld [vmem:[%s12180_s1] sm:$0xff] (!%p241_p9)   ;;  %8248 = vmatprep.subr.bf16.mxu0 (!%p241_p9), %v9214_v0  ;;  %v9219_v5 = vld [vmem:[%s12180_s1 + $0x8] sm:$0xff] (!%p241_p9)   ;;  %v9223_v9 = vld [vmem:[%s12180_s1 + $0x10] sm:$0xff] (!%p241_p9)   ;;  %s8245_s9 = sshll.u32 (!%p241_p9), %s10066_s28, 7 }
   0xf   : > { %v9216_v2 = vld [vmem:[%s12180_s1 + $0xc0] sm:$0xff] (!%p241_p9)   ;;  %8249 = vmatpush3.bf16.msra.mxu0 (!%p241_p9), %v9215_v1  ;;  %v9220_v6 = vld [vmem:[%s12180_s1 + $0xc8] sm:$0xff] (!%p241_p9)   ;;  %v9224_v10 = vld [vmem:[%s12180_s1 + $0xd0] sm:$0xff] (!%p241_p9)  }
  0x10   : > { %v9217_v3 = vld [vmem:[%s12180_s1 + $0x80] sm:$0xff] (!%p241_p9)   ;;  %8270 = vmatprep.subr.bf16.mxu1 (!%p241_p9), %v9216_v2  ;;  %8250 = vmatprep.subr.bf16.mxu0 (!%p241_p9), %v9218_v4  ;;  %v9221_v7 = vld [vmem:[%s12180_s1 + $0x88] sm:$0xff] (!%p241_p9)   ;;  %v9225_v11 = vld [vmem:[%s12180_s1 + $0x90] sm:$0xff] (!%p241_p9)  }
  0x11   : > { %8271 = vmatpush3.bf16.msra.mxu1 (!%p241_p9), %v9217_v3  ;;  %v9226_v12 = vld [vmem:[%s12180_s1 + $0x58] sm:$0xff] (!%p241_p9)   ;;  %v9230_v16 = vld [vmem:[%s12180_s1 + $0x60] sm:$0xff] (!%p241_p9)   ;;  %v9234_v20 = vld [vmem:[%s12180_s1 + $0x68] sm:$0xff] (!%p241_p9)  }
  0x12   : > { %8272 = vmatprep.subr.bf16.mxu1 (!%p241_p9), %v9220_v6  ;;  %v9227_v13 = vld [vmem:[%s12180_s1 + $0x18] sm:$0xff] (!%p241_p9)   ;;  %v9231_v17 = vld [vmem:[%s12180_s1 + $0x20] sm:$0xff] (!%p241_p9)   ;;  %v9235_v21 = vld [vmem:[%s12180_s1 + $0x28] sm:$0xff] (!%p241_p9)  }
  0x13   : > { %8251 = vmatpush3.bf16.msra.mxu0 (!%p241_p9), %v9219_v5  ;;  %v9228_v14 = vld [vmem:[%s12180_s1 + $0xd8] sm:$0xff] (!%p241_p9)   ;;  %v9232_v18 = vld [vmem:[%s12180_s1 + $0xe0] sm:$0xff] (!%p241_p9)   ;;  %v9236_v22 = vld [vmem:[%s12180_s1 + $0xe8] sm:$0xff] (!%p241_p9)  }
  0x14   : > { %8252 = vmatprep.subr.bf16.mxu0 (!%p241_p9), %v9222_v8  ;;  %v9229_v15 = vld [vmem:[%s12180_s1 + $0x98] sm:$0xff] (!%p241_p9)   ;;  %v9233_v19 = vld [vmem:[%s12180_s1 + $0xa0] sm:$0xff] (!%p241_p9)   ;;  %v9237_v23 = vld [vmem:[%s12180_s1 + $0xa8] sm:$0xff] (!%p241_p9)  }
  0x15   : > { %8273 = vmatpush3.bf16.msra.mxu1 %v9221_v7  ;;  %s273_s13 = scalar_select %p272_p10, %s10066_s28, 1  ;;  %v9238_v24 = vld [vmem:[%s12180_s1 + $0x70] sm:$0xff]   ;;  %v9242_v28 = vld [vmem:[%s12180_s1 + $0x78] sm:$0xff]   ;;  %v9248_v35 = vld [vmem:[%s12180_s1 + $0x140] sm:$0xff]  }
  0x16   : > { %8274 = vmatprep.subr.bf16.mxu1 %v9224_v10  ;;  %v9239_v25 = vld [vmem:[%s12180_s1 + $0x30] sm:$0xff]   ;;  %v9243_v29 = vld [vmem:[%s12180_s1 + $0x38] sm:$0xff]   ;;  %v9251_v39 = vld [vmem:[%s12180_s1 + $0x100] sm:$0xff]   ;;  %s10004_s28 = smov [#allocation2]  }
  0x17   : > { %8253 = vmatpush3.bf16.msra.mxu0 %v9223_v9  ;;  %s9172_s22 = smul.u32 316, %s273_s13  ;;  %v9240_v26 = vld [vmem:[%s12180_s1 + $0xf0] sm:$0xff]   ;;  %v9244_v30 = vld [vmem:[%s12180_s1 + $0xf8] sm:$0xff]   ;;  %v9252_v40 = vld [vmem:[%s12180_s1 + $0x1c0] sm:$0xff]   ;;  %s12137_s13 = scalar_lea.hbm %s12186_s7, %s8245_s9 }
  0x18   : > { %8254 = vmatprep.subr.bf16.mxu0 %v9226_v12  ;;  %v9241_v27 = vld [vmem:[%s12180_s1 + $0xb0] sm:$0xff]   ;;  %v9247_v34 = vld [vmem:[%s12180_s1 + $0xb8] sm:$0xff]   ;;  %v9253_v41 = vld [vmem:[%s12180_s1 + $0x180] sm:$0xff]   ;;  %s9942_s21 = sshll.u32 %s10004_s28, 4  ;;  %s9943_s21 = int_to_ptr.vmem [resolvable:$false] %s9942_s21 }
  0x19   : > { %8275 = vmatpush3.bf16.msra.mxu1 %v9225_v11  ;;  %s10185_s19 = scalar_lea.vmem %s12179_s0, %s9172_s22  ;;  %v9254_v42 = vld [vmem:[%s12180_s1 + $0x148] sm:$0xff]   ;;  %v9258_v46 = vld [vmem:[%s12180_s1 + $0x150] sm:$0xff]   ;;  %v9262_v50 = vld [vmem:[%s12180_s1 + $0x158] sm:$0xff]   ;;  %s9944_s23 = scalar_lea.vmem %s9943_s21, 256 }
  0x1a   : > { %8276 = vmatprep.subr.bf16.mxu1 %v9228_v14  ;;  %v278_v31 = vld [vmem:[%s10185_s19] sm:$0xff]  ;;  %v279_v36 = vld [vmem:[%s10185_s19 + $0x8] sm:$0xff]  ;;  %v9259_v47 = vld [vmem:[%s12180_s1 + $0x110] sm:$0xff]  }
  0x1b   : > { %8255 = vmatpush3.bf16.msra.mxu0 %v9227_v13  ;;  %v7521_v32 = vcombine.low %v278_v31, %v278_v31  ;;  %v7522_v33 = vcombine.high %v278_v31, %v278_v31  ;;  %v7523_v37 = vcombine.low %v279_v36, %v279_v36  ;;  %v7524_v38 = vcombine.high %v279_v36, %v279_v36  ;;  %v9255_v43 = vld [vmem:[%s12180_s1 + $0x108] sm:$0xff]   ;;  %v9260_v48 = vld [vmem:[%s12180_s1 + $0x1d0] sm:$0xff]   ;;  %v9263_v51 = vld [vmem:[%s12180_s1 + $0x118] sm:$0xff]  }
  0x1c   : > { %8256 = vmatprep.subr.bf16.mxu0 %v9230_v16  ;;  %v9256_v44 = vld [vmem:[%s12180_s1 + $0x1c8] sm:$0xff]   ;;  %v9261_v49 = vld [vmem:[%s12180_s1 + $0x190] sm:$0xff]   ;;  %v9264_v52 = vld [vmem:[%s12180_s1 + $0x1d8] sm:$0xff]  }
  0x1d   : > { %8277 = vmatpush3.bf16.msra.mxu1 %v9229_v15  ;;  %5637 = vmatprep.mubr.bf16.mxu0 %v7522_v33  ;;  %v9257_v45 = vld [vmem:[%s12180_s1 + $0x188] sm:$0xff]   ;;  %v9265_v53 = vld [vmem:[%s12180_s1 + $0x198] sm:$0xff]   ;;  %v9266_v54 = vld [vmem:[%s12180_s1 + $0x160] sm:$0xff]  }
  0x1e   : > { %8278 = vmatprep.subr.bf16.mxu1 %v9232_v18  ;;  %5677 = vmatprep.mubr.bf16.mxu1 %v7524_v38  ;;  %v9267_v55 = vld [vmem:[%s12180_s1 + $0x120] sm:$0xff]   ;;  %v9270_v58 = vld [vmem:[%s12180_s1 + $0x168] sm:$0xff]   ;;  %v9274_v62 = vld [vmem:[%s12180_s1 + $0x170] sm:$0xff]  }
  0x1f   : > { %8257 = vmatpush3.bf16.msra.mxu0 %v9231_v17  ;;  %v9268_v56 = vld [vmem:[%s12180_s1 + $0x1e0] sm:$0xff]   ;;  %v9271_v59 = vld [vmem:[%s12180_s1 + $0x128] sm:$0xff]   ;;  %v9275_v63 = vld [vmem:[%s12180_s1 + $0x130] sm:$0xff]  }
  0x20   : > { %8258 = vmatprep.subr.bf16.mxu0 %v9234_v20  ;;  %v9269_v57 = vld [vmem:[%s12180_s1 + $0x1a0] sm:$0xff]   ;;  %v9272_v60 = vld [vmem:[%s12180_s1 + $0x1e8] sm:$0xff]   ;;  %v9276_v0 = vld [vmem:[%s12180_s1 + $0x1f0] sm:$0xff]  }
  0x21   : > { %8279 = vmatpush3.bf16.msra.mxu1 %v9233_v19  ;;  %v9273_v61 = vld [vmem:[%s12180_s1 + $0x1a8] sm:$0xff]   ;;  %v9277_v1 = vld [vmem:[%s12180_s1 + $0x1b0] sm:$0xff]   ;;  %v9278_v2 = vld [vmem:[%s12180_s1 + $0x178] sm:$0xff]  }
  0x22   : > { %8280 = vmatprep.subr.bf16.mxu1 %v9236_v22  ;;  %v9279_v3 = vld [vmem:[%s12180_s1 + $0x138] sm:$0xff]   ;;  %v280_v5 = vld [vmem:[%s10185_s19 + $0x10] sm:$0xff]  ;;  %v9284_v9 = vld [vmem:[%s12180_s1 + $0x240] sm:$0xff]  }
  0x23   : > { %8259 = vmatpush3.bf16.msra.mxu0 %v9235_v21  ;;  %v9280_v4 = vld [vmem:[%s12180_s1 + $0x1f8] sm:$0xff]   ;;  %v7525_v6 = vcombine.low %v280_v5, %v280_v5  ;;  %v7526_v7 = vcombine.high %v280_v5, %v280_v5  ;;  %v9287_v13 = vld [vmem:[%s12180_s1 + $0x200] sm:$0xff]   ;;  %v9290_v16 = vld [vmem:[%s12180_s1 + $0x248] sm:$0xff]  }
  0x24   : > { %8260 = vmatprep.subr.bf16.mxu0 %v9238_v24  ;;  %v9283_v8 = vld [vmem:[%s12180_s1 + $0x1b8] sm:$0xff]   ;;  %v9288_v14 = vld [vmem:[%s12180_s1 + $0x2c0] sm:$0xff]   ;;  %v9291_v17 = vld [vmem:[%s12180_s1 + $0x208] sm:$0xff]  }
  0x25   : > { %8281 = vmatpush3.bf16.msra.mxu1 %v9237_v23  ;;  %v281_v10 = vld [vmem:[%s10185_s19 + $0x18] sm:$0xff]  ;;  %v9289_v15 = vld [vmem:[%s12180_s1 + $0x280] sm:$0xff]   ;;  %v9292_v18 = vld [vmem:[%s12180_s1 + $0x2c8] sm:$0xff]  }
  0x26   : > { %8282 = vmatprep.subr.bf16.mxu1 %v9240_v26  ;;  %v7527_v11 = vcombine.low %v281_v10, %v281_v10  ;;  %v7528_v12 = vcombine.high %v281_v10, %v281_v10  ;;  %v9293_v19 = vld [vmem:[%s12180_s1 + $0x288] sm:$0xff]   ;;  %v9294_v20 = vld [vmem:[%s12180_s1 + $0x250] sm:$0xff]   ;;  %v9298_v24 = vld [vmem:[%s12180_s1 + $0x258] sm:$0xff]  }
  0x27   : > { %8261 = vmatpush3.bf16.msra.mxu0 %v9239_v25  ;;  %v9295_v21 = vld [vmem:[%s12180_s1 + $0x210] sm:$0xff]   ;;  %v9299_v25 = vld [vmem:[%s12180_s1 + $0x218] sm:$0xff]   ;;  %v9305_v31 = vld [vmem:[%s12180_s1 + $0x2a0] sm:$0xff]  }
  0x28   : > { %8262 = vmatprep.subr.bf16.mxu0 %v9242_v28  ;;  %v9296_v22 = vld [vmem:[%s12180_s1 + $0x2d0] sm:$0xff]   ;;  %v9300_v26 = vld [vmem:[%s12180_s1 + $0x2d8] sm:$0xff]   ;;  %v9302_v28 = vld [vmem:[%s12180_s1 + $0x260] sm:$0xff]  }
  0x29   : > { %8283 = vmatpush3.bf16.msra.mxu1 %v9241_v27  ;;  %v9297_v23 = vld [vmem:[%s12180_s1 + $0x290] sm:$0xff]   ;;  %v9301_v27 = vld [vmem:[%s12180_s1 + $0x298] sm:$0xff]   ;;  %v9307_v33 = vld [vmem:[%s12180_s1 + $0x228] sm:$0xff]  }
  0x2a   : > { %8284 = vmatprep.subr.bf16.mxu1 %v9244_v30  ;;  %v9304_v30 = vld [vmem:[%s12180_s1 + $0x2e0] sm:$0xff]   ;;  %v9310_v36 = vld [vmem:[%s12180_s1 + $0x270] sm:$0xff]  }
  0x2b   : > { %8263 = vmatpush3.bf16.msra.mxu0 %v9243_v29  ;;  %v9303_v29 = vld [vmem:[%s12180_s1 + $0x220] sm:$0xff]   ;;  %v9312_v38 = vld [vmem:[%s12180_s1 + $0x2f0] sm:$0xff]  }
  0x2c   : > { %8292 = vmatprep.subr.bf16.mxu0 %v9248_v35  ;;  %v9309_v35 = vld [vmem:[%s12180_s1 + $0x2a8] sm:$0xff]   ;;  %v9341_v5 = vld [vmem:[%s12180_s1 + $0x3a0] sm:$0xff]   ;;  %v9346_v10 = vld [vmem:[%s12180_s1 + $0x370] sm:$0xff]  }
  0x2d   : > { %8285 = vmatpush3.bf16.msra.mxu1 %v9247_v34  ;;  %v9308_v34 = vld [vmem:[%s12180_s1 + $0x2e8] sm:$0xff]  }
  0x2e   : > { %5638 = vmatmul.mubr.bf16.vlgmr.msra.gmra.mrb[0].mxu0 %v7521_v32  ;;  %8314 = vmatprep.subr.bf16.mxu1 %v9252_v40  ;;  %v9306_v32 = vld [vmem:[%s12180_s1 + $0x268] sm:$0xff]   ;;  %v9314_v40 = vld [vmem:[%s12180_s1 + $0x278] sm:$0xff]  }
  0x2f   : > { %8293 = vmatpush3.bf16.msra.mxu0 %v9251_v39  ;;  %5717 = vmatprep.mubr.bf16.mxu0 %v7526_v7  ;;  %v9313_v39 = vld [vmem:[%s12180_s1 + $0x2b0] sm:$0xff]   ;;  %v9343_v7 = vld [vmem:[%s12180_s1 + $0x328] sm:$0xff]  }
  0x30   : > { %5678 = vmatmul.mubr.bf16.vlgmr.msra.gmra.mrb[0].mxu1 %v7523_v37  ;;  %8294 = vmatprep.subr.bf16.mxu0 %v9254_v42  ;;  %v9311_v37 = vld [vmem:[%s12180_s1 + $0x230] sm:$0xff]   ;;  %v9316_v42 = vld [vmem:[%s12180_s1 + $0x2f8] sm:$0xff]  }
  0x31   : > { %8315 = vmatpush3.bf16.msra.mxu1 %v9253_v41  ;;  %5757 = vmatprep.mubr.bf16.mxu1 %v7528_v12  ;;  %v9315_v41 = vld [vmem:[%s12180_s1 + $0x238] sm:$0xff]   ;;  %v9348_v12 = vld [vmem:[%s12180_s1 + $0x3f0] sm:$0xff]  }
  0x32   : > { %8316 = vmatprep.subr.bf16.mxu1 %v9256_v44 }
  0x33   : > { %8295 = vmatpush3.bf16.msra.mxu0 %v9255_v43  ;;  %v282_v43 = vld [vmem:[%s10185_s19 + $0x20] sm:$0xff] }
  0x34   : > { %8296 = vmatprep.subr.bf16.mxu0 %v9258_v46  ;;  %v7529_v44 = vcombine.low %v282_v43, %v282_v43  ;;  %v9319_v46 = vld [vmem:[%s12180_s1 + $0x2b8] sm:$0xff]  }
  0x35   : > { %8317 = vmatpush3.bf16.msra.mxu1 %v9257_v45  ;;  %v7530_v45 = vcombine.high %v282_v43, %v282_v43  ;;  %v9377_v43 = vld [vmem:[%s12180_s1 + $0x4a0] sm:$0xff]  }
  0x36   : > { %8318 = vmatprep.subr.bf16.mxu1 %v9260_v48  ;;  %v283_v48 = vld [vmem:[%s10185_s19 + $0x28] sm:$0xff] }
  0x37   : > { %8297 = vmatpush3.bf16.msra.mxu0 %v9259_v47  ;;  %v9320_v47 = vld [vmem:[%s12180_s1 + $0x340] sm:$0xff]  }
  0x38   : > { %8298 = vmatprep.subr.bf16.mxu0 %v9262_v50  ;;  %v7532_v50 = vcombine.high %v283_v48, %v283_v48 }
  0x39   : > { %8319 = vmatpush3.bf16.msra.mxu1 %v9261_v49  ;;  %v7531_v49 = vcombine.low %v283_v48, %v283_v48  ;;  %v9382_v48 = vld [vmem:[%s12180_s1 + $0x470] sm:$0xff]  }
  0x3a   : > { %8320 = vmatprep.subr.bf16.mxu1 %v9264_v52  ;;  %v9324_v52 = vld [vmem:[%s12180_s1 + $0x3c0] sm:$0xff]  }
  0x3b   : > { %8299 = vmatpush3.bf16.msra.mxu0 %v9263_v51  ;;  %v9323_v51 = vld [vmem:[%s12180_s1 + $0x300] sm:$0xff]  }
  0x3c   : > { %8300 = vmatprep.subr.bf16.mxu0 %v9266_v54  ;;  %v9326_v54 = vld [vmem:[%s12180_s1 + $0x348] sm:$0xff]  }
  0x3d   : > { %8321 = vmatpush3.bf16.msra.mxu1 %v9265_v53  ;;  %v9325_v53 = vld [vmem:[%s12180_s1 + $0x380] sm:$0xff]  }
  0x3e   : > { %8322 = vmatprep.subr.bf16.mxu1 %v9268_v56  ;;  %v9328_v56 = vld [vmem:[%s12180_s1 + $0x3c8] sm:$0xff]  }
  0x3f   : > { %8301 = vmatpush3.bf16.msra.mxu0 %v9267_v55  ;;  %v9327_v55 = vld [vmem:[%s12180_s1 + $0x308] sm:$0xff]  }
  0x40   : > { %8302 = vmatprep.subr.bf16.mxu0 %v9270_v58  ;;  %v9330_v58 = vld [vmem:[%s12180_s1 + $0x350] sm:$0xff]  }
  0x41   : > { %8323 = vmatpush3.bf16.msra.mxu1 %v9269_v57  ;;  %v9329_v57 = vld [vmem:[%s12180_s1 + $0x388] sm:$0xff]  }
  0x42   : > { %8324 = vmatprep.subr.bf16.mxu1 %v9272_v60  ;;  %v9332_v60 = vld [vmem:[%s12180_s1 + $0x3d0] sm:$0xff]  }
  0x43   : > { %8303 = vmatpush3.bf16.msra.mxu0 %v9271_v59  ;;  %v9331_v59 = vld [vmem:[%s12180_s1 + $0x310] sm:$0xff]  }
  0x44   : > { %8304 = vmatprep.subr.bf16.mxu0 %v9274_v62  ;;  %v9334_v62 = vld [vmem:[%s12180_s1 + $0x358] sm:$0xff]  }
  0x45   : > { %8325 = vmatpush3.bf16.msra.mxu1 %v9273_v61  ;;  %v9333_v61 = vld [vmem:[%s12180_s1 + $0x390] sm:$0xff]  }
  0x46   : > { %8326 = vmatprep.subr.bf16.mxu1 %v9276_v0  ;;  %v9336_v0 = vld [vmem:[%s12180_s1 + $0x3d8] sm:$0xff]  }
  0x47   : > { %8305 = vmatpush3.bf16.msra.mxu0 %v9275_v63  ;;  %v9335_v63 = vld [vmem:[%s12180_s1 + $0x318] sm:$0xff]  }
  0x48   : > { %8306 = vmatprep.subr.bf16.mxu0 %v9278_v2  ;;  %v9338_v2 = vld [vmem:[%s12180_s1 + $0x360] sm:$0xff]  }
  0x49   : > { %8327 = vmatpush3.bf16.msra.mxu1 %v9277_v1  ;;  %v9337_v1 = vld [vmem:[%s12180_s1 + $0x398] sm:$0xff]  }
  0x4a   : > { %8328 = vmatprep.subr.bf16.mxu1 %v9280_v4  ;;  %v9340_v4 = vld [vmem:[%s12180_s1 + $0x3e0] sm:$0xff]  }
  0x4b   : > { %8307 = vmatpush3.bf16.msra.mxu0 %v9279_v3  ;;  %v9339_v3 = vld [vmem:[%s12180_s1 + $0x320] sm:$0xff]  }
  0x4c   : > { %8336 = vmatprep.subr.bf16.mxu0 %v9284_v9  ;;  %v9345_v9 = vld [vmem:[%s12180_s1 + $0x3a8] sm:$0xff]  }
  0x4d   : > { %8329 = vmatpush3.bf16.msra.mxu1 %v9283_v8  ;;  %v9344_v8 = vld [vmem:[%s12180_s1 + $0x3e8] sm:$0xff]  }
  0x4e   : > { %5718 = vmatmul.mubr.bf16.vlgmr.msra.gmra.mrb[4].mxu0 %v7525_v6  ;;  %8358 = vmatprep.subr.bf16.mxu1 %v9288_v14  ;;  %v9342_v6 = vld [vmem:[%s12180_s1 + $0x368] sm:$0xff]   ;;  %v9350_v14 = vld [vmem:[%s12180_s1 + $0x378] sm:$0xff]  }
  0x4f   : > { %8337 = vmatpush3.bf16.msra.mxu0 %v9287_v13  ;;  %5797 = vmatprep.mubr.bf16.mxu0 %v7530_v45  ;;  %v9349_v13 = vld [vmem:[%s12180_s1 + $0x3b0] sm:$0xff]   ;;  %v9379_v45 = vld [vmem:[%s12180_s1 + $0x428] sm:$0xff]  }
  0x50   : > { %5758 = vmatmul.mubr.bf16.vlgmr.msra.gmra.mrb[4].mxu1 %v7527_v11  ;;  %8338 = vmatprep.subr.bf16.mxu0 %v9290_v16  ;;  %v9347_v11 = vld [vmem:[%s12180_s1 + $0x330] sm:$0xff]   ;;  %v9352_v16 = vld [vmem:[%s12180_s1 + $0x3f8] sm:$0xff]  }
  0x51   : > { %8359 = vmatpush3.bf16.msra.mxu1 %v9289_v15  ;;  %5837 = vmatprep.mubr.bf16.mxu1 %v7532_v50  ;;  %v9351_v15 = vld [vmem:[%s12180_s1 + $0x338] sm:$0xff]   ;;  %v9384_v50 = vld [vmem:[%s12180_s1 + $0x4f0] sm:$0xff]  }
  0x52   : > { %8360 = vmatprep.subr.bf16.mxu1 %v9292_v18 }
  0x53   : > { %8339 = vmatpush3.bf16.msra.mxu0 %v9291_v17  ;;  %v284_v17 = vld [vmem:[%s10185_s19 + $0x30] sm:$0xff] }
  0x54   : > { %8340 = vmatprep.subr.bf16.mxu0 %v9294_v20  ;;  %v7533_v18 = vcombine.low %v284_v17, %v284_v17  ;;  %v9355_v20 = vld [vmem:[%s12180_s1 + $0x3b8] sm:$0xff]  }
  0x55   : > { %8361 = vmatpush3.bf16.msra.mxu1 %v9293_v19  ;;  %v7534_v19 = vcombine.high %v284_v17, %v284_v17  ;;  %v9413_v17 = vld [vmem:[%s12180_s1 + $0x5a0] sm:$0xff]  }
  0x56   : > { %8362 = vmatprep.subr.bf16.mxu1 %v9296_v22  ;;  %v285_v22 = vld [vmem:[%s10185_s19 + $0x38] sm:$0xff] }
  0x57   : > { %8341 = vmatpush3.bf16.msra.mxu0 %v9295_v21  ;;  %v9356_v21 = vld [vmem:[%s12180_s1 + $0x440] sm:$0xff]  }
  0x58   : > { %8342 = vmatprep.subr.bf16.mxu0 %v9298_v24  ;;  %v7536_v24 = vcombine.high %v285_v22, %v285_v22 }
  0x59   : > { %8363 = vmatpush3.bf16.msra.mxu1 %v9297_v23  ;;  %v7535_v23 = vcombine.low %v285_v22, %v285_v22  ;;  %v9418_v22 = vld [vmem:[%s12180_s1 + $0x570] sm:$0xff]  }
  0x5a   : > { %8364 = vmatprep.subr.bf16.mxu1 %v9300_v26  ;;  %v9360_v26 = vld [vmem:[%s12180_s1 + $0x4c0] sm:$0xff]  }
  0x5b   : > { %8343 = vmatpush3.bf16.msra.mxu0 %v9299_v25  ;;  %v9359_v25 = vld [vmem:[%s12180_s1 + $0x400] sm:$0xff]  }
  0x5c   : > { %8344 = vmatprep.subr.bf16.mxu0 %v9302_v28  ;;  %v9362_v28 = vld [vmem:[%s12180_s1 + $0x448] sm:$0xff]  }
  0x5d   : > { %8365 = vmatpush3.bf16.msra.mxu1 %v9301_v27  ;;  %v9361_v27 = vld [vmem:[%s12180_s1 + $0x480] sm:$0xff]  }
  0x5e   : > { %8366 = vmatprep.subr.bf16.mxu1 %v9304_v30  ;;  %v9364_v30 = vld [vmem:[%s12180_s1 + $0x4c8] sm:$0xff]  }
  0x5f   : > { %8345 = vmatpush3.bf16.msra.mxu0 %v9303_v29  ;;  %v9363_v29 = vld [vmem:[%s12180_s1 + $0x408] sm:$0xff]  }
  0x60   : > { %8346 = vmatprep.subr.bf16.mxu0 %v9306_v32  ;;  %v9366_v32 = vld [vmem:[%s12180_s1 + $0x450] sm:$0xff]  }
  0x61   : > { %8367 = vmatpush3.bf16.msra.mxu1 %v9305_v31  ;;  %v9365_v31 = vld [vmem:[%s12180_s1 + $0x488] sm:$0xff]  }
  0x62   : > { %8368 = vmatprep.subr.bf16.mxu1 %v9308_v34  ;;  %v9368_v34 = vld [vmem:[%s12180_s1 + $0x4d0] sm:$0xff]  }
  0x63   : > { %8347 = vmatpush3.bf16.msra.mxu0 %v9307_v33  ;;  %v9367_v33 = vld [vmem:[%s12180_s1 + $0x410] sm:$0xff]  }
  0x64   : > { %8348 = vmatprep.subr.bf16.mxu0 %v9310_v36  ;;  %v9370_v36 = vld [vmem:[%s12180_s1 + $0x458] sm:$0xff]  }
  0x65   : > { %8369 = vmatpush3.bf16.msra.mxu1 %v9309_v35  ;;  %v9369_v35 = vld [vmem:[%s12180_s1 + $0x490] sm:$0xff]  }
  0x66   : > { %8370 = vmatprep.subr.bf16.mxu1 %v9312_v38  ;;  %v9372_v38 = vld [vmem:[%s12180_s1 + $0x4d8] sm:$0xff]  }
  0x67   : > { %8349 = vmatpush3.bf16.msra.mxu0 %v9311_v37  ;;  %v9371_v37 = vld [vmem:[%s12180_s1 + $0x418] sm:$0xff]  }
  0x68   : > { %8350 = vmatprep.subr.bf16.mxu0 %v9314_v40  ;;  %v9374_v40 = vld [vmem:[%s12180_s1 + $0x460] sm:$0xff]  }
  0x69   : > { %8371 = vmatpush3.bf16.msra.mxu1 %v9313_v39  ;;  %v9373_v39 = vld [vmem:[%s12180_s1 + $0x498] sm:$0xff]  }
  0x6a   : > { %8372 = vmatprep.subr.bf16.mxu1 %v9316_v42  ;;  %v9376_v42 = vld [vmem:[%s12180_s1 + $0x4e0] sm:$0xff]  }
  0x6b   : > { %8351 = vmatpush3.bf16.msra.mxu0 %v9315_v41  ;;  %v9375_v41 = vld [vmem:[%s12180_s1 + $0x420] sm:$0xff]  }
  0x6c   : > { %8380 = vmatprep.subr.bf16.mxu0 %v9320_v47  ;;  %v9381_v47 = vld [vmem:[%s12180_s1 + $0x4a8] sm:$0xff]  }
  0x6d   : > { %8373 = vmatpush3.bf16.msra.mxu1 %v9319_v46  ;;  %v9380_v46 = vld [vmem:[%s12180_s1 + $0x4e8] sm:$0xff]  }
  0x6e   : > { %5798 = vmatmul.mubr.bf16.vlgmr.msra.gmra.mrb[8].mxu0 %v7529_v44  ;;  %8402 = vmatprep.subr.bf16.mxu1 %v9324_v52  ;;  %v9378_v44 = vld [vmem:[%s12180_s1 + $0x468] sm:$0xff]   ;;  %v9386_v52 = vld [vmem:[%s12180_s1 + $0x478] sm:$0xff]  }
  0x6f   : > { %8381 = vmatpush3.bf16.msra.mxu0 %v9323_v51  ;;  %5877 = vmatprep.mubr.bf16.mxu0 %v7534_v19  ;;  %v9385_v51 = vld [vmem:[%s12180_s1 + $0x4b0] sm:$0xff]   ;;  %v9415_v19 = vld [vmem:[%s12180_s1 + $0x528] sm:$0xff]  }
  0x70   : > { %5838 = vmatmul.mubr.bf16.vlgmr.msra.gmra.mrb[8].mxu1 %v7531_v49  ;;  %8382 = vmatprep.subr.bf16.mxu0 %v9326_v54  ;;  %v9383_v49 = vld [vmem:[%s12180_s1 + $0x430] sm:$0xff]   ;;  %v9388_v54 = vld [vmem:[%s12180_s1 + $0x4f8] sm:$0xff]  }
  0x71   : > { %8403 = vmatpush3.bf16.msra.mxu1 %v9325_v53  ;;  %5917 = vmatprep.mubr.bf16.mxu1 %v7536_v24  ;;  %v9387_v53 = vld [vmem:[%s12180_s1 + $0x438] sm:$0xff]   ;;  %v9420_v24 = vld [vmem:[%s12180_s1 + $0x5f0] sm:$0xff]  }
  0x72   : > { %8404 = vmatprep.subr.bf16.mxu1 %v9328_v56 }
  0x73   : > { %8383 = vmatpush3.bf16.msra.mxu0 %v9327_v55  ;;  %v286_v55 = vld [vmem:[%s10185_s19 + $0x40] sm:$0xff] }
  0x74   : > { %8384 = vmatprep.subr.bf16.mxu0 %v9330_v58  ;;  %v7537_v56 = vcombine.low %v286_v55, %v286_v55  ;;  %v9391_v58 = vld [vmem:[%s12180_s1 + $0x4b8] sm:$0xff]  }
  0x75   : > { %8405 = vmatpush3.bf16.msra.mxu1 %v9329_v57  ;;  %v7538_v57 = vcombine.high %v286_v55, %v286_v55  ;;  %v9449_v55 = vld [vmem:[%s12180_s1 + $0x6a0] sm:$0xff]  }
  0x76   : > { %8406 = vmatprep.subr.bf16.mxu1 %v9332_v60  ;;  %v287_v60 = vld [vmem:[%s10185_s19 + $0x48] sm:$0xff] }
  0x77   : > { %8385 = vmatpush3.bf16.msra.mxu0 %v9331_v59  ;;  %v9392_v59 = vld [vmem:[%s12180_s1 + $0x540] sm:$0xff]  }
  0x78   : > { %8386 = vmatprep.subr.bf16.mxu0 %v9334_v62  ;;  %v7540_v62 = vcombine.high %v287_v60, %v287_v60 }
  0x79   : > { %8407 = vmatpush3.bf16.msra.mxu1 %v9333_v61  ;;  %v7539_v61 = vcombine.low %v287_v60, %v287_v60  ;;  %v9454_v60 = vld [vmem:[%s12180_s1 + $0x670] sm:$0xff]  }
  0x7a   : > { %8408 = vmatprep.subr.bf16.mxu1 %v9336_v0  ;;  %v9396_v0 = vld [vmem:[%s12180_s1 + $0x5c0] sm:$0xff]  }
  0x7b   : > { %8387 = vmatpush3.bf16.msra.mxu0 %v9335_v63  ;;  %v9395_v63 = vld [vmem:[%s12180_s1 + $0x500] sm:$0xff]  }
  0x7c   : > { %8388 = vmatprep.subr.bf16.mxu0 %v9338_v2  ;;  %v9398_v2 = vld [vmem:[%s12180_s1 + $0x548] sm:$0xff]  }
  0x7d   : > { %8409 = vmatpush3.bf16.msra.mxu1 %v9337_v1  ;;  %v9397_v1 = vld [vmem:[%s12180_s1 + $0x580] sm:$0xff]  }
  0x7e   : > { %8410 = vmatprep.subr.bf16.mxu1 %v9340_v4  ;;  %v9400_v4 = vld [vmem:[%s12180_s1 + $0x5c8] sm:$0xff]  }
  0x7f   : > { %8389 = vmatpush3.bf16.msra.mxu0 %v9339_v3  ;;  %v9399_v3 = vld [vmem:[%s12180_s1 + $0x508] sm:$0xff]  }
  0x80   : > { %8390 = vmatprep.subr.bf16.mxu0 %v9342_v6  ;;  %v9402_v6 = vld [vmem:[%s12180_s1 + $0x550] sm:$0xff]  }
  0x81   : > { %8411 = vmatpush3.bf16.msra.mxu1 %v9341_v5  ;;  %v9401_v5 = vld [vmem:[%s12180_s1 + $0x588] sm:$0xff]  }
  0x82   : > { %8412 = vmatprep.subr.bf16.mxu1 %v9344_v8  ;;  %v9404_v8 = vld [vmem:[%s12180_s1 + $0x5d0] sm:$0xff]  }
  0x83   : > { %8391 = vmatpush3.bf16.msra.mxu0 %v9343_v7  ;;  %v9403_v7 = vld [vmem:[%s12180_s1 + $0x510] sm:$0xff]  }
  0x84   : > { %8392 = vmatprep.subr.bf16.mxu0 %v9346_v10  ;;  %v9406_v10 = vld [vmem:[%s12180_s1 + $0x558] sm:$0xff]  }
  0x85   : > { %8413 = vmatpush3.bf16.msra.mxu1 %v9345_v9  ;;  %v9405_v9 = vld [vmem:[%s12180_s1 + $0x590] sm:$0xff]  }
  0x86   : > { %8414 = vmatprep.subr.bf16.mxu1 %v9348_v12  ;;  %v9408_v12 = vld [vmem:[%s12180_s1 + $0x5d8] sm:$0xff]  }
  0x87   : > { %8393 = vmatpush3.bf16.msra.mxu0 %v9347_v11  ;;  %v9407_v11 = vld [vmem:[%s12180_s1 + $0x518] sm:$0xff]  }
  0x88   : > { %8394 = vmatprep.subr.bf16.mxu0 %v9350_v14  ;;  %v9410_v14 = vld [vmem:[%s12180_s1 + $0x560] sm:$0xff]  }
  0x89   : > { %8415 = vmatpush3.bf16.msra.mxu1 %v9349_v13  ;;  %v9409_v13 = vld [vmem:[%s12180_s1 + $0x598] sm:$0xff]  }
  0x8a   : > { %8416 = vmatprep.subr.bf16.mxu1 %v9352_v16  ;;  %v9412_v16 = vld [vmem:[%s12180_s1 + $0x5e0] sm:$0xff]  }
  0x8b   : > { %8395 = vmatpush3.bf16.msra.mxu0 %v9351_v15  ;;  %v9411_v15 = vld [vmem:[%s12180_s1 + $0x520] sm:$0xff]  }
  0x8c   : > { %8424 = vmatprep.subr.bf16.mxu0 %v9356_v21  ;;  %v9417_v21 = vld [vmem:[%s12180_s1 + $0x5a8] sm:$0xff]  }
  0x8d   : > { %8417 = vmatpush3.bf16.msra.mxu1 %v9355_v20  ;;  %v9416_v20 = vld [vmem:[%s12180_s1 + $0x5e8] sm:$0xff]  }
  0x8e   : > { %5878 = vmatmul.mubr.bf16.vlgmr.msra.gmra.mrb[12].mxu0 %v7533_v18  ;;  %8446 = vmatprep.subr.bf16.mxu1 %v9360_v26  ;;  %v9414_v18 = vld [vmem:[%s12180_s1 + $0x568] sm:$0xff]   ;;  %v9422_v26 = vld [vmem:[%s12180_s1 + $0x578] sm:$0xff]  }
  0x8f   : > { %8425 = vmatpush3.bf16.msra.mxu0 %v9359_v25  ;;  %5957 = vmatprep.mubr.bf16.mxu0 %v7538_v57  ;;  %v9421_v25 = vld [vmem:[%s12180_s1 + $0x5b0] sm:$0xff]   ;;  %v9451_v57 = vld [vmem:[%s12180_s1 + $0x628] sm:$0xff]  }
  0x90   : > { %5918 = vmatmul.mubr.bf16.vlgmr.msra.gmra.mrb[12].mxu1 %v7535_v23  ;;  %8426 = vmatprep.subr.bf16.mxu0 %v9362_v28  ;;  %v9419_v23 = vld [vmem:[%s12180_s1 + $0x530] sm:$0xff]   ;;  %v9424_v28 = vld [vmem:[%s12180_s1 + $0x5f8] sm:$0xff]  }
  0x91   : > { %8447 = vmatpush3.bf16.msra.mxu1 %v9361_v27  ;;  %5997 = vmatprep.mubr.bf16.mxu1 %v7540_v62  ;;  %v9423_v27 = vld [vmem:[%s12180_s1 + $0x538] sm:$0xff]   ;;  %v9456_v62 = vld [vmem:[%s12180_s1 + $0x6f0] sm:$0xff]  }
  0x92   : > { %8448 = vmatprep.subr.bf16.mxu1 %v9364_v30 }
  0x93   : > { %8427 = vmatpush3.bf16.msra.mxu0 %v9363_v29  ;;  %v288_v29 = vld [vmem:[%s10185_s19 + $0x50] sm:$0xff] }
  0x94   : > { %8428 = vmatprep.subr.bf16.mxu0 %v9366_v32  ;;  %v7541_v30 = vcombine.low %v288_v29, %v288_v29  ;;  %v9427_v32 = vld [vmem:[%s12180_s1 + $0x5b8] sm:$0xff]  }
  0x95   : > { %8449 = vmatpush3.bf16.msra.mxu1 %v9365_v31  ;;  %v7542_v31 = vcombine.high %v288_v29, %v288_v29  ;;  %v9484_v29 = vld [vmem:[%s12180_s1 + $0x7e0] sm:$0xff]  }
  0x96   : > { %8450 = vmatprep.subr.bf16.mxu1 %v9368_v34  ;;  %v289_v34 = vld [vmem:[%s10185_s19 + $0x58] sm:$0xff] }
  0x97   : > { %8429 = vmatpush3.bf16.msra.mxu0 %v9367_v33  ;;  %v9428_v33 = vld [vmem:[%s12180_s1 + $0x640] sm:$0xff]  }
  0x98   : > { %8430 = vmatprep.subr.bf16.mxu0 %v9370_v36  ;;  %v7544_v36 = vcombine.high %v289_v34, %v289_v34 }
  0x99   : > { %8451 = vmatpush3.bf16.msra.mxu1 %v9369_v35  ;;  %v7543_v35 = vcombine.low %v289_v34, %v289_v34 }
  0x9a   : > { %8452 = vmatprep.subr.bf16.mxu1 %v9372_v38  ;;  %v9432_v38 = vld [vmem:[%s12180_s1 + $0x6c0] sm:$0xff]  }
  0x9b   : > { %8431 = vmatpush3.bf16.msra.mxu0 %v9371_v37  ;;  %v9431_v37 = vld [vmem:[%s12180_s1 + $0x600] sm:$0xff]  }
  0x9c   : > { %8432 = vmatprep.subr.bf16.mxu0 %v9374_v40  ;;  %v9434_v40 = vld [vmem:[%s12180_s1 + $0x648] sm:$0xff]  }
  0x9d   : > { %8453 = vmatpush3.bf16.msra.mxu1 %v9373_v39  ;;  %v9433_v39 = vld [vmem:[%s12180_s1 + $0x680] sm:$0xff]  }
  0x9e   : > { %8454 = vmatprep.subr.bf16.mxu1 %v9376_v42  ;;  %v9436_v42 = vld [vmem:[%s12180_s1 + $0x6c8] sm:$0xff]  }
  0x9f   : > { %8433 = vmatpush3.bf16.msra.mxu0 %v9375_v41  ;;  %v9435_v41 = vld [vmem:[%s12180_s1 + $0x608] sm:$0xff]  }
  0xa0   : > { %8434 = vmatprep.subr.bf16.mxu0 %v9378_v44  ;;  %v9438_v44 = vld [vmem:[%s12180_s1 + $0x650] sm:$0xff]  }
  0xa1   : > { %8455 = vmatpush3.bf16.msra.mxu1 %v9377_v43  ;;  %v9437_v43 = vld [vmem:[%s12180_s1 + $0x688] sm:$0xff]  }
  0xa2   : > { %8456 = vmatprep.subr.bf16.mxu1 %v9380_v46  ;;  %v9440_v46 = vld [vmem:[%s12180_s1 + $0x6d0] sm:$0xff]  }
  0xa3   : > { %8435 = vmatpush3.bf16.msra.mxu0 %v9379_v45  ;;  %v9439_v45 = vld [vmem:[%s12180_s1 + $0x610] sm:$0xff]  }
  0xa4   : > { %8436 = vmatprep.subr.bf16.mxu0 %v9382_v48  ;;  %v9442_v48 = vld [vmem:[%s12180_s1 + $0x658] sm:$0xff]  }
  0xa5   : > { %8457 = vmatpush3.bf16.msra.mxu1 %v9381_v47  ;;  %v9441_v47 = vld [vmem:[%s12180_s1 + $0x690] sm:$0xff]  }
  0xa6   : > { %8458 = vmatprep.subr.bf16.mxu1 %v9384_v50  ;;  %v9444_v50 = vld [vmem:[%s12180_s1 + $0x6d8] sm:$0xff]  }
  0xa7   : > { %8437 = vmatpush3.bf16.msra.mxu0 %v9383_v49  ;;  %v9443_v49 = vld [vmem:[%s12180_s1 + $0x618] sm:$0xff]  }
  0xa8   : > { %8438 = vmatprep.subr.bf16.mxu0 %v9386_v52  ;;  %v9446_v52 = vld [vmem:[%s12180_s1 + $0x660] sm:$0xff]  }
  0xa9   : > { %8459 = vmatpush3.bf16.msra.mxu1 %v9385_v51  ;;  %v9445_v51 = vld [vmem:[%s12180_s1 + $0x698] sm:$0xff]  }
  0xaa   : > { %8460 = vmatprep.subr.bf16.mxu1 %v9388_v54  ;;  %v9448_v54 = vld [vmem:[%s12180_s1 + $0x6e0] sm:$0xff]  }
  0xab   : > { %8439 = vmatpush3.bf16.msra.mxu0 %v9387_v53  ;;  %v9447_v53 = vld [vmem:[%s12180_s1 + $0x620] sm:$0xff]  }
  0xac   : > { %8468 = vmatprep.subr.bf16.mxu0 %v9392_v59  ;;  %v9453_v59 = vld [vmem:[%s12180_s1 + $0x6a8] sm:$0xff]  }
  0xad   : > { %8461 = vmatpush3.bf16.msra.mxu1 %v9391_v58  ;;  %v9452_v58 = vld [vmem:[%s12180_s1 + $0x6e8] sm:$0xff]  }
  0xae   : > { %5958 = vmatmul.mubr.bf16.vlgmr.msra.gmra.mrb[16].mxu0 %v7537_v56  ;;  %8490 = vmatprep.subr.bf16.mxu1 %v9396_v0  ;;  %v9450_v56 = vld [vmem:[%s12180_s1 + $0x668] sm:$0xff]   ;;  %v9458_v0 = vld [vmem:[%s12180_s1 + $0x678] sm:$0xff]  }
  0xaf   : > { %8469 = vmatpush3.bf16.msra.mxu0 %v9395_v63  ;;  %6037 = vmatprep.mubr.bf16.mxu0 %v7542_v31  ;;  %v9457_v63 = vld [vmem:[%s12180_s1 + $0x6b0] sm:$0xff]   ;;  %v9485_v31 = vld [vmem:[%s12180_s1 + $0x7a0] sm:$0xff]  }
  0xb0   : > { %5998 = vmatmul.mubr.bf16.vlgmr.msra.gmra.mrb[16].mxu1 %v7539_v61  ;;  %8470 = vmatprep.subr.bf16.mxu0 %v9398_v2  ;;  %v9455_v61 = vld [vmem:[%s12180_s1 + $0x630] sm:$0xff]   ;;  %v9460_v2 = vld [vmem:[%s12180_s1 + $0x6f8] sm:$0xff]  }
  0xb1   : > { %8491 = vmatpush3.bf16.msra.mxu1 %v9397_v1  ;;  %6077 = vmatprep.mubr.bf16.mxu1 %v7544_v36  ;;  %v9459_v1 = vld [vmem:[%s12180_s1 + $0x638] sm:$0xff]  }
  0xb2   : > { %8492 = vmatprep.subr.bf16.mxu1 %v9400_v4 }
  0xb3   : > { %8471 = vmatpush3.bf16.msra.mxu0 %v9399_v3  ;;  %v290_v3 = vld [vmem:[%s10185_s19 + $0x60] sm:$0xff] }
  0xb4   : > { %8472 = vmatprep.subr.bf16.mxu0 %v9402_v6  ;;  %v7545_v4 = vcombine.low %v290_v3, %v290_v3  ;;  %v9463_v6 = vld [vmem:[%s12180_s1 + $0x6b8] sm:$0xff]  }
  0xb5   : > { %8493 = vmatpush3.bf16.msra.mxu1 %v9401_v5  ;;  %v7546_v5 = vcombine.high %v290_v3, %v290_v3  ;;  %v9508_v3 = vld [vmem:[%s12180_s1 + $0x8c8] sm:$0xff]  }
  0xb6   : > { %8494 = vmatprep.subr.bf16.mxu1 %v9404_v8  ;;  %v291_v8 = vld [vmem:[%s10185_s19 + $0x68] sm:$0xff] }
  0xb7   : > { %8473 = vmatpush3.bf16.msra.mxu0 %v9403_v7  ;;  %v9464_v7 = vld [vmem:[%s12180_s1 + $0x740] sm:$0xff]  }
  0xb8   : > { %8474 = vmatprep.subr.bf16.mxu0 %v9406_v10  ;;  %v7548_v10 = vcombine.high %v291_v8, %v291_v8 }
  0xb9   : > { %8495 = vmatpush3.bf16.msra.mxu1 %v9405_v9  ;;  %v7547_v9 = vcombine.low %v291_v8, %v291_v8  ;;  %v9513_v8 = vld [vmem:[%s12180_s1 + $0x890] sm:$0xff]  }
  0xba   : > { %8496 = vmatprep.subr.bf16.mxu1 %v9408_v12  ;;  %v9468_v12 = vld [vmem:[%s12180_s1 + $0x7c0] sm:$0xff]  }
  0xbb   : > { %8475 = vmatpush3.bf16.msra.mxu0 %v9407_v11  ;;  %v9467_v11 = vld [vmem:[%s12180_s1 + $0x700] sm:$0xff]  }
  0xbc   : > { %8476 = vmatprep.subr.bf16.mxu0 %v9410_v14  ;;  %v9470_v14 = vld [vmem:[%s12180_s1 + $0x748] sm:$0xff]  }
  0xbd   : > { %8497 = vmatpush3.bf16.msra.mxu1 %v9409_v13  ;;  %v9469_v13 = vld [vmem:[%s12180_s1 + $0x780] sm:$0xff]  }
  0xbe   : > { %8498 = vmatprep.subr.bf16.mxu1 %v9412_v16  ;;  %v9472_v16 = vld [vmem:[%s12180_s1 + $0x7c8] sm:$0xff]  }
  0xbf   : > { %8477 = vmatpush3.bf16.msra.mxu0 %v9411_v15  ;;  %v9471_v15 = vld [vmem:[%s12180_s1 + $0x708] sm:$0xff]  }
  0xc0   : > { %8478 = vmatprep.subr.bf16.mxu0 %v9414_v18  ;;  %v9474_v18 = vld [vmem:[%s12180_s1 + $0x750] sm:$0xff]  }
  0xc1   : > { %8499 = vmatpush3.bf16.msra.mxu1 %v9413_v17  ;;  %v9473_v17 = vld [vmem:[%s12180_s1 + $0x788] sm:$0xff]  }
  0xc2   : > { %8500 = vmatprep.subr.bf16.mxu1 %v9416_v20  ;;  %v9476_v20 = vld [vmem:[%s12180_s1 + $0x7d0] sm:$0xff]  }
  0xc3   : > { %8479 = vmatpush3.bf16.msra.mxu0 %v9415_v19  ;;  %v9475_v19 = vld [vmem:[%s12180_s1 + $0x710] sm:$0xff]  }
  0xc4   : > { %8480 = vmatprep.subr.bf16.mxu0 %v9418_v22  ;;  %v9478_v22 = vld [vmem:[%s12180_s1 + $0x758] sm:$0xff]  }
  0xc5   : > { %8501 = vmatpush3.bf16.msra.mxu1 %v9417_v21  ;;  %v9477_v21 = vld [vmem:[%s12180_s1 + $0x790] sm:$0xff]  }
  0xc6   : > { %8502 = vmatprep.subr.bf16.mxu1 %v9420_v24  ;;  %v9480_v24 = vld [vmem:[%s12180_s1 + $0x7d8] sm:$0xff]  }
  0xc7   : > { %8481 = vmatpush3.bf16.msra.mxu0 %v9419_v23  ;;  %v9479_v23 = vld [vmem:[%s12180_s1 + $0x718] sm:$0xff]  }
  0xc8   : > { %8482 = vmatprep.subr.bf16.mxu0 %v9422_v26  ;;  %v9482_v26 = vld [vmem:[%s12180_s1 + $0x760] sm:$0xff]  }
  0xc9   : > { %8503 = vmatpush3.bf16.msra.mxu1 %v9421_v25  ;;  %v9481_v25 = vld [vmem:[%s12180_s1 + $0x798] sm:$0xff]  }
  0xca   : > { %8504 = vmatprep.subr.bf16.mxu1 %v9424_v28 }
  0xcb   : > { %8483 = vmatpush3.bf16.msra.mxu0 %v9423_v27  ;;  %v9483_v27 = vld [vmem:[%s12180_s1 + $0x720] sm:$0xff]  }
  0xcc   : > { %8512 = vmatprep.subr.bf16.mxu0 %v9428_v33 }
  0xcd   : > { %8505 = vmatpush3.bf16.msra.mxu1 %v9427_v32  ;;  %v7520_v32 = vld [vmem:[%s12181_s2] ss:$0 sm:$0xff] }
  0xce   : > { %6038 = vmatmul.mubr.bf16.vlgmr.msra.gmra.mrb[20].mxu0 %v7541_v30  ;;  %8534 = vmatprep.subr.bf16.mxu1 %v9432_v38  ;;  %v9487_v38 = vld [vmem:[%s12180_s1 + $0x728] sm:$0xff]  }
  0xcf   : > { %8513 = vmatpush3.bf16.msra.mxu0 %v9431_v37  ;;  %6117 = vmatprep.mubr.bf16.mxu0 %v7546_v5  ;;  %v9510_v5 = vld [vmem:[%s12180_s1 + $0x850] sm:$0xff]  }
  0xd0   : > { %6078 = vmatmul.mubr.bf16.vlgmr.msra.gmra.mrb[20].mxu1 %v7543_v35  ;;  %8514 = vmatprep.subr.bf16.mxu0 %v9434_v40  ;;  %v9486_v35 = vld [vmem:[%s12180_s1 + $0x768] sm:$0xff]  }
  0xd1   : > { %8535 = vmatpush3.bf16.msra.mxu1 %v9433_v39  ;;  %6157 = vmatprep.mubr.bf16.mxu1 %v7548_v10  ;;  %v9515_v10 = vld [vmem:[%s12180_s1 + $0x818] sm:$0xff]  }
  0xd2   : > { %8536 = vmatprep.subr.bf16.mxu1 %v9436_v42 }
  0xd3   : > { %8515 = vmatpush3.bf16.msra.mxu0 %v9435_v41  ;;  %v9488_v41 = vld [vmem:[%s12180_s1 + $0x7e8] sm:$0xff]  }
  0xd4   : > { %8516 = vmatprep.subr.bf16.mxu0 %v9438_v44 }
  0xd5   : > { %8537 = vmatpush3.bf16.msra.mxu1 %v9437_v43  ;;  %v9489_v43 = vld [vmem:[%s12180_s1 + $0x7a8] sm:$0xff]  }
  0xd6   : > { %8538 = vmatprep.subr.bf16.mxu1 %v9440_v46 }
  0xd7   : > { %8517 = vmatpush3.bf16.msra.mxu0 %v9439_v45  ;;  %v9490_v45 = vld [vmem:[%s12180_s1 + $0x770] sm:$0xff]  }
  0xd8   : > { %8518 = vmatprep.subr.bf16.mxu0 %v9442_v48  ;;  %v9491_v48 = vld [vmem:[%s12180_s1 + $0x730] sm:$0xff]  }
  0xd9   : > { %8539 = vmatpush3.bf16.msra.mxu1 %v9441_v47 }
  0xda   : > { %8540 = vmatprep.subr.bf16.mxu1 %v9444_v50  ;;  %v9493_v50 = vld [vmem:[%s12180_s1 + $0x7b0] sm:$0xff]  }
  0xdb   : > { %8519 = vmatpush3.bf16.msra.mxu0 %v9443_v49  ;;  %v9492_v49 = vld [vmem:[%s12180_s1 + $0x7f0] sm:$0xff]  }
  0xdc   : > { %8520 = vmatprep.subr.bf16.mxu0 %v9446_v52  ;;  %v9495_v52 = vld [vmem:[%s12180_s1 + $0x738] sm:$0xff]  }
  0xdd   : > { %8541 = vmatpush3.bf16.msra.mxu1 %v9445_v51  ;;  %v9494_v51 = vld [vmem:[%s12180_s1 + $0x778] sm:$0xff]  }
  0xde   : > { %8542 = vmatprep.subr.bf16.mxu1 %v9448_v54  ;;  %v292_v54 = vld [vmem:[%s10185_s19 + $0x70] sm:$0xff] }
  0xdf   : > { %8521 = vmatpush3.bf16.msra.mxu0 %v9447_v53  ;;  %v9496_v53 = vld [vmem:[%s12180_s1 + $0x7f8] sm:$0xff]  }
  0xe0   : > { %8522 = vmatprep.subr.bf16.mxu0 %v9450_v56  ;;  %v7550_v56 = vcombine.high %v292_v54, %v292_v54 }
  0xe1   : > { %8543 = vmatpush3.bf16.msra.mxu1 %v9449_v55  ;;  %v7549_v55 = vcombine.low %v292_v54, %v292_v54  ;;  %v9545_v54 = vld [vmem:[%s12180_s1 + $0x988] sm:$0xff]  }
  0xe2   : > { %8544 = vmatprep.subr.bf16.mxu1 %v9452_v58  ;;  %v9500_v58 = vld [vmem:[%s12180_s1 + $0x840] sm:$0xff]  }
  0xe3   : > { %8523 = vmatpush3.bf16.msra.mxu0 %v9451_v57  ;;  %v9499_v57 = vld [vmem:[%s12180_s1 + $0x7b8] sm:$0xff]  }
  0xe4   : > { %8524 = vmatprep.subr.bf16.mxu0 %v9454_v60 }
  0xe5   : > { %8545 = vmatpush3.bf16.msra.mxu1 %v9453_v59  ;;  %v293_v59 = vld [vmem:[%s10185_s19 + $0x78] sm:$0xff] }
  0xe6   : > { %8546 = vmatprep.subr.bf16.mxu1 %v9456_v62  ;;  %v7551_v60 = vcombine.low %v293_v59, %v293_v59  ;;  %v9503_v62 = vld [vmem:[%s12180_s1 + $0x800] sm:$0xff]  }
  0xe7   : > { %8525 = vmatpush3.bf16.msra.mxu0 %v9455_v61  ;;  %v7552_v61 = vcombine.high %v293_v59, %v293_v59  ;;  %v9550_v59 = vld [vmem:[%s12180_s1 + $0x958] sm:$0xff]  }
  0xe8   : > { %8526 = vmatprep.subr.bf16.mxu0 %v9458_v0  ;;  %v9505_v0 = vld [vmem:[%s12180_s1 + $0x880] sm:$0xff]  }
  0xe9   : > { %8547 = vmatpush3.bf16.msra.mxu1 %v9457_v63  ;;  %v9504_v63 = vld [vmem:[%s12180_s1 + $0x8c0] sm:$0xff]  }
  0xea   : > { %8548 = vmatprep.subr.bf16.mxu1 %v9460_v2  ;;  %v9507_v2 = vld [vmem:[%s12180_s1 + $0x808] sm:$0xff]  }
  0xeb   : > { %8527 = vmatpush3.bf16.msra.mxu0 %v9459_v1  ;;  %v9506_v1 = vld [vmem:[%s12180_s1 + $0x848] sm:$0xff]  }
  0xec   : > { %8556 = vmatprep.subr.bf16.mxu0 %v9464_v7  ;;  %v9512_v7 = vld [vmem:[%s12180_s1 + $0x8d0] sm:$0xff]  }
  0xed   : > { %8549 = vmatpush3.bf16.msra.mxu1 %v9463_v6  ;;  %v9511_v6 = vld [vmem:[%s12180_s1 + $0x810] sm:$0xff]  }
  0xee   : > { %6118 = vmatmul.mubr.bf16.vlgmr.msra.gmra.mrb[24].mxu0 %v7545_v4  ;;  %8578 = vmatprep.subr.bf16.mxu1 %v9468_v12  ;;  %v9509_v4 = vld [vmem:[%s12180_s1 + $0x888] sm:$0xff]   ;;  %v9517_v12 = vld [vmem:[%s12180_s1 + $0x898] sm:$0xff]  }
  0xef   : > { %8557 = vmatpush3.bf16.msra.mxu0 %v9467_v11  ;;  %6197 = vmatprep.mubr.bf16.mxu0 %v7550_v56  ;;  %v9516_v11 = vld [vmem:[%s12180_s1 + $0x8d8] sm:$0xff]   ;;  %v9547_v56 = vld [vmem:[%s12180_s1 + $0x910] sm:$0xff]  }
  0xf0   : > { %6158 = vmatmul.mubr.bf16.vlgmr.msra.gmra.mrb[24].mxu1 %v7547_v9  ;;  %8558 = vmatprep.subr.bf16.mxu0 %v9470_v14  ;;  %v9514_v9 = vld [vmem:[%s12180_s1 + $0x858] sm:$0xff]  }
  0xf1   : > { %8579 = vmatpush3.bf16.msra.mxu1 %v9469_v13  ;;  %6237 = vmatprep.mubr.bf16.mxu1 %v7552_v61  ;;  %v9518_v13 = vld [vmem:[%s12180_s1 + $0x860] sm:$0xff]   ;;  %v9552_v61 = vld [vmem:[%s12180_s1 + $0x9d8] sm:$0xff]  }
  0xf2   : > { %8580 = vmatprep.subr.bf16.mxu1 %v9472_v16 }
  0xf3   : > { %8559 = vmatpush3.bf16.msra.mxu0 %v9471_v15  ;;  %v9519_v15 = vld [vmem:[%s12180_s1 + $0x820] sm:$0xff]  }
  0xf4   : > { %8560 = vmatprep.subr.bf16.mxu0 %v9474_v18 }
  0xf5   : > { %8581 = vmatpush3.bf16.msra.mxu1 %v9473_v17  ;;  %v9520_v17 = vld [vmem:[%s12180_s1 + $0x8e0] sm:$0xff]  }
  0xf6   : > { %8582 = vmatprep.subr.bf16.mxu1 %v9476_v20  ;;  %v9521_v20 = vld [vmem:[%s12180_s1 + $0x8a0] sm:$0xff]  }
  0xf7   : > { %8561 = vmatpush3.bf16.msra.mxu0 %v9475_v19 }
  0xf8   : > { %8562 = vmatprep.subr.bf16.mxu0 %v9478_v22 }
  0xf9   : > { %8583 = vmatpush3.bf16.msra.mxu1 %v9477_v21 }
  0xfa   : > { %8584 = vmatprep.subr.bf16.mxu1 %v9480_v24 }
  0xfb   : > { %8563 = vmatpush3.bf16.msra.mxu0 %v9479_v23  ;;  %v9522_v23 = vld [vmem:[%s12180_s1 + $0x868] sm:$0xff]  }
  0xfc   : > { %8564 = vmatprep.subr.bf16.mxu0 %v9482_v26 }
  0xfd   : > { %8585 = vmatpush3.bf16.msra.mxu1 %v9481_v25  ;;  %v9523_v25 = vld [vmem:[%s12180_s1 + $0x828] sm:$0xff]  }
  0xfe   : > { %8586 = vmatprep.subr.bf16.mxu1 %v9484_v29 }
  0xff   : > { %8565 = vmatpush3.bf16.msra.mxu0 %v9483_v27 }
 0x100   : > { %8566 = vmatprep.subr.bf16.mxu0 %v9486_v35  ;;  %v9528_v35 = vld [vmem:[%s12180_s1 + $0x8f0] sm:$0xff]  }
 0x101   : > { %v8264_v28 = vpop.f32.mrb[0].mxu0  ;;  %8587 = vmatpush3.bf16.msra.mxu1 %v9485_v31 }
 0x102   : > { %v8265_v30 = vpop.f32.mrb[1].mxu0  ;;  %8588 = vmatprep.subr.bf16.mxu1 %v9488_v41 }
 0x103   : > { %v8266_v33 = vadd.f32 %v8265_v30, %v8264_v28  ;;  %v8267_v34 = vpop.f32.mrb[2].mxu0  ;;  %v8286_v36 = vpop.f32.mrb[0].mxu1  ;;  %8567 = vmatpush3.bf16.msra.mxu0 %v9487_v38  ;;  %v9524_v28 = vld [vmem:[%s12180_s1 + $0x8e8] sm:$0xff]   ;;  %v9531_v38 = vld [vmem:[%s12180_s1 + $0x838] sm:$0xff]  }
 0x104   : > { %v8268_v39 = vpop.f32.mrb[3].mxu0  ;;  %v8287_v40 = vpop.f32.mrb[1].mxu1  ;;  %8568 = vmatprep.subr.bf16.mxu0 %v9490_v45  ;;  %v9525_v30 = vld [vmem:[%s12180_s1 + $0x8a8] sm:$0xff]   ;;  %v9527_v34 = vld [vmem:[%s12180_s1 + $0x830] sm:$0xff]  }
 0x105   : > { %v5640_v37 = vadd.f32 %v8266_v33, %v7520_v32  ;;  %v8288_v42 = vadd.f32 %v8287_v40, %v8286_v36  ;;  %v8289_v44 = vpop.f32.mrb[2].mxu1  ;;  %8589 = vmatpush3.bf16.msra.mxu1 %v9489_v43  ;;  %v9526_v33 = vld [vmem:[%s12180_s1 + $0x870] sm:$0xff]   ;;  %v9532_v39 = vld [vmem:[%s12180_s1 + $0x8f8] sm:$0xff]   ;;  %v294_v40 = vld [vmem:[%s10185_s19 + $0x80] sm:$0xff] }
 0x106   : > { %v8290_v46 = vpop.f32.mrb[3].mxu1  ;;  %8590 = vmatprep.subr.bf16.mxu1 %v9492_v49  ;;  %v9529_v36 = vld [vmem:[%s12180_s1 + $0x8b0] sm:$0xff]   ;;  %v7553_v41 = vcombine.low %v294_v40, %v294_v40  ;;  %v9535_v43 = vld [vmem:[%s12180_s1 + $0x8b8] sm:$0xff]   ;;  %v9536_v44 = vld [vmem:[%s12180_s1 + $0x940] sm:$0xff]  }
 0x107   : > { %v10864_v47 = vadd.f32 %v8288_v42, %v5640_v37  ;;  %8569 = vmatpush3.bf16.msra.mxu0 %v9491_v48  ;;  %v9530_v37 = vld [vmem:[%s12180_s1 + $0x878] sm:$0xff]   ;;  %v7554_v42 = vcombine.high %v294_v40, %v294_v40  ;;  %v295_v45 = vld [vmem:[%s10185_s19 + $0x88] sm:$0xff]  ;;  %v9539_v48 = vld [vmem:[%s12180_s1 + $0x900] sm:$0xff]  }
 0x108   : > { %8570 = vmatprep.subr.bf16.mxu0 %v9494_v51  ;;  %v7555_v46 = vcombine.low %v295_v45, %v295_v45  ;;  %v9540_v49 = vld [vmem:[%s12180_s1 + $0x9c0] sm:$0xff]   ;;  %v9542_v51 = vld [vmem:[%s12180_s1 + $0x948] sm:$0xff]  }
 0x109   : > { %8591 = vmatpush3.bf16.msra.mxu1 %v9493_v50  ;;  %v9541_v50 = vld [vmem:[%s12180_s1 + $0x980] sm:$0xff]   ;;  %v9581_v40 = vld [vmem:[%s12180_s1 + $0xa88] sm:$0xff]  }
 0x10a   : > { %8592 = vmatprep.subr.bf16.mxu1 %v9496_v53  ;;  %v9544_v53 = vld [vmem:[%s12180_s1 + $0x9c8] sm:$0xff]  }
 0x10b   : > { %8571 = vmatpush3.bf16.msra.mxu0 %v9495_v52  ;;  %v9543_v52 = vld [vmem:[%s12180_s1 + $0x908] sm:$0xff]  }
 0x10c   : > { %8600 = vmatprep.subr.bf16.mxu0 %v9500_v58  ;;  %v9549_v58 = vld [vmem:[%s12180_s1 + $0x990] sm:$0xff]  }
 0x10d   : > { %8593 = vmatpush3.bf16.msra.mxu1 %v9499_v57  ;;  %v9548_v57 = vld [vmem:[%s12180_s1 + $0x9d0] sm:$0xff]  }
 0x10e   : > { %6198 = vmatmul.mubr.bf16.vlgmr.msra.gmra.mrb[28].mxu0 %v7549_v55  ;;  %8622 = vmatprep.subr.bf16.mxu1 %v9504_v63  ;;  %v9546_v55 = vld [vmem:[%s12180_s1 + $0x950] sm:$0xff]   ;;  %v9554_v63 = vld [vmem:[%s12180_s1 + $0x960] sm:$0xff]  }
 0x10f   : > { %8601 = vmatpush3.bf16.msra.mxu0 %v9503_v62  ;;  %6277 = vmatprep.mubr.bf16.mxu0 %v7554_v42  ;;  %v9553_v62 = vld [vmem:[%s12180_s1 + $0x998] sm:$0xff]   ;;  %v9583_v42 = vld [vmem:[%s12180_s1 + $0xa10] sm:$0xff]  }
 0x110   : > { %6238 = vmatmul.mubr.bf16.vlgmr.msra.gmra.mrb[28].mxu1 %v7551_v60  ;;  %8602 = vmatprep.subr.bf16.mxu0 %v9506_v1  ;;  %v9551_v60 = vld [vmem:[%s12180_s1 + $0x918] sm:$0xff]   ;;  %v9555_v1 = vld [vmem:[%s12180_s1 + $0x920] sm:$0xff]  }
 0x111   : > { %8623 = vmatpush3.bf16.msra.mxu1 %v9505_v0 }
 0x112   : > { %8624 = vmatprep.subr.bf16.mxu1 %v9508_v3  ;;  %v9556_v3 = vld [vmem:[%s12180_s1 + $0x9e0] sm:$0xff]  }
 0x113   : > { %8603 = vmatpush3.bf16.msra.mxu0 %v9507_v2 }
 0x114   : > { %8604 = vmatprep.subr.bf16.mxu0 %v9510_v5 }
 0x115   : > { %8625 = vmatpush3.bf16.msra.mxu1 %v9509_v4 }
 0x116   : > { %8626 = vmatprep.subr.bf16.mxu1 %v9512_v7 }
 0x117   : > { %8605 = vmatpush3.bf16.msra.mxu0 %v9511_v6  ;;  %v9557_v6 = vld [vmem:[%s12180_s1 + $0x9a0] sm:$0xff]  }
 0x118   : > { %8606 = vmatprep.subr.bf16.mxu0 %v9514_v9  ;;  %v9558_v9 = vld [vmem:[%s12180_s1 + $0x968] sm:$0xff]  }
 0x119   : > { %8627 = vmatpush3.bf16.msra.mxu1 %v9513_v8 }
 0x11a   : > { %8628 = vmatprep.subr.bf16.mxu1 %v9516_v11  ;;  %v9559_v11 = vld [vmem:[%s12180_s1 + $0x928] sm:$0xff]  }
 0x11b   : > { %8607 = vmatpush3.bf16.msra.mxu0 %v9515_v10 }
 0x11c   : > { %8608 = vmatprep.subr.bf16.mxu0 %v9518_v13 }
 0x11d   : > { %8629 = vmatpush3.bf16.msra.mxu1 %v9517_v12 }
 0x11e   : > { %8630 = vmatprep.subr.bf16.mxu1 %v9520_v17 }
 0x11f   : > { %8609 = vmatpush3.bf16.msra.mxu0 %v9519_v15 }
 0x120   : > { %8610 = vmatprep.subr.bf16.mxu0 %v9522_v23  ;;  %v9566_v23 = vld [vmem:[%s12180_s1 + $0x978] sm:$0xff]  }
 0x121   : > { %v8308_v14 = vpop.f32.mrb[4].mxu0  ;;  %8631 = vmatpush3.bf16.msra.mxu1 %v9521_v20  ;;  %v9563_v20 = vld [vmem:[%s12180_s1 + $0x930] sm:$0xff]  }
 0x122   : > { %v8309_v16 = vpop.f32.mrb[5].mxu0  ;;  %8632 = vmatprep.subr.bf16.mxu1 %v9524_v28 }
 0x123   : > { %v8310_v18 = vadd.f32 %v8309_v16, %v8308_v14  ;;  %v8311_v19 = vpop.f32.mrb[6].mxu0  ;;  %v8330_v21 = vpop.f32.mrb[4].mxu1  ;;  %8611 = vmatpush3.bf16.msra.mxu0 %v9523_v25  ;;  %v9560_v14 = vld [vmem:[%s12180_s1 + $0x9e8] sm:$0xff]   ;;  %v9568_v25 = vld [vmem:[%s12180_s1 + $0x9f8] sm:$0xff]  }
 0x124   : > { %v8312_v24 = vpop.f32.mrb[7].mxu0  ;;  %v8331_v26 = vpop.f32.mrb[5].mxu1  ;;  %8612 = vmatprep.subr.bf16.mxu0 %v9526_v33  ;;  %v9561_v16 = vld [vmem:[%s12180_s1 + $0x9a8] sm:$0xff]   ;;  %v9562_v19 = vld [vmem:[%s12180_s1 + $0x970] sm:$0xff]  }
 0x125   : > { %v5720_v22 = vadd.f32 %v8310_v18, %v10864_v47  ;;  %v8332_v27 = vadd.f32 %v8331_v26, %v8330_v21  ;;  %v8333_v29 = vpop.f32.mrb[6].mxu1  ;;  %8633 = vmatpush3.bf16.msra.mxu1 %v9525_v30  ;;  %v7556_v47 = vcombine.high %v295_v45, %v295_v45  ;;  %v9564_v21 = vld [vmem:[%s12180_s1 + $0x9f0] sm:$0xff]   ;;  %v9567_v24 = vld [vmem:[%s12180_s1 + $0x938] sm:$0xff]   ;;  %v9572_v30 = vld [vmem:[%s12180_s1 + $0xa40] sm:$0xff]  }
 0x126   : > { %v8334_v31 = vpop.f32.mrb[7].mxu1  ;;  %8634 = vmatprep.subr.bf16.mxu1 %v9528_v35  ;;  %v296_v26 = vld [vmem:[%s10185_s19 + $0x90] sm:$0xff]  ;;  %v9571_v29 = vld [vmem:[%s12180_s1 + $0x9b8] sm:$0xff]   ;;  %v9576_v35 = vld [vmem:[%s12180_s1 + $0xac0] sm:$0xff]  }
 0x127   : > { %v10962_v32 = vadd.f32 %v8332_v27, %v5720_v22  ;;  %8613 = vmatpush3.bf16.msra.mxu0 %v9527_v34  ;;  %6317 = vmatprep.mubr.bf16.mxu1 %v7556_v47  ;;  %v9565_v22 = vld [vmem:[%s12180_s1 + $0x9b0] sm:$0xff]   ;;  %v7557_v27 = vcombine.low %v296_v26, %v296_v26  ;;  %v7558_v28 = vcombine.high %v296_v26, %v296_v26  ;;  %v297_v31 = vld [vmem:[%s10185_s19 + $0x98] sm:$0xff]  ;;  %v9575_v34 = vld [vmem:[%s12180_s1 + $0xa00] sm:$0xff]  }
 0x128   : > { %8614 = vmatprep.subr.bf16.mxu0 %v9530_v37  ;;  %v7560_v33 = vcombine.high %v297_v31, %v297_v31  ;;  %v9578_v37 = vld [vmem:[%s12180_s1 + $0xa48] sm:$0xff]   ;;  %v9586_v45 = vld [vmem:[%s12180_s1 + $0xa58] sm:$0xff]  }
 0x129   : > { %8635 = vmatpush3.bf16.msra.mxu1 %v9529_v36  ;;  %v9577_v36 = vld [vmem:[%s12180_s1 + $0xa80] sm:$0xff]   ;;  %v9588_v47 = vld [vmem:[%s12180_s1 + $0xad8] sm:$0xff]   ;;  %v9617_v26 = vld [vmem:[%s12180_s1 + $0xb88] sm:$0xff]  }
 0x12a   : > { %8636 = vmatprep.subr.bf16.mxu1 %v9532_v39  ;;  %v9580_v39 = vld [vmem:[%s12180_s1 + $0xac8] sm:$0xff]  }
 0x12b   : > { %8615 = vmatpush3.bf16.msra.mxu0 %v9531_v38  ;;  %v9579_v38 = vld [vmem:[%s12180_s1 + $0xa08] sm:$0xff]  }
 0x12c   : > { %8644 = vmatprep.subr.bf16.mxu0 %v9536_v44  ;;  %v9585_v44 = vld [vmem:[%s12180_s1 + $0xa90] sm:$0xff]  }
 0x12d   : > { %8637 = vmatpush3.bf16.msra.mxu1 %v9535_v43  ;;  %v9584_v43 = vld [vmem:[%s12180_s1 + $0xad0] sm:$0xff]  }
 0x12e   : > { %6278 = vmatmul.mubr.bf16.vlgmr.msra.gmra.mrb[32].mxu0 %v7553_v41  ;;  %8666 = vmatprep.subr.bf16.mxu1 %v9540_v49  ;;  %v9582_v41 = vld [vmem:[%s12180_s1 + $0xa50] sm:$0xff]   ;;  %v9590_v49 = vld [vmem:[%s12180_s1 + $0xa60] sm:$0xff]  }
 0x12f   : > { %8645 = vmatpush3.bf16.msra.mxu0 %v9539_v48  ;;  %6357 = vmatprep.mubr.bf16.mxu0 %v7558_v28  ;;  %v9589_v48 = vld [vmem:[%s12180_s1 + $0xa98] sm:$0xff]   ;;  %v9619_v28 = vld [vmem:[%s12180_s1 + $0xb10] sm:$0xff]  }
 0x130   : > { %6318 = vmatmul.mubr.bf16.vlgmr.msra.gmra.mrb[32].mxu1 %v7555_v46  ;;  %8646 = vmatprep.subr.bf16.mxu0 %v9542_v51  ;;  %v9587_v46 = vld [vmem:[%s12180_s1 + $0xa18] sm:$0xff]  }
 0x131   : > { %8667 = vmatpush3.bf16.msra.mxu1 %v9541_v50  ;;  %6397 = vmatprep.mubr.bf16.mxu1 %v7560_v33  ;;  %v9591_v50 = vld [vmem:[%s12180_s1 + $0xa20] sm:$0xff]   ;;  %v9624_v33 = vld [vmem:[%s12180_s1 + $0xbd8] sm:$0xff]  }
 0x132   : > { %8668 = vmatprep.subr.bf16.mxu1 %v9544_v53 }
 0x133   : > { %8647 = vmatpush3.bf16.msra.mxu0 %v9543_v52  ;;  %v9592_v52 = vld [vmem:[%s12180_s1 + $0xae0] sm:$0xff]  }
 0x134   : > { %8648 = vmatprep.subr.bf16.mxu0 %v9546_v55 }
 0x135   : > { %8669 = vmatpush3.bf16.msra.mxu1 %v9545_v54  ;;  %v9593_v54 = vld [vmem:[%s12180_s1 + $0xaa0] sm:$0xff]  }
 0x136   : > { %8670 = vmatprep.subr.bf16.mxu1 %v9548_v57  ;;  %v9594_v57 = vld [vmem:[%s12180_s1 + $0xa68] sm:$0xff]  }
 0x137   : > { %8649 = vmatpush3.bf16.msra.mxu0 %v9547_v56 }
 0x138   : > { %8650 = vmatprep.subr.bf16.mxu0 %v9550_v59 }
 0x139   : > { %8671 = vmatpush3.bf16.msra.mxu1 %v9549_v58 }
 0x13a   : > { %8672 = vmatprep.subr.bf16.mxu1 %v9552_v61 }
 0x13b   : > { %8651 = vmatpush3.bf16.msra.mxu0 %v9551_v60  ;;  %v9595_v60 = vld [vmem:[%s12180_s1 + $0xa28] sm:$0xff]  }
 0x13c   : > { %8652 = vmatprep.subr.bf16.mxu0 %v9554_v63  ;;  %v9596_v63 = vld [vmem:[%s12180_s1 + $0xae8] sm:$0xff]  }
 0x13d   : > { %8673 = vmatpush3.bf16.msra.mxu1 %v9553_v62 }
 0x13e   : > { %8674 = vmatprep.subr.bf16.mxu1 %v9556_v3  ;;  %v9598_v3 = vld [vmem:[%s12180_s1 + $0xa70] sm:$0xff]  }
 0x13f   : > { %8653 = vmatpush3.bf16.msra.mxu0 %v9555_v1  ;;  %v9597_v1 = vld [vmem:[%s12180_s1 + $0xaa8] sm:$0xff]  }
 0x140   : > { %8654 = vmatprep.subr.bf16.mxu0 %v9558_v9  ;;  %v9602_v9 = vld [vmem:[%s12180_s1 + $0xa78] sm:$0xff]  }
 0x141   : > { %v8352_v0 = vpop.f32.mrb[8].mxu0  ;;  %8675 = vmatpush3.bf16.msra.mxu1 %v9557_v6  ;;  %v9599_v6 = vld [vmem:[%s12180_s1 + $0xa30] sm:$0xff]  }
 0x142   : > { %v8353_v2 = vpop.f32.mrb[9].mxu0  ;;  %8676 = vmatprep.subr.bf16.mxu1 %v9560_v14 }
 0x143   : > { %v8354_v4 = vadd.f32 %v8353_v2, %v8352_v0  ;;  %v8355_v5 = vpop.f32.mrb[10].mxu0  ;;  %v8374_v7 = vpop.f32.mrb[8].mxu1  ;;  %8655 = vmatpush3.bf16.msra.mxu0 %v9559_v11  ;;  %v9604_v11 = vld [vmem:[%s12180_s1 + $0xaf8] sm:$0xff]  }
 0x144   : > { %v8356_v10 = vpop.f32.mrb[11].mxu0  ;;  %v8375_v12 = vpop.f32.mrb[9].mxu1  ;;  %8656 = vmatprep.subr.bf16.mxu0 %v9562_v19 }
 0x145   : > { %v5800_v8 = vadd.f32 %v8354_v4, %v10962_v32  ;;  %v8376_v13 = vadd.f32 %v8375_v12, %v8374_v7  ;;  %v8377_v15 = vpop.f32.mrb[10].mxu1  ;;  %8677 = vmatpush3.bf16.msra.mxu1 %v9561_v16  ;;  %v7559_v32 = vcombine.low %v297_v31, %v297_v31  ;;  %v9600_v7 = vld [vmem:[%s12180_s1 + $0xaf0] sm:$0xff]   ;;  %v9603_v10 = vld [vmem:[%s12180_s1 + $0xa38] sm:$0xff]   ;;  %v298_v12 = vld [vmem:[%s10185_s19 + $0xa0] sm:$0xff] }
 0x146   : > { %v8378_v17 = vpop.f32.mrb[11].mxu1  ;;  %8678 = vmatprep.subr.bf16.mxu1 %v9564_v21  ;;  %v7562_v14 = vcombine.high %v298_v12, %v298_v12  ;;  %v9607_v15 = vld [vmem:[%s12180_s1 + $0xab8] sm:$0xff]   ;;  %v9608_v16 = vld [vmem:[%s12180_s1 + $0xb40] sm:$0xff]  }
 0x147   : > { %v11063_v18 = vadd.f32 %v8376_v13, %v5800_v8  ;;  %8657 = vmatpush3.bf16.msra.mxu0 %v9563_v20  ;;  %v9601_v8 = vld [vmem:[%s12180_s1 + $0xab0] sm:$0xff]   ;;  %v7561_v13 = vcombine.low %v298_v12, %v298_v12  ;;  %v299_v17 = vld [vmem:[%s10185_s19 + $0xa8] sm:$0xff]  ;;  %v9611_v20 = vld [vmem:[%s12180_s1 + $0xb00] sm:$0xff]  }
 0x148   : > { %8658 = vmatprep.subr.bf16.mxu0 %v9566_v23  ;;  %v7564_v19 = vcombine.high %v299_v17, %v299_v17  ;;  %v9612_v21 = vld [vmem:[%s12180_s1 + $0xbc0] sm:$0xff]   ;;  %v9614_v23 = vld [vmem:[%s12180_s1 + $0xb48] sm:$0xff]   ;;  %v9622_v31 = vld [vmem:[%s12180_s1 + $0xb58] sm:$0xff]  }
 0x149   : > { %8679 = vmatpush3.bf16.msra.mxu1 %v9565_v22  ;;  %v9613_v22 = vld [vmem:[%s12180_s1 + $0xb80] sm:$0xff]   ;;  %v9653_v12 = vld [vmem:[%s12180_s1 + $0xc88] sm:$0xff]  }
 0x14a   : > { %8680 = vmatprep.subr.bf16.mxu1 %v9568_v25  ;;  %v9616_v25 = vld [vmem:[%s12180_s1 + $0xbc8] sm:$0xff]  }
 0x14b   : > { %8659 = vmatpush3.bf16.msra.mxu0 %v9567_v24  ;;  %v9615_v24 = vld [vmem:[%s12180_s1 + $0xb08] sm:$0xff]  }
 0x14c   : > { %8688 = vmatprep.subr.bf16.mxu0 %v9572_v30  ;;  %v9621_v30 = vld [vmem:[%s12180_s1 + $0xb90] sm:$0xff]  }
 0x14d   : > { %8681 = vmatpush3.bf16.msra.mxu1 %v9571_v29  ;;  %v9620_v29 = vld [vmem:[%s12180_s1 + $0xbd0] sm:$0xff]  }
 0x14e   : > { %6358 = vmatmul.mubr.bf16.vlgmr.msra.gmra.mrb[36].mxu0 %v7557_v27  ;;  %8710 = vmatprep.subr.bf16.mxu1 %v9576_v35  ;;  %v9618_v27 = vld [vmem:[%s12180_s1 + $0xb50] sm:$0xff]   ;;  %v9626_v35 = vld [vmem:[%s12180_s1 + $0xb60] sm:$0xff]  }
 0x14f   : > { %8689 = vmatpush3.bf16.msra.mxu0 %v9575_v34  ;;  %6437 = vmatprep.mubr.bf16.mxu0 %v7562_v14  ;;  %v9625_v34 = vld [vmem:[%s12180_s1 + $0xb98] sm:$0xff]   ;;  %v9655_v14 = vld [vmem:[%s12180_s1 + $0xc10] sm:$0xff]  }
 0x150   : > { %6398 = vmatmul.mubr.bf16.vlgmr.msra.gmra.mrb[36].mxu1 %v7559_v32  ;;  %8690 = vmatprep.subr.bf16.mxu0 %v9578_v37  ;;  %v9623_v32 = vld [vmem:[%s12180_s1 + $0xb18] sm:$0xff]   ;;  %v9627_v37 = vld [vmem:[%s12180_s1 + $0xb20] sm:$0xff]  }
 0x151   : > { %8711 = vmatpush3.bf16.msra.mxu1 %v9577_v36  ;;  %6477 = vmatprep.mubr.bf16.mxu1 %v7564_v19  ;;  %v9660_v19 = vld [vmem:[%s12180_s1 + $0xcd8] sm:$0xff]  }
 0x152   : > { %8712 = vmatprep.subr.bf16.mxu1 %v9580_v39  ;;  %v9628_v39 = vld [vmem:[%s12180_s1 + $0xbe0] sm:$0xff]  }
 0x153   : > { %8691 = vmatpush3.bf16.msra.mxu0 %v9579_v38 }
 0x154   : > { %8692 = vmatprep.subr.bf16.mxu0 %v9582_v41 }
 0x155   : > { %8713 = vmatpush3.bf16.msra.mxu1 %v9581_v40 }
 0x156   : > { %8714 = vmatprep.subr.bf16.mxu1 %v9584_v43 }
 0x157   : > { %8693 = vmatpush3.bf16.msra.mxu0 %v9583_v42  ;;  %v9629_v42 = vld [vmem:[%s12180_s1 + $0xba0] sm:$0xff]  }
 0x158   : > { %8694 = vmatprep.subr.bf16.mxu0 %v9586_v45  ;;  %v9630_v45 = vld [vmem:[%s12180_s1 + $0xb68] sm:$0xff]  }
 0x159   : > { %8715 = vmatpush3.bf16.msra.mxu1 %v9585_v44 }
 0x15a   : > { %8716 = vmatprep.subr.bf16.mxu1 %v9588_v47  ;;  %v9631_v47 = vld [vmem:[%s12180_s1 + $0xb28] sm:$0xff]  }
 0x15b   : > { %8695 = vmatpush3.bf16.msra.mxu0 %v9587_v46 }
 0x15c   : > { %8696 = vmatprep.subr.bf16.mxu0 %v9590_v49 }
 0x15d   : > { %8717 = vmatpush3.bf16.msra.mxu1 %v9589_v48 }
 0x15e   : > { %8718 = vmatprep.subr.bf16.mxu1 %v9592_v52  ;;  %v9633_v52 = vld [vmem:[%s12180_s1 + $0xba8] sm:$0xff]  }
 0x15f   : > { %8697 = vmatpush3.bf16.msra.mxu0 %v9591_v50  ;;  %v9632_v50 = vld [vmem:[%s12180_s1 + $0xbe8] sm:$0xff]  }
 0x160   : > { %8698 = vmatprep.subr.bf16.mxu0 %v9594_v57  ;;  %v9636_v57 = vld [vmem:[%s12180_s1 + $0xbf0] sm:$0xff]  }
 0x161   : > { %v8396_v51 = vpop.f32.mrb[12].mxu0  ;;  %8719 = vmatpush3.bf16.msra.mxu1 %v9593_v54 }
 0x162   : > { %v8397_v53 = vpop.f32.mrb[13].mxu0  ;;  %8720 = vmatprep.subr.bf16.mxu1 %v9596_v63 }
 0x163   : > { %v8398_v55 = vadd.f32 %v8397_v53, %v8396_v51  ;;  %v8399_v56 = vpop.f32.mrb[14].mxu0  ;;  %v8418_v58 = vpop.f32.mrb[12].mxu1  ;;  %8699 = vmatpush3.bf16.msra.mxu0 %v9595_v60  ;;  %v9639_v60 = vld [vmem:[%s12180_s1 + $0xb38] sm:$0xff]  }
 0x164   : > { %v8400_v61 = vpop.f32.mrb[15].mxu0  ;;  %v8419_v62 = vpop.f32.mrb[13].mxu1  ;;  %8700 = vmatprep.subr.bf16.mxu0 %v9598_v3  ;;  %v9635_v56 = vld [vmem:[%s12180_s1 + $0xb30] sm:$0xff]   ;;  %v301_v3 = vld [vmem:[%s10185_s19 + $0xb8] sm:$0xff] }
 0x165   : > { %v5880_v59 = vadd.f32 %v8398_v55, %v11063_v18  ;;  %v8420_v0 = vadd.f32 %v8419_v62, %v8418_v58  ;;  %v8421_v2 = vpop.f32.mrb[14].mxu1  ;;  %8721 = vmatpush3.bf16.msra.mxu1 %v9597_v1  ;;  %v7563_v18 = vcombine.low %v299_v17, %v299_v17  ;;  %v9634_v55 = vld [vmem:[%s12180_s1 + $0xb70] sm:$0xff]   ;;  %v9640_v61 = vld [vmem:[%s12180_s1 + $0xbf8] sm:$0xff]  }
 0x166   : > { %v8422_v4 = vpop.f32.mrb[15].mxu1  ;;  %8722 = vmatprep.subr.bf16.mxu1 %v9600_v7  ;;  %v9637_v58 = vld [vmem:[%s12180_s1 + $0xbb0] sm:$0xff]   ;;  %v9643_v1 = vld [vmem:[%s12180_s1 + $0xbb8] sm:$0xff]   ;;  %v9644_v2 = vld [vmem:[%s12180_s1 + $0xc40] sm:$0xff]  }
 0x167   : > { %v11167_v5 = vadd.f32 %v8420_v0, %v5880_v59  ;;  %8701 = vmatpush3.bf16.msra.mxu0 %v9599_v6  ;;  %v9638_v59 = vld [vmem:[%s12180_s1 + $0xb78] sm:$0xff]   ;;  %v300_v62 = vld [vmem:[%s10185_s19 + $0xb0] sm:$0xff]  ;;  %v7567_v4 = vcombine.low %v301_v3, %v301_v3  ;;  %v9647_v6 = vld [vmem:[%s12180_s1 + $0xc00] sm:$0xff]  }
 0x168   : > { %8702 = vmatprep.subr.bf16.mxu0 %v9602_v9  ;;  %v7565_v63 = vcombine.low %v300_v62, %v300_v62  ;;  %v7566_v0 = vcombine.high %v300_v62, %v300_v62  ;;  %v9648_v7 = vld [vmem:[%s12180_s1 + $0xcc0] sm:$0xff]   ;;  %v9650_v9 = vld [vmem:[%s12180_s1 + $0xc48] sm:$0xff]   ;;  %v9658_v17 = vld [vmem:[%s12180_s1 + $0xc58] sm:$0xff]  }
 0x169   : > { %8723 = vmatpush3.bf16.msra.mxu1 %v9601_v8  ;;  %v9649_v8 = vld [vmem:[%s12180_s1 + $0xc80] sm:$0xff]   ;;  %v9689_v62 = vld [vmem:[%s12180_s1 + $0xd88] sm:$0xff]  }
 0x16a   : > { %8724 = vmatprep.subr.bf16.mxu1 %v9604_v11  ;;  %v9652_v11 = vld [vmem:[%s12180_s1 + $0xcc8] sm:$0xff]  }
 0x16b   : > { %8703 = vmatpush3.bf16.msra.mxu0 %v9603_v10  ;;  %v9651_v10 = vld [vmem:[%s12180_s1 + $0xc08] sm:$0xff]  }
 0x16c   : > { %8732 = vmatprep.subr.bf16.mxu0 %v9608_v16  ;;  %v9657_v16 = vld [vmem:[%s12180_s1 + $0xc90] sm:$0xff]  }
 0x16d   : > { %8725 = vmatpush3.bf16.msra.mxu1 %v9607_v15  ;;  %v9656_v15 = vld [vmem:[%s12180_s1 + $0xcd0] sm:$0xff]  }
 0x16e   : > { %6438 = vmatmul.mubr.bf16.vlgmr.msra.gmra.mrb[40].mxu0 %v7561_v13  ;;  %8754 = vmatprep.subr.bf16.mxu1 %v9612_v21  ;;  %v9654_v13 = vld [vmem:[%s12180_s1 + $0xc50] sm:$0xff]   ;;  %v9662_v21 = vld [vmem:[%s12180_s1 + $0xc60] sm:$0xff]  }
 0x16f   : > { %8733 = vmatpush3.bf16.msra.mxu0 %v9611_v20  ;;  %6517 = vmatprep.mubr.bf16.mxu0 %v7566_v0  ;;  %v9661_v20 = vld [vmem:[%s12180_s1 + $0xc98] sm:$0xff]   ;;  %v9691_v0 = vld [vmem:[%s12180_s1 + $0xd10] sm:$0xff]  }
 0x170   : > { %6478 = vmatmul.mubr.bf16.vlgmr.msra.gmra.mrb[40].mxu1 %v7563_v18  ;;  %8734 = vmatprep.subr.bf16.mxu0 %v9614_v23  ;;  %v9659_v18 = vld [vmem:[%s12180_s1 + $0xc18] sm:$0xff]   ;;  %v9663_v23 = vld [vmem:[%s12180_s1 + $0xc20] sm:$0xff]  }
 0x171   : > { %8755 = vmatpush3.bf16.msra.mxu1 %v9613_v22 }
 0x172   : > { %8756 = vmatprep.subr.bf16.mxu1 %v9616_v25  ;;  %v9664_v25 = vld [vmem:[%s12180_s1 + $0xce0] sm:$0xff]  }
 0x173   : > { %8735 = vmatpush3.bf16.msra.mxu0 %v9615_v24 }
 0x174   : > { %8736 = vmatprep.subr.bf16.mxu0 %v9618_v27 }
 0x175   : > { %8757 = vmatpush3.bf16.msra.mxu1 %v9617_v26 }
 0x176   : > { %8758 = vmatprep.subr.bf16.mxu1 %v9620_v29 }
 0x177   : > { %8737 = vmatpush3.bf16.msra.mxu0 %v9619_v28  ;;  %v9665_v28 = vld [vmem:[%s12180_s1 + $0xca0] sm:$0xff]  }
 0x178   : > { %8738 = vmatprep.subr.bf16.mxu0 %v9622_v31  ;;  %v9666_v31 = vld [vmem:[%s12180_s1 + $0xc68] sm:$0xff]  }
 0x179   : > { %8759 = vmatpush3.bf16.msra.mxu1 %v9621_v30 }
 0x17a   : > { %8760 = vmatprep.subr.bf16.mxu1 %v9624_v33  ;;  %v9667_v33 = vld [vmem:[%s12180_s1 + $0xc28] sm:$0xff]  }
 0x17b   : > { %8739 = vmatpush3.bf16.msra.mxu0 %v9623_v32 }
 0x17c   : > { %8740 = vmatprep.subr.bf16.mxu0 %v9626_v35 }
 0x17d   : > { %8761 = vmatpush3.bf16.msra.mxu1 %v9625_v34 }
 0x17e   : > { %8762 = vmatprep.subr.bf16.mxu1 %v9628_v39 }
 0x17f   : > { %8741 = vmatpush3.bf16.msra.mxu0 %v9627_v37 }
 0x180   : > { %8742 = vmatprep.subr.bf16.mxu0 %v9630_v45  ;;  %v9674_v45 = vld [vmem:[%s12180_s1 + $0xc78] sm:$0xff]  }
 0x181   : > { %v8440_v36 = vpop.f32.mrb[16].mxu0  ;;  %8763 = vmatpush3.bf16.msra.mxu1 %v9629_v42  ;;  %v9671_v42 = vld [vmem:[%s12180_s1 + $0xc30] sm:$0xff]  }
 0x182   : > { %v8441_v38 = vpop.f32.mrb[17].mxu0  ;;  %8764 = vmatprep.subr.bf16.mxu1 %v9632_v50 }
 0x183   : > { %v8442_v40 = vadd.f32 %v8441_v38, %v8440_v36  ;;  %v8443_v41 = vpop.f32.mrb[18].mxu0  ;;  %v8462_v43 = vpop.f32.mrb[16].mxu1  ;;  %8743 = vmatpush3.bf16.msra.mxu0 %v9631_v47  ;;  %v9668_v36 = vld [vmem:[%s12180_s1 + $0xce8] sm:$0xff]   ;;  %v9676_v47 = vld [vmem:[%s12180_s1 + $0xcf8] sm:$0xff]  }
 0x184   : > { %v8444_v46 = vpop.f32.mrb[19].mxu0  ;;  %v8463_v48 = vpop.f32.mrb[17].mxu1  ;;  %8744 = vmatprep.subr.bf16.mxu0 %v9634_v55  ;;  %v9669_v38 = vld [vmem:[%s12180_s1 + $0xca8] sm:$0xff]   ;;  %v9670_v41 = vld [vmem:[%s12180_s1 + $0xc70] sm:$0xff]  }
 0x185   : > { %v5960_v44 = vadd.f32 %v8442_v40, %v11167_v5  ;;  %v8464_v49 = vadd.f32 %v8463_v48, %v8462_v43  ;;  %v8465_v51 = vpop.f32.mrb[18].mxu1  ;;  %8765 = vmatpush3.bf16.msra.mxu1 %v9633_v52  ;;  %v7568_v5 = vcombine.high %v301_v3, %v301_v3  ;;  %v9672_v43 = vld [vmem:[%s12180_s1 + $0xcf0] sm:$0xff]   ;;  %v9675_v46 = vld [vmem:[%s12180_s1 + $0xc38] sm:$0xff]   ;;  %v302_v48 = vld [vmem:[%s10185_s19 + $0xc0] sm:$0xff] }
 0x186   : > { %v8466_v53 = vpop.f32.mrb[19].mxu1  ;;  %8766 = vmatprep.subr.bf16.mxu1 %v9636_v57  ;;  %v7570_v50 = vcombine.high %v302_v48, %v302_v48  ;;  %v9679_v51 = vld [vmem:[%s12180_s1 + $0xcb8] sm:$0xff]   ;;  %v9680_v52 = vld [vmem:[%s12180_s1 + $0xd40] sm:$0xff]  }
 0x187   : > { %v11265_v54 = vadd.f32 %v8464_v49, %v5960_v44  ;;  %8745 = vmatpush3.bf16.msra.mxu0 %v9635_v56  ;;  %6557 = vmatprep.mubr.bf16.mxu1 %v7568_v5  ;;  %v9673_v44 = vld [vmem:[%s12180_s1 + $0xcb0] sm:$0xff]   ;;  %v7569_v49 = vcombine.low %v302_v48, %v302_v48  ;;  %v303_v53 = vld [vmem:[%s10185_s19 + $0xc8] sm:$0xff]  ;;  %v9683_v56 = vld [vmem:[%s12180_s1 + $0xd00] sm:$0xff]  }
 0x188   : > { %8746 = vmatprep.subr.bf16.mxu0 %v9638_v59  ;;  %v7572_v55 = vcombine.high %v303_v53, %v303_v53  ;;  %v9684_v57 = vld [vmem:[%s12180_s1 + $0xdc0] sm:$0xff]   ;;  %v9686_v59 = vld [vmem:[%s12180_s1 + $0xd48] sm:$0xff]   ;;  %v9694_v3 = vld [vmem:[%s12180_s1 + $0xd58] sm:$0xff]  }
 0x189   : > { %8767 = vmatpush3.bf16.msra.mxu1 %v9637_v58  ;;  %v9685_v58 = vld [vmem:[%s12180_s1 + $0xd80] sm:$0xff]   ;;  %v9696_v5 = vld [vmem:[%s12180_s1 + $0xdd8] sm:$0xff]   ;;  %v9725_v48 = vld [vmem:[%s12180_s1 + $0xe88] sm:$0xff]  }
 0x18a   : > { %8768 = vmatprep.subr.bf16.mxu1 %v9640_v61  ;;  %v9688_v61 = vld [vmem:[%s12180_s1 + $0xdc8] sm:$0xff]  }
 0x18b   : > { %8747 = vmatpush3.bf16.msra.mxu0 %v9639_v60  ;;  %v9687_v60 = vld [vmem:[%s12180_s1 + $0xd08] sm:$0xff]  }
 0x18c   : > { %8776 = vmatprep.subr.bf16.mxu0 %v9644_v2  ;;  %v9693_v2 = vld [vmem:[%s12180_s1 + $0xd90] sm:$0xff]  }
 0x18d   : > { %8769 = vmatpush3.bf16.msra.mxu1 %v9643_v1  ;;  %v9692_v1 = vld [vmem:[%s12180_s1 + $0xdd0] sm:$0xff]  }
 0x18e   : > { %6518 = vmatmul.mubr.bf16.vlgmr.msra.gmra.mrb[44].mxu0 %v7565_v63  ;;  %8798 = vmatprep.subr.bf16.mxu1 %v9648_v7  ;;  %v9690_v63 = vld [vmem:[%s12180_s1 + $0xd50] sm:$0xff]   ;;  %v9698_v7 = vld [vmem:[%s12180_s1 + $0xd60] sm:$0xff]  }
 0x18f   : > { %8777 = vmatpush3.bf16.msra.mxu0 %v9647_v6  ;;  %6597 = vmatprep.mubr.bf16.mxu0 %v7570_v50  ;;  %v9697_v6 = vld [vmem:[%s12180_s1 + $0xd98] sm:$0xff]   ;;  %v9727_v50 = vld [vmem:[%s12180_s1 + $0xe10] sm:$0xff]  }
 0x190   : > { %6558 = vmatmul.mubr.bf16.vlgmr.msra.gmra.mrb[44].mxu1 %v7567_v4  ;;  %8778 = vmatprep.subr.bf16.mxu0 %v9650_v9  ;;  %v9695_v4 = vld [vmem:[%s12180_s1 + $0xd18] sm:$0xff]  }
 0x191   : > { %8799 = vmatpush3.bf16.msra.mxu1 %v9649_v8  ;;  %6637 = vmatprep.mubr.bf16.mxu1 %v7572_v55  ;;  %v9699_v8 = vld [vmem:[%s12180_s1 + $0xd20] sm:$0xff]   ;;  %v9732_v55 = vld [vmem:[%s12180_s1 + $0xed8] sm:$0xff]  }
 0x192   : > { %8800 = vmatprep.subr.bf16.mxu1 %v9652_v11 }
 0x193   : > { %8779 = vmatpush3.bf16.msra.mxu0 %v9651_v10  ;;  %v9700_v10 = vld [vmem:[%s12180_s1 + $0xde0] sm:$0xff]  }
 0x194   : > { %8780 = vmatprep.subr.bf16.mxu0 %v9654_v13 }
 0x195   : > { %8801 = vmatpush3.bf16.msra.mxu1 %v9653_v12  ;;  %v9701_v12 = vld [vmem:[%s12180_s1 + $0xda0] sm:$0xff]  }
 0x196   : > { %8802 = vmatprep.subr.bf16.mxu1 %v9656_v15  ;;  %v9702_v15 = vld [vmem:[%s12180_s1 + $0xd68] sm:$0xff]  }
 0x197   : > { %8781 = vmatpush3.bf16.msra.mxu0 %v9655_v14 }
 0x198   : > { %8782 = vmatprep.subr.bf16.mxu0 %v9658_v17 }
 0x199   : > { %8803 = vmatpush3.bf16.msra.mxu1 %v9657_v16 }
 0x19a   : > { %8804 = vmatprep.subr.bf16.mxu1 %v9660_v19 }
 0x19b   : > { %8783 = vmatpush3.bf16.msra.mxu0 %v9659_v18  ;;  %v9703_v18 = vld [vmem:[%s12180_s1 + $0xd28] sm:$0xff]  }
 0x19c   : > { %8784 = vmatprep.subr.bf16.mxu0 %v9662_v21  ;;  %v9704_v21 = vld [vmem:[%s12180_s1 + $0xde8] sm:$0xff]  }
 0x19d   : > { %8805 = vmatpush3.bf16.msra.mxu1 %v9661_v20 }
 0x19e   : > { %8806 = vmatprep.subr.bf16.mxu1 %v9664_v25  ;;  %v9706_v25 = vld [vmem:[%s12180_s1 + $0xd70] sm:$0xff]  }
 0x19f   : > { %8785 = vmatpush3.bf16.msra.mxu0 %v9663_v23  ;;  %v9705_v23 = vld [vmem:[%s12180_s1 + $0xda8] sm:$0xff]  }
 0x1a0   : > { %8786 = vmatprep.subr.bf16.mxu0 %v9666_v31  ;;  %v9710_v31 = vld [vmem:[%s12180_s1 + $0xd78] sm:$0xff]  }
 0x1a1   : > { %v8484_v22 = vpop.f32.mrb[20].mxu0  ;;  %8807 = vmatpush3.bf16.msra.mxu1 %v9665_v28  ;;  %v9707_v28 = vld [vmem:[%s12180_s1 + $0xd30] sm:$0xff]  }
 0x1a2   : > { %v8485_v24 = vpop.f32.mrb[21].mxu0  ;;  %8808 = vmatprep.subr.bf16.mxu1 %v9668_v36 }
 0x1a3   : > { %v8486_v26 = vadd.f32 %v8485_v24, %v8484_v22  ;;  %v8487_v27 = vpop.f32.mrb[22].mxu0  ;;  %v8506_v29 = vpop.f32.mrb[20].mxu1  ;;  %8787 = vmatpush3.bf16.msra.mxu0 %v9667_v33  ;;  %v9712_v33 = vld [vmem:[%s12180_s1 + $0xdf8] sm:$0xff]  }
 0x1a4   : > { %v8488_v32 = vpop.f32.mrb[23].mxu0  ;;  %v8507_v34 = vpop.f32.mrb[21].mxu1  ;;  %8788 = vmatprep.subr.bf16.mxu0 %v9670_v41 }
 0x1a5   : > { %v6040_v30 = vadd.f32 %v8486_v26, %v11265_v54  ;;  %v8508_v35 = vadd.f32 %v8507_v34, %v8506_v29  ;;  %v8509_v37 = vpop.f32.mrb[22].mxu1  ;;  %8809 = vmatpush3.bf16.msra.mxu1 %v9669_v38  ;;  %v7571_v54 = vcombine.low %v303_v53, %v303_v53  ;;  %v9708_v29 = vld [vmem:[%s12180_s1 + $0xdf0] sm:$0xff]   ;;  %v9711_v32 = vld [vmem:[%s12180_s1 + $0xd38] sm:$0xff]   ;;  %v9716_v38 = vld [vmem:[%s12180_s1 + $0xe40] sm:$0xff]  }
 0x1a6   : > { %v8510_v39 = vpop.f32.mrb[23].mxu1  ;;  %8810 = vmatprep.subr.bf16.mxu1 %v9672_v43  ;;  %v304_v34 = vld [vmem:[%s10185_s19 + $0xd0] sm:$0xff]  ;;  %v9715_v37 = vld [vmem:[%s12180_s1 + $0xdb8] sm:$0xff]   ;;  %v9720_v43 = vld [vmem:[%s12180_s1 + $0xec0] sm:$0xff]  }
 0x1a7   : > { %v11366_v40 = vadd.f32 %v8508_v35, %v6040_v30  ;;  %8789 = vmatpush3.bf16.msra.mxu0 %v9671_v42  ;;  %v9709_v30 = vld [vmem:[%s12180_s1 + $0xdb0] sm:$0xff]   ;;  %v7573_v35 = vcombine.low %v304_v34, %v304_v34  ;;  %v7574_v36 = vcombine.high %v304_v34, %v304_v34  ;;  %v305_v39 = vld [vmem:[%s10185_s19 + $0xd8] sm:$0xff]  ;;  %v9719_v42 = vld [vmem:[%s12180_s1 + $0xe00] sm:$0xff]  }
 0x1a8   : > { %8790 = vmatprep.subr.bf16.mxu0 %v9674_v45  ;;  %v7576_v41 = vcombine.high %v305_v39, %v305_v39  ;;  %v9722_v45 = vld [vmem:[%s12180_s1 + $0xe48] sm:$0xff]   ;;  %v9730_v53 = vld [vmem:[%s12180_s1 + $0xe58] sm:$0xff]  }
 0x1a9   : > { %8811 = vmatpush3.bf16.msra.mxu1 %v9673_v44  ;;  %v9721_v44 = vld [vmem:[%s12180_s1 + $0xe80] sm:$0xff]   ;;  %v9761_v34 = vld [vmem:[%s12180_s1 + $0xf88] sm:$0xff]  }
 0x1aa   : > { %8812 = vmatprep.subr.bf16.mxu1 %v9676_v47  ;;  %v9724_v47 = vld [vmem:[%s12180_s1 + $0xec8] sm:$0xff]  }
 0x1ab   : > { %8791 = vmatpush3.bf16.msra.mxu0 %v9675_v46  ;;  %v9723_v46 = vld [vmem:[%s12180_s1 + $0xe08] sm:$0xff]  }
 0x1ac   : > { %8820 = vmatprep.subr.bf16.mxu0 %v9680_v52  ;;  %v9729_v52 = vld [vmem:[%s12180_s1 + $0xe90] sm:$0xff]  }
 0x1ad   : > { %8813 = vmatpush3.bf16.msra.mxu1 %v9679_v51  ;;  %v9728_v51 = vld [vmem:[%s12180_s1 + $0xed0] sm:$0xff]  }
 0x1ae   : > { %6598 = vmatmul.mubr.bf16.vlgmr.msra.gmra.mrb[48].mxu0 %v7569_v49  ;;  %8842 = vmatprep.subr.bf16.mxu1 %v9684_v57  ;;  %v9726_v49 = vld [vmem:[%s12180_s1 + $0xe50] sm:$0xff]   ;;  %v9734_v57 = vld [vmem:[%s12180_s1 + $0xe60] sm:$0xff]  }
 0x1af   : > { %8821 = vmatpush3.bf16.msra.mxu0 %v9683_v56  ;;  %6677 = vmatprep.mubr.bf16.mxu0 %v7574_v36  ;;  %v9733_v56 = vld [vmem:[%s12180_s1 + $0xe98] sm:$0xff]   ;;  %v9763_v36 = vld [vmem:[%s12180_s1 + $0xf10] sm:$0xff]  }
 0x1b0   : > { %6638 = vmatmul.mubr.bf16.vlgmr.msra.gmra.mrb[48].mxu1 %v7571_v54  ;;  %8822 = vmatprep.subr.bf16.mxu0 %v9686_v59  ;;  %v9731_v54 = vld [vmem:[%s12180_s1 + $0xe18] sm:$0xff]  }
 0x1b1   : > { %8843 = vmatpush3.bf16.msra.mxu1 %v9685_v58  ;;  %6717 = vmatprep.mubr.bf16.mxu1 %v7576_v41  ;;  %v9735_v58 = vld [vmem:[%s12180_s1 + $0xe20] sm:$0xff]   ;;  %v9768_v41 = vld [vmem:[%s12180_s1 + $0xfd8] sm:$0xff]  }
 0x1b2   : > { %8844 = vmatprep.subr.bf16.mxu1 %v9688_v61 }
 0x1b3   : > { %8823 = vmatpush3.bf16.msra.mxu0 %v9687_v60  ;;  %v9736_v60 = vld [vmem:[%s12180_s1 + $0xee0] sm:$0xff]  }
 0x1b4   : > { %8824 = vmatprep.subr.bf16.mxu0 %v9690_v63 }
 0x1b5   : > { %8845 = vmatpush3.bf16.msra.mxu1 %v9689_v62  ;;  %v9737_v62 = vld [vmem:[%s12180_s1 + $0xea0] sm:$0xff]  }
 0x1b6   : > { %8846 = vmatprep.subr.bf16.mxu1 %v9692_v1  ;;  %v9738_v1 = vld [vmem:[%s12180_s1 + $0xe68] sm:$0xff]  }
 0x1b7   : > { %8825 = vmatpush3.bf16.msra.mxu0 %v9691_v0 }
 0x1b8   : > { %8826 = vmatprep.subr.bf16.mxu0 %v9694_v3 }
 0x1b9   : > { %8847 = vmatpush3.bf16.msra.mxu1 %v9693_v2 }
 0x1ba   : > { %8848 = vmatprep.subr.bf16.mxu1 %v9696_v5 }
 0x1bb   : > { %8827 = vmatpush3.bf16.msra.mxu0 %v9695_v4  ;;  %v9739_v4 = vld [vmem:[%s12180_s1 + $0xe28] sm:$0xff]  }
 0x1bc   : > { %8828 = vmatprep.subr.bf16.mxu0 %v9698_v7  ;;  %v9740_v7 = vld [vmem:[%s12180_s1 + $0xee8] sm:$0xff]  }
 0x1bd   : > { %8849 = vmatpush3.bf16.msra.mxu1 %v9697_v6 }
 0x1be   : > { %8850 = vmatprep.subr.bf16.mxu1 %v9700_v10 }
 0x1bf   : > { %8829 = vmatpush3.bf16.msra.mxu0 %v9699_v8 }
 0x1c0   : > { %8830 = vmatprep.subr.bf16.mxu0 %v9702_v15  ;;  %v9744_v15 = vld [vmem:[%s12180_s1 + $0xef0] sm:$0xff]  }
 0x1c1   : > { %v8528_v9 = vpop.f32.mrb[24].mxu0  ;;  %8851 = vmatpush3.bf16.msra.mxu1 %v9701_v12  ;;  %v9742_v12 = vld [vmem:[%s12180_s1 + $0xe70] sm:$0xff]  }
 0x1c2   : > { %v8529_v11 = vpop.f32.mrb[25].mxu0  ;;  %8852 = vmatprep.subr.bf16.mxu1 %v9704_v21 }
 0x1c3   : > { %v8530_v13 = vadd.f32 %v8529_v11, %v8528_v9  ;;  %v8531_v14 = vpop.f32.mrb[26].mxu0  ;;  %v8550_v16 = vpop.f32.mrb[24].mxu1  ;;  %8831 = vmatpush3.bf16.msra.mxu0 %v9703_v18  ;;  %v9741_v9 = vld [vmem:[%s12180_s1 + $0xea8] sm:$0xff]   ;;  %v9747_v18 = vld [vmem:[%s12180_s1 + $0xe38] sm:$0xff]  }
 0x1c4   : > { %v8532_v19 = vpop.f32.mrb[27].mxu0  ;;  %v8551_v20 = vpop.f32.mrb[25].mxu1  ;;  %8832 = vmatprep.subr.bf16.mxu0 %v9706_v25  ;;  %v9743_v14 = vld [vmem:[%s12180_s1 + $0xe30] sm:$0xff]   ;;  %v307_v25 = vld [vmem:[%s10185_s19 + $0xe8] sm:$0xff] }
 0x1c5   : > { %v6120_v17 = vadd.f32 %v8530_v13, %v11366_v40  ;;  %v8552_v22 = vadd.f32 %v8551_v20, %v8550_v16  ;;  %v8553_v24 = vpop.f32.mrb[26].mxu1  ;;  %8853 = vmatpush3.bf16.msra.mxu1 %v9705_v23  ;;  %v7575_v40 = vcombine.low %v305_v39, %v305_v39  ;;  %v9745_v16 = vld [vmem:[%s12180_s1 + $0xeb0] sm:$0xff]   ;;  %v9748_v19 = vld [vmem:[%s12180_s1 + $0xef8] sm:$0xff]   ;;  %v306_v20 = vld [vmem:[%s10185_s19 + $0xe0] sm:$0xff] }
 0x1c6   : > { %v8554_v26 = vpop.f32.mrb[27].mxu1  ;;  %8854 = vmatprep.subr.bf16.mxu1 %v9708_v29  ;;  %v7577_v21 = vcombine.low %v306_v20, %v306_v20  ;;  %v9751_v23 = vld [vmem:[%s12180_s1 + $0xeb8] sm:$0xff]   ;;  %v9752_v24 = vld [vmem:[%s12180_s1 + $0xf40] sm:$0xff]  }
 0x1c7   : > { %v11470_v27 = vadd.f32 %v8552_v22, %v6120_v17  ;;  %8833 = vmatpush3.bf16.msra.mxu0 %v9707_v28  ;;  %v9746_v17 = vld [vmem:[%s12180_s1 + $0xe78] sm:$0xff]   ;;  %v7578_v22 = vcombine.high %v306_v20, %v306_v20  ;;  %v7579_v26 = vcombine.low %v307_v25, %v307_v25  ;;  %v9755_v28 = vld [vmem:[%s12180_s1 + $0xf00] sm:$0xff]   ;;  %v9797_v20 = vld [vmem:[%s12180_s1 + $0x1088] sm:$0xff]  }
 0x1c8   : > { %8834 = vmatprep.subr.bf16.mxu0 %v9710_v31  ;;  %v9756_v29 = vld [vmem:[%s12180_s1 + $0xfc0] sm:$0xff]   ;;  %v9758_v31 = vld [vmem:[%s12180_s1 + $0xf48] sm:$0xff]   ;;  %v9766_v39 = vld [vmem:[%s12180_s1 + $0xf58] sm:$0xff]  }
 0x1c9   : > { %8855 = vmatpush3.bf16.msra.mxu1 %v9709_v30  ;;  %v9757_v30 = vld [vmem:[%s12180_s1 + $0xf80] sm:$0xff]  }
 0x1ca   : > { %8856 = vmatprep.subr.bf16.mxu1 %v9712_v33  ;;  %v9760_v33 = vld [vmem:[%s12180_s1 + $0xfc8] sm:$0xff]  }
 0x1cb   : > { %8835 = vmatpush3.bf16.msra.mxu0 %v9711_v32  ;;  %v9759_v32 = vld [vmem:[%s12180_s1 + $0xf08] sm:$0xff]  }
 0x1cc   : > { %8864 = vmatprep.subr.bf16.mxu0 %v9716_v38  ;;  %v9765_v38 = vld [vmem:[%s12180_s1 + $0xf90] sm:$0xff]  }
 0x1cd   : > { %8857 = vmatpush3.bf16.msra.mxu1 %v9715_v37  ;;  %v9764_v37 = vld [vmem:[%s12180_s1 + $0xfd0] sm:$0xff]  }
 0x1ce   : > { %6678 = vmatmul.mubr.bf16.vlgmr.msra.gmra.mrb[52].mxu0 %v7573_v35  ;;  %8886 = vmatprep.subr.bf16.mxu1 %v9720_v43  ;;  %v9762_v35 = vld [vmem:[%s12180_s1 + $0xf50] sm:$0xff]   ;;  %v9770_v43 = vld [vmem:[%s12180_s1 + $0xf60] sm:$0xff]  }
 0x1cf   : > { %8865 = vmatpush3.bf16.msra.mxu0 %v9719_v42  ;;  %6757 = vmatprep.mubr.bf16.mxu0 %v7578_v22  ;;  %v9769_v42 = vld [vmem:[%s12180_s1 + $0xf98] sm:$0xff]   ;;  %v9799_v22 = vld [vmem:[%s12180_s1 + $0x1010] sm:$0xff]  }
 0x1d0   : > { %6718 = vmatmul.mubr.bf16.vlgmr.msra.gmra.mrb[52].mxu1 %v7575_v40  ;;  %8866 = vmatprep.subr.bf16.mxu0 %v9722_v45  ;;  %v9767_v40 = vld [vmem:[%s12180_s1 + $0xf18] sm:$0xff]   ;;  %v9771_v45 = vld [vmem:[%s12180_s1 + $0xf20] sm:$0xff]  }
 0x1d1   : > { %8887 = vmatpush3.bf16.msra.mxu1 %v9721_v44 }
 0x1d2   : > { %8888 = vmatprep.subr.bf16.mxu1 %v9724_v47  ;;  %v9772_v47 = vld [vmem:[%s12180_s1 + $0xfe0] sm:$0xff]  }
 0x1d3   : > { %8867 = vmatpush3.bf16.msra.mxu0 %v9723_v46 }
 0x1d4   : > { %8868 = vmatprep.subr.bf16.mxu0 %v9726_v49 }
 0x1d5   : > { %8889 = vmatpush3.bf16.msra.mxu1 %v9725_v48 }
 0x1d6   : > { %8890 = vmatprep.subr.bf16.mxu1 %v9728_v51 }
 0x1d7   : > { %8869 = vmatpush3.bf16.msra.mxu0 %v9727_v50  ;;  %v9773_v50 = vld [vmem:[%s12180_s1 + $0xfa0] sm:$0xff]  }
 0x1d8   : > { %8870 = vmatprep.subr.bf16.mxu0 %v9730_v53  ;;  %v9774_v53 = vld [vmem:[%s12180_s1 + $0xf68] sm:$0xff]  }
 0x1d9   : > { %8891 = vmatpush3.bf16.msra.mxu1 %v9729_v52 }
 0x1da   : > { %8892 = vmatprep.subr.bf16.mxu1 %v9732_v55  ;;  %v9775_v55 = vld [vmem:[%s12180_s1 + $0xf28] sm:$0xff]  }
 0x1db   : > { %8871 = vmatpush3.bf16.msra.mxu0 %v9731_v54 }
 0x1dc   : > { %8872 = vmatprep.subr.bf16.mxu0 %v9734_v57 }
 0x1dd   : > { %8893 = vmatpush3.bf16.msra.mxu1 %v9733_v56 }
 0x1de   : > { %8894 = vmatprep.subr.bf16.mxu1 %v9736_v60  ;;  %v9777_v60 = vld [vmem:[%s12180_s1 + $0xfa8] sm:$0xff]  }
 0x1df   : > { %8873 = vmatpush3.bf16.msra.mxu0 %v9735_v58  ;;  %v9776_v58 = vld [vmem:[%s12180_s1 + $0xfe8] sm:$0xff]  }
 0x1e0   : > { %8874 = vmatprep.subr.bf16.mxu0 %v9738_v1  ;;  %v9780_v1 = vld [vmem:[%s12180_s1 + $0xff0] sm:$0xff]  }
 0x1e1   : > { %v8572_v59 = vpop.f32.mrb[28].mxu0  ;;  %8895 = vmatpush3.bf16.msra.mxu1 %v9737_v62 }
 0x1e2   : > { %v8573_v61 = vpop.f32.mrb[29].mxu0  ;;  %8896 = vmatprep.subr.bf16.mxu1 %v9740_v7 }
 0x1e3   : > { %v8574_v63 = vadd.f32 %v8573_v61, %v8572_v59  ;;  %v8575_v0 = vpop.f32.mrb[30].mxu0  ;;  %v8594_v2 = vpop.f32.mrb[28].mxu1  ;;  %8875 = vmatpush3.bf16.msra.mxu0 %v9739_v4  ;;  %v9783_v4 = vld [vmem:[%s12180_s1 + $0xf38] sm:$0xff]  }
 0x1e4   : > { %v8576_v5 = vpop.f32.mrb[31].mxu0  ;;  %v8595_v6 = vpop.f32.mrb[29].mxu1  ;;  %8876 = vmatprep.subr.bf16.mxu0 %v9742_v12  ;;  %v9779_v0 = vld [vmem:[%s12180_s1 + $0xf30] sm:$0xff]  }
 0x1e5   : > { %v6200_v3 = vadd.f32 %v8574_v63, %v11470_v27  ;;  %v8596_v8 = vadd.f32 %v8595_v6, %v8594_v2  ;;  %v8597_v10 = vpop.f32.mrb[30].mxu1  ;;  %8897 = vmatpush3.bf16.msra.mxu1 %v9741_v9  ;;  %v7580_v27 = vcombine.high %v307_v25, %v307_v25  ;;  %v9778_v63 = vld [vmem:[%s12180_s1 + $0xf70] sm:$0xff]   ;;  %v9784_v5 = vld [vmem:[%s12180_s1 + $0xff8] sm:$0xff]  }
 0x1e6   : > { %v8598_v13 = vpop.f32.mrb[31].mxu1  ;;  %8898 = vmatprep.subr.bf16.mxu1 %v9744_v15  ;;  %v9781_v2 = vld [vmem:[%s12180_s1 + $0xfb0] sm:$0xff]   ;;  %v9787_v9 = vld [vmem:[%s12180_s1 + $0xfb8] sm:$0xff]   ;;  %v9788_v10 = vld [vmem:[%s12180_s1 + $0x1040] sm:$0xff]  }
 0x1e7   : > { %v11568_v11 = vadd.f32 %v8596_v8, %v6200_v3  ;;  %8877 = vmatpush3.bf16.msra.mxu0 %v9743_v14  ;;  %6797 = vmatprep.mubr.bf16.mxu1 %v7580_v27  ;;  %v9782_v3 = vld [vmem:[%s12180_s1 + $0xf78] sm:$0xff]   ;;  %v308_v6 = vld [vmem:[%s10185_s19 + $0xf0] sm:$0xff]  ;;  %v9791_v14 = vld [vmem:[%s12180_s1 + $0x1000] sm:$0xff]  }
 0x1e8   : > { %8878 = vmatprep.subr.bf16.mxu0 %v9746_v17  ;;  %v7581_v7 = vcombine.low %v308_v6, %v308_v6  ;;  %v7582_v8 = vcombine.high %v308_v6, %v308_v6  ;;  %v9792_v15 = vld [vmem:[%s12180_s1 + $0x10c0] sm:$0xff]   ;;  %v9794_v17 = vld [vmem:[%s12180_s1 + $0x1048] sm:$0xff]   ;;  %v9802_v25 = vld [vmem:[%s12180_s1 + $0x1058] sm:$0xff]  }
 0x1e9   : > { %8899 = vmatpush3.bf16.msra.mxu1 %v9745_v16  ;;  %v9793_v16 = vld [vmem:[%s12180_s1 + $0x1080] sm:$0xff]   ;;  %v9804_v27 = vld [vmem:[%s12180_s1 + $0x10d8] sm:$0xff]   ;;  %v9833_v6 = vld [vmem:[%s12180_s1 + $0x1188] sm:$0xff]  }
 0x1ea   : > { %8900 = vmatprep.subr.bf16.mxu1 %v9748_v19  ;;  %v9796_v19 = vld [vmem:[%s12180_s1 + $0x10c8] sm:$0xff]  }
 0x1eb   : > { %8879 = vmatpush3.bf16.msra.mxu0 %v9747_v18  ;;  %v9795_v18 = vld [vmem:[%s12180_s1 + $0x1008] sm:$0xff]  }
 0x1ec   : > { %8908 = vmatprep.subr.bf16.mxu0 %v9752_v24  ;;  %v9801_v24 = vld [vmem:[%s12180_s1 + $0x1090] sm:$0xff]  }
 0x1ed   : > { %8901 = vmatpush3.bf16.msra.mxu1 %v9751_v23  ;;  %v9800_v23 = vld [vmem:[%s12180_s1 + $0x10d0] sm:$0xff]  }
 0x1ee   : > { %6758 = vmatmul.mubr.bf16.vlgmr.msra.gmra.mrb[56].mxu0 %v7577_v21  ;;  %8930 = vmatprep.subr.bf16.mxu1 %v9756_v29  ;;  %v9798_v21 = vld [vmem:[%s12180_s1 + $0x1050] sm:$0xff]   ;;  %v9806_v29 = vld [vmem:[%s12180_s1 + $0x1060] sm:$0xff]  }
 0x1ef   : > { %8909 = vmatpush3.bf16.msra.mxu0 %v9755_v28  ;;  %6837 = vmatprep.mubr.bf16.mxu0 %v7582_v8  ;;  %v9805_v28 = vld [vmem:[%s12180_s1 + $0x1098] sm:$0xff]   ;;  %v9835_v8 = vld [vmem:[%s12180_s1 + $0x1110] sm:$0xff]  }
 0x1f0   : > { %6798 = vmatmul.mubr.bf16.vlgmr.msra.gmra.mrb[56].mxu1 %v7579_v26  ;;  %8910 = vmatprep.subr.bf16.mxu0 %v9758_v31  ;;  %v9803_v26 = vld [vmem:[%s12180_s1 + $0x1018] sm:$0xff]  }
 0x1f1   : > { %8931 = vmatpush3.bf16.msra.mxu1 %v9757_v30  ;;  %v9807_v30 = vld [vmem:[%s12180_s1 + $0x1020] sm:$0xff]  }
 0x1f2   : > { %8932 = vmatprep.subr.bf16.mxu1 %v9760_v33 }
 0x1f3   : > { %8911 = vmatpush3.bf16.msra.mxu0 %v9759_v32  ;;  %v9808_v32 = vld [vmem:[%s12180_s1 + $0x10e0] sm:$0xff]  }
 0x1f4   : > { %8912 = vmatprep.subr.bf16.mxu0 %v9762_v35 }
 0x1f5   : > { %8933 = vmatpush3.bf16.msra.mxu1 %v9761_v34  ;;  %v9809_v34 = vld [vmem:[%s12180_s1 + $0x10a0] sm:$0xff]  }
 0x1f6   : > { %8934 = vmatprep.subr.bf16.mxu1 %v9764_v37  ;;  %v9810_v37 = vld [vmem:[%s12180_s1 + $0x1068] sm:$0xff]  }
 0x1f7   : > { %8913 = vmatpush3.bf16.msra.mxu0 %v9763_v36 }
 0x1f8   : > { %8914 = vmatprep.subr.bf16.mxu0 %v9766_v39 }
 0x1f9   : > { %8935 = vmatpush3.bf16.msra.mxu1 %v9765_v38 }
 0x1fa   : > { %8936 = vmatprep.subr.bf16.mxu1 %v9768_v41 }
 0x1fb   : > { %8915 = vmatpush3.bf16.msra.mxu0 %v9767_v40  ;;  %v9811_v40 = vld [vmem:[%s12180_s1 + $0x1028] sm:$0xff]  }
 0x1fc   : > { %8916 = vmatprep.subr.bf16.mxu0 %v9770_v43  ;;  %v9812_v43 = vld [vmem:[%s12180_s1 + $0x10e8] sm:$0xff]  }
 0x1fd   : > { %8937 = vmatpush3.bf16.msra.mxu1 %v9769_v42 }
 0x1fe   : > { %8938 = vmatprep.subr.bf16.mxu1 %v9772_v47  ;;  %v9814_v47 = vld [vmem:[%s12180_s1 + $0x1070] sm:$0xff]  }
 0x1ff   : > { %8917 = vmatpush3.bf16.msra.mxu0 %v9771_v45  ;;  %v9813_v45 = vld [vmem:[%s12180_s1 + $0x10a8] sm:$0xff]  }
 0x200   : > { %8918 = vmatprep.subr.bf16.mxu0 %v9774_v53  ;;  %v9818_v53 = vld [vmem:[%s12180_s1 + $0x1078] sm:$0xff]  }
 0x201   : > { %v8616_v44 = vpop.f32.mrb[32].mxu0  ;;  %8939 = vmatpush3.bf16.msra.mxu1 %v9773_v50  ;;  %v9815_v50 = vld [vmem:[%s12180_s1 + $0x1030] sm:$0xff]  }
 0x202   : > { %v8617_v46 = vpop.f32.mrb[33].mxu0  ;;  %8940 = vmatprep.subr.bf16.mxu1 %v9776_v58 }
 0x203   : > { %v8618_v48 = vadd.f32 %v8617_v46, %v8616_v44  ;;  %v8619_v49 = vpop.f32.mrb[34].mxu0  ;;  %v8638_v51 = vpop.f32.mrb[32].mxu1  ;;  %8919 = vmatpush3.bf16.msra.mxu0 %v9775_v55  ;;  %v9820_v55 = vld [vmem:[%s12180_s1 + $0x10f8] sm:$0xff]  }
 0x204   : > { %v8620_v54 = vpop.f32.mrb[35].mxu0  ;;  %v8639_v56 = vpop.f32.mrb[33].mxu1  ;;  %8920 = vmatprep.subr.bf16.mxu0 %v9778_v63 }
 0x205   : > { %v6280_v52 = vadd.f32 %v8618_v48, %v11568_v11  ;;  %v8640_v57 = vadd.f32 %v8639_v56, %v8638_v51  ;;  %v8641_v59 = vpop.f32.mrb[34].mxu1  ;;  %8941 = vmatpush3.bf16.msra.mxu1 %v9777_v60  ;;  %v309_v11 = vld [vmem:[%s10185_s19 + $0xf8] sm:$0xff]  ;;  %v9816_v51 = vld [vmem:[%s12180_s1 + $0x10f0] sm:$0xff]   ;;  %v310_v56 = vld [vmem:[%s10185_s19 + $0x100] sm:$0xff] }
 0x206   : > { %v8642_v61 = vpop.f32.mrb[35].mxu1  ;;  %8942 = vmatprep.subr.bf16.mxu1 %v9780_v1  ;;  %v7583_v12 = vcombine.low %v309_v11, %v309_v11  ;;  %v7584_v13 = vcombine.high %v309_v11, %v309_v11  ;;  %v9819_v54 = vld [vmem:[%s12180_s1 + $0x1038] sm:$0xff]   ;;  %v7586_v58 = vcombine.high %v310_v56, %v310_v56  ;;  %v9824_v60 = vld [vmem:[%s12180_s1 + $0x1140] sm:$0xff]  }
 0x207   : > { %v11669_v62 = vadd.f32 %v8640_v57, %v6280_v52  ;;  %8921 = vmatpush3.bf16.msra.mxu0 %v9779_v0  ;;  %v9817_v52 = vld [vmem:[%s12180_s1 + $0x10b0] sm:$0xff]   ;;  %v7585_v57 = vcombine.low %v310_v56, %v310_v56  ;;  %v9823_v59 = vld [vmem:[%s12180_s1 + $0x10b8] sm:$0xff]   ;;  %v311_v61 = vld [vmem:[%s10185_s19 + $0x108] sm:$0xff] }
 0x208   : > { %8922 = vmatprep.subr.bf16.mxu0 %v9782_v3  ;;  %6877 = vmatprep.mubr.bf16.mxu1 %v7584_v13  ;;  %v7588_v63 = vcombine.high %v311_v61, %v311_v61  ;;  %v9827_v0 = vld [vmem:[%s12180_s1 + $0x1100] sm:$0xff]   ;;  %v9830_v3 = vld [vmem:[%s12180_s1 + $0x1148] sm:$0xff]   ;;  %v9838_v11 = vld [vmem:[%s12180_s1 + $0x1158] sm:$0xff]  }
 0x209   : > { %8943 = vmatpush3.bf16.msra.mxu1 %v9781_v2  ;;  %v9828_v1 = vld [vmem:[%s12180_s1 + $0x11c0] sm:$0xff]   ;;  %v9840_v13 = vld [vmem:[%s12180_s1 + $0x11d8] sm:$0xff]   ;;  %v9869_v56 = vld [vmem:[%s12180_s1 + $0x1288] sm:$0xff]  }
 0x20a   : > { %8944 = vmatprep.subr.bf16.mxu1 %v9784_v5  ;;  %v9829_v2 = vld [vmem:[%s12180_s1 + $0x1180] sm:$0xff]   ;;  %v9832_v5 = vld [vmem:[%s12180_s1 + $0x11c8] sm:$0xff]  }
 0x20b   : > { %8923 = vmatpush3.bf16.msra.mxu0 %v9783_v4  ;;  %v9831_v4 = vld [vmem:[%s12180_s1 + $0x1108] sm:$0xff]  }
 0x20c   : > { %8952 = vmatprep.subr.bf16.mxu0 %v9788_v10  ;;  %v9837_v10 = vld [vmem:[%s12180_s1 + $0x1190] sm:$0xff]  }
 0x20d   : > { %8945 = vmatpush3.bf16.msra.mxu1 %v9787_v9  ;;  %v9836_v9 = vld [vmem:[%s12180_s1 + $0x11d0] sm:$0xff]  }
 0x20e   : > { %6838 = vmatmul.mubr.bf16.vlgmr.msra.gmra.mrb[60].mxu0 %v7581_v7  ;;  %8974 = vmatprep.subr.bf16.mxu1 %v9792_v15  ;;  %v9834_v7 = vld [vmem:[%s12180_s1 + $0x1150] sm:$0xff]   ;;  %v9842_v15 = vld [vmem:[%s12180_s1 + $0x1160] sm:$0xff]  }
 0x20f   : > { %8953 = vmatpush3.bf16.msra.mxu0 %v9791_v14  ;;  %6917 = vmatprep.mubr.bf16.mxu0 %v7586_v58  ;;  %v9841_v14 = vld [vmem:[%s12180_s1 + $0x1198] sm:$0xff]   ;;  %v9871_v58 = vld [vmem:[%s12180_s1 + $0x1210] sm:$0xff]  }
 0x210   : > { %6878 = vmatmul.mubr.bf16.vlgmr.msra.gmra.mrb[60].mxu1 %v7583_v12  ;;  %8954 = vmatprep.subr.bf16.mxu0 %v9794_v17  ;;  %v9839_v12 = vld [vmem:[%s12180_s1 + $0x1118] sm:$0xff]  }
 0x211   : > { %8975 = vmatpush3.bf16.msra.mxu1 %v9793_v16  ;;  %6957 = vmatprep.mubr.bf16.mxu1 %v7588_v63  ;;  %v9843_v16 = vld [vmem:[%s12180_s1 + $0x1120] sm:$0xff]   ;;  %v9876_v63 = vld [vmem:[%s12180_s1 + $0x12d8] sm:$0xff]  }
 0x212   : > { %8976 = vmatprep.subr.bf16.mxu1 %v9796_v19 }
 0x213   : > { %8955 = vmatpush3.bf16.msra.mxu0 %v9795_v18  ;;  %v9844_v18 = vld [vmem:[%s12180_s1 + $0x11e0] sm:$0xff]  }
 0x214   : > { %8956 = vmatprep.subr.bf16.mxu0 %v9798_v21 }
 0x215   : > { %8977 = vmatpush3.bf16.msra.mxu1 %v9797_v20  ;;  %v9845_v20 = vld [vmem:[%s12180_s1 + $0x11a0] sm:$0xff]  }
 0x216   : > { %8978 = vmatprep.subr.bf16.mxu1 %v9800_v23  ;;  %v9846_v23 = vld [vmem:[%s12180_s1 + $0x1168] sm:$0xff]  }
 0x217   : > { %8957 = vmatpush3.bf16.msra.mxu0 %v9799_v22 }
 0x218   : > { %8958 = vmatprep.subr.bf16.mxu0 %v9802_v25 }
 0x219   : > { %8979 = vmatpush3.bf16.msra.mxu1 %v9801_v24 }
 0x21a   : > { %8980 = vmatprep.subr.bf16.mxu1 %v9804_v27 }
 0x21b   : > { %8959 = vmatpush3.bf16.msra.mxu0 %v9803_v26  ;;  %v9847_v26 = vld [vmem:[%s12180_s1 + $0x1128] sm:$0xff]  }
 0x21c   : > { %8960 = vmatprep.subr.bf16.mxu0 %v9806_v29  ;;  %v9848_v29 = vld [vmem:[%s12180_s1 + $0x11e8] sm:$0xff]  }
 0x21d   : > { %8981 = vmatpush3.bf16.msra.mxu1 %v9805_v28 }
 0x21e   : > { %8982 = vmatprep.subr.bf16.mxu1 %v9808_v32 }
 0x21f   : > { %8961 = vmatpush3.bf16.msra.mxu0 %v9807_v30 }
 0x220   : > { %8962 = vmatprep.subr.bf16.mxu0 %v9810_v37  ;;  %v9852_v37 = vld [vmem:[%s12180_s1 + $0x11f0] sm:$0xff]  }
 0x221   : > { %v8660_v31 = vpop.f32.mrb[36].mxu0  ;;  %8983 = vmatpush3.bf16.msra.mxu1 %v9809_v34  ;;  %v9850_v34 = vld [vmem:[%s12180_s1 + $0x1170] sm:$0xff]  }
 0x222   : > { %v8661_v33 = vpop.f32.mrb[37].mxu0  ;;  %8984 = vmatprep.subr.bf16.mxu1 %v9812_v43 }
 0x223   : > { %v8662_v35 = vadd.f32 %v8661_v33, %v8660_v31  ;;  %v8663_v36 = vpop.f32.mrb[38].mxu0  ;;  %v8682_v38 = vpop.f32.mrb[36].mxu1  ;;  %8963 = vmatpush3.bf16.msra.mxu0 %v9811_v40  ;;  %v9849_v31 = vld [vmem:[%s12180_s1 + $0x11a8] sm:$0xff]   ;;  %v9855_v40 = vld [vmem:[%s12180_s1 + $0x1138] sm:$0xff]  }
 0x224   : > { %v8664_v41 = vpop.f32.mrb[39].mxu0  ;;  %v8683_v42 = vpop.f32.mrb[37].mxu1  ;;  %8964 = vmatprep.subr.bf16.mxu0 %v9814_v47  ;;  %v9851_v36 = vld [vmem:[%s12180_s1 + $0x1130] sm:$0xff]   ;;  %v313_v47 = vld [vmem:[%s10185_s19 + $0x118] sm:$0xff] }
 0x225   : > { %v6360_v39 = vadd.f32 %v8662_v35, %v11669_v62  ;;  %v8684_v44 = vadd.f32 %v8683_v42, %v8682_v38  ;;  %v8685_v46 = vpop.f32.mrb[38].mxu1  ;;  %8985 = vmatpush3.bf16.msra.mxu1 %v9813_v45  ;;  %v7587_v62 = vcombine.low %v311_v61, %v311_v61  ;;  %v9853_v38 = vld [vmem:[%s12180_s1 + $0x11b0] sm:$0xff]   ;;  %v9856_v41 = vld [vmem:[%s12180_s1 + $0x11f8] sm:$0xff]  }
 0x226   : > { %v8686_v48 = vpop.f32.mrb[39].mxu1  ;;  %8986 = vmatprep.subr.bf16.mxu1 %v9816_v51  ;;  %v312_v42 = vld [vmem:[%s10185_s19 + $0x110] sm:$0xff]  ;;  %v9859_v45 = vld [vmem:[%s12180_s1 + $0x11b8] sm:$0xff]   ;;  %v9860_v46 = vld [vmem:[%s12180_s1 + $0x1240] sm:$0xff]  }
 0x227   : > { %v11773_v49 = vadd.f32 %v8684_v44, %v6360_v39  ;;  %8965 = vmatpush3.bf16.msra.mxu0 %v9815_v50  ;;  %v9854_v39 = vld [vmem:[%s12180_s1 + $0x1178] sm:$0xff]   ;;  %v7589_v43 = vcombine.low %v312_v42, %v312_v42  ;;  %v7590_v44 = vcombine.high %v312_v42, %v312_v42  ;;  %v7591_v48 = vcombine.low %v313_v47, %v313_v47  ;;  %v9863_v50 = vld [vmem:[%s12180_s1 + $0x1200] sm:$0xff]  }
 0x228   : > { %8966 = vmatprep.subr.bf16.mxu0 %v9818_v53  ;;  %v9864_v51 = vld [vmem:[%s12180_s1 + $0x12c0] sm:$0xff]   ;;  %v9866_v53 = vld [vmem:[%s12180_s1 + $0x1248] sm:$0xff]   ;;  %v9874_v61 = vld [vmem:[%s12180_s1 + $0x1258] sm:$0xff]  }
 0x229   : > { %8987 = vmatpush3.bf16.msra.mxu1 %v9817_v52  ;;  %v9865_v52 = vld [vmem:[%s12180_s1 + $0x1280] sm:$0xff]   ;;  %v9904_v42 = vld [vmem:[%s12180_s1 + $0x1358] sm:$0xff]  }
 0x22a   : > { %8988 = vmatprep.subr.bf16.mxu1 %v9820_v55  ;;  %v9868_v55 = vld [vmem:[%s12180_s1 + $0x12c8] sm:$0xff]  }
 0x22b   : > { %8967 = vmatpush3.bf16.msra.mxu0 %v9819_v54  ;;  %v9867_v54 = vld [vmem:[%s12180_s1 + $0x1208] sm:$0xff]  }
 0x22c   : > { %8996 = vmatprep.subr.bf16.mxu0 %v9824_v60  ;;  %v9873_v60 = vld [vmem:[%s12180_s1 + $0x1290] sm:$0xff]  }
 0x22d   : > { %8989 = vmatpush3.bf16.msra.mxu1 %v9823_v59  ;;  %v9872_v59 = vld [vmem:[%s12180_s1 + $0x12d0] sm:$0xff]  }
 0x22e   : > { %6918 = vmatmul.mubr.bf16.vlgmr.msra.gmra.mrb[64].mxu0 %v7585_v57  ;;  %9018 = vmatprep.subr.bf16.mxu1 %v9828_v1  ;;  %v9870_v57 = vld [vmem:[%s12180_s1 + $0x1250] sm:$0xff]   ;;  %v9878_v1 = vld [vmem:[%s12180_s1 + $0x1260] sm:$0xff]  }
 0x22f   : > { %8997 = vmatpush3.bf16.msra.mxu0 %v9827_v0  ;;  %6997 = vmatprep.mubr.bf16.mxu0 %v7590_v44  ;;  %v9877_v0 = vld [vmem:[%s12180_s1 + $0x1298] sm:$0xff]   ;;  %v9906_v44 = vld [vmem:[%s12180_s1 + $0x1360] sm:$0xff]  }
 0x230   : > { %6958 = vmatmul.mubr.bf16.vlgmr.msra.gmra.mrb[64].mxu1 %v7587_v62  ;;  %8998 = vmatprep.subr.bf16.mxu0 %v9830_v3  ;;  %v9875_v62 = vld [vmem:[%s12180_s1 + $0x1218] sm:$0xff]   ;;  %v9879_v3 = vld [vmem:[%s12180_s1 + $0x1220] sm:$0xff]  }
 0x231   : > { %9019 = vmatpush3.bf16.msra.mxu1 %v9829_v2 }
 0x232   : > { %9020 = vmatprep.subr.bf16.mxu1 %v9832_v5  ;;  %v9880_v5 = vld [vmem:[%s12180_s1 + $0x12e0] sm:$0xff]  }
 0x233   : > { %8999 = vmatpush3.bf16.msra.mxu0 %v9831_v4 }
 0x234   : > { %9000 = vmatprep.subr.bf16.mxu0 %v9834_v7 }
 0x235   : > { %9021 = vmatpush3.bf16.msra.mxu1 %v9833_v6 }
 0x236   : > { %9022 = vmatprep.subr.bf16.mxu1 %v9836_v9 }
 0x237   : > { %9001 = vmatpush3.bf16.msra.mxu0 %v9835_v8  ;;  %v9881_v8 = vld [vmem:[%s12180_s1 + $0x12a0] sm:$0xff]  }
 0x238   : > { %9002 = vmatprep.subr.bf16.mxu0 %v9838_v11  ;;  %v9882_v11 = vld [vmem:[%s12180_s1 + $0x1268] sm:$0xff]  }
 0x239   : > { %9023 = vmatpush3.bf16.msra.mxu1 %v9837_v10 }
 0x23a   : > { %9024 = vmatprep.subr.bf16.mxu1 %v9840_v13  ;;  %v9883_v13 = vld [vmem:[%s12180_s1 + $0x1228] sm:$0xff]  }
 0x23b   : > { %9003 = vmatpush3.bf16.msra.mxu0 %v9839_v12 }
 0x23c   : > { %9004 = vmatprep.subr.bf16.mxu0 %v9842_v15 }
 0x23d   : > { %9025 = vmatpush3.bf16.msra.mxu1 %v9841_v14 }
 0x23e   : > { %9026 = vmatprep.subr.bf16.mxu1 %v9844_v18  ;;  %v9885_v18 = vld [vmem:[%s12180_s1 + $0x12a8] sm:$0xff]  }
 0x23f   : > { %9005 = vmatpush3.bf16.msra.mxu0 %v9843_v16  ;;  %v9884_v16 = vld [vmem:[%s12180_s1 + $0x12e8] sm:$0xff]  }
 0x240   : > { %9006 = vmatprep.subr.bf16.mxu0 %v9846_v23  ;;  %v9888_v23 = vld [vmem:[%s12180_s1 + $0x12f0] sm:$0xff]  }
 0x241   : > { %v8704_v17 = vpop.f32.mrb[40].mxu0  ;;  %9027 = vmatpush3.bf16.msra.mxu1 %v9845_v20 }
 0x242   : > { %v8705_v19 = vpop.f32.mrb[41].mxu0  ;;  %9028 = vmatprep.subr.bf16.mxu1 %v9848_v29 }
 0x243   : > { %v8706_v21 = vadd.f32 %v8705_v19, %v8704_v17  ;;  %v8707_v22 = vpop.f32.mrb[42].mxu0  ;;  %v8726_v24 = vpop.f32.mrb[40].mxu1  ;;  %9007 = vmatpush3.bf16.msra.mxu0 %v9847_v26  ;;  %v9891_v26 = vld [vmem:[%s12180_s1 + $0x1238] sm:$0xff]  }
 0x244   : > { %v8708_v27 = vpop.f32.mrb[43].mxu0  ;;  %v8727_v28 = vpop.f32.mrb[41].mxu1  ;;  %9008 = vmatprep.subr.bf16.mxu0 %v9850_v34  ;;  %v9887_v22 = vld [vmem:[%s12180_s1 + $0x1230] sm:$0xff]  }
 0x245   : > { %v6440_v25 = vadd.f32 %v8706_v21, %v11773_v49  ;;  %v8728_v30 = vadd.f32 %v8727_v28, %v8726_v24  ;;  %v8729_v32 = vpop.f32.mrb[42].mxu1  ;;  %9029 = vmatpush3.bf16.msra.mxu1 %v9849_v31  ;;  %v7592_v49 = vcombine.high %v313_v47, %v313_v47  ;;  %v9886_v21 = vld [vmem:[%s12180_s1 + $0x1270] sm:$0xff]   ;;  %v9892_v27 = vld [vmem:[%s12180_s1 + $0x12f8] sm:$0xff]   ;;  %v314_v28 = vld [vmem:[%s10185_s19 + $0x120] sm:$0xff] }
 0x246   : > { %v8730_v35 = vpop.f32.mrb[43].mxu1  ;;  %9030 = vmatprep.subr.bf16.mxu1 %v9852_v37  ;;  %v9889_v24 = vld [vmem:[%s12180_s1 + $0x12b0] sm:$0xff]   ;;  %v7593_v29 = vcombine.low %v314_v28, %v314_v28  ;;  %v9895_v31 = vld [vmem:[%s12180_s1 + $0x12b8] sm:$0xff]   ;;  %v9896_v32 = vld [vmem:[%s12180_s1 + $0x1340] sm:$0xff]  }
 0x247   : > { %v11871_v33 = vadd.f32 %v8728_v30, %v6440_v25  ;;  %9009 = vmatpush3.bf16.msra.mxu0 %v9851_v36  ;;  %7037 = vmatprep.mubr.bf16.mxu1 %v7592_v49  ;;  %v9890_v25 = vld [vmem:[%s12180_s1 + $0x1278] sm:$0xff]   ;;  %v7594_v30 = vcombine.high %v314_v28, %v314_v28  ;;  %v9899_v36 = vld [vmem:[%s12180_s1 + $0x1300] sm:$0xff]   ;;  %v9900_v37 = vld [vmem:[%s12180_s1 + $0x1348] sm:$0xff]  }
 0x248   : > { %9010 = vmatprep.subr.bf16.mxu0 %v9854_v39  ;;  %v9902_v39 = vld [vmem:[%s12180_s1 + $0x1350] sm:$0xff]   ;;  %v9914_v47 = vld [vmem:[%s12180_s1 + $0x1380] sm:$0xff]   ;;  %v9909_v49 = vld [vmem:[%s12180_s1 + $0x1328] sm:$0xff]  }
 0x249   : > { %9031 = vmatpush3.bf16.msra.mxu1 %v9853_v38  ;;  %v9901_v38 = vld [vmem:[%s12180_s1 + $0x1308] sm:$0xff]  }
 0x24a   : > { %9032 = vmatprep.subr.bf16.mxu1 %v9856_v41  ;;  %v9903_v41 = vld [vmem:[%s12180_s1 + $0x1310] sm:$0xff]  }
 0x24b   : > { %9011 = vmatpush3.bf16.msra.mxu0 %v9855_v40  ;;  %v10002_v40 = vmov 0.0  }
 0x24c   : > { %9040 = vmatprep.subr.bf16.mxu0 %v9860_v46  ;;  %v9908_v46 = vld [vmem:[%s12180_s1 + $0x1368] sm:$0xff]  }
 0x24d   : > { %9033 = vmatpush3.bf16.msra.mxu1 %v9859_v45  ;;  %v9907_v45 = vld [vmem:[%s12180_s1 + $0x1320] sm:$0xff]  }
 0x24e   : > { %6998 = vmatmul.mubr.bf16.vlgmr.msra.gmra.mrb[68].mxu0 %v7589_v43  ;;  %9062 = vmatprep.subr.bf16.mxu1 %v9864_v51  ;;  %v9905_v43 = vld [vmem:[%s12180_s1 + $0x1318] sm:$0xff]  }
 0x24f   : > { %9041 = vmatpush3.bf16.msra.mxu0 %v9863_v50  ;;  %7077 = vmatprep.mubr.bf16.mxu0 %v7594_v30  ;;  %v316_v50 = vld [vmem:[%s10185_s19 + $0x130] sm:$0xff]  ;;  %v9917_v51 = vld [vmem:[%s10185_s19 + $0x138] ss:$0 sps:$4 sm:$0xff]   ;;  %v9919_v30 = vld [vmem:[%s12182_s3 + $0x8] sm:$0xff]  }
 0x250   : > { %7038 = vmatmul.mubr.bf16.vlgmr.msra.gmra.mrb[68].mxu1 %v7591_v48  ;;  %9042 = vmatprep.subr.bf16.mxu0 %v9866_v53  ;;  %v9910_v53 = vld [vmem:[%s12180_s1 + $0x1370] sm:$0xff]  }
 0x251   : > { %9063 = vmatpush3.bf16.msra.mxu1 %v9865_v52 }
 0x252   : > { %9064 = vmatprep.subr.bf16.mxu1 %v9868_v55 }
 0x253   : > { %9043 = vmatpush3.bf16.msra.mxu0 %v9867_v54  ;;  %v7598_v54 = vcombine.high %v316_v50, %v316_v50 }
 0x254   : > { %9044 = vmatprep.subr.bf16.mxu0 %v9870_v57 }
 0x255   : > { %9065 = vmatpush3.bf16.msra.mxu1 %v9869_v56 }
 0x256   : > { %9066 = vmatprep.subr.bf16.mxu1 %v9872_v59 }
 0x257   : > { %9045 = vmatpush3.bf16.msra.mxu0 %v9871_v58 }
 0x258   : > { %9046 = vmatprep.subr.bf16.mxu0 %v9874_v61 }
 0x259   : > { %9067 = vmatpush3.bf16.msra.mxu1 %v9873_v60 }
 0x25a   : > { %9068 = vmatprep.subr.bf16.mxu1 %v9876_v63 }
 0x25b   : > { %9047 = vmatpush3.bf16.msra.mxu0 %v9875_v62  ;;  %v9911_v62 = vld [vmem:[%s12180_s1 + $0x1330] sm:$0xff]  }
 0x25c   : > { %9048 = vmatprep.subr.bf16.mxu0 %v9878_v1 }
 0x25d   : > { %9069 = vmatpush3.bf16.msra.mxu1 %v9877_v0  ;;  %v9912_v0 = vld [vmem:[%s12180_s1 + $0x1378] sm:$0xff]  }
 0x25e   : > { %9070 = vmatprep.subr.bf16.mxu1 %v9880_v5 }
 0x25f   : > { %9049 = vmatpush3.bf16.msra.mxu0 %v9879_v3  ;;  %v9913_v3 = vld [vmem:[%s12180_s1 + $0x1338] sm:$0xff]  }
 0x260   : > { %9050 = vmatprep.subr.bf16.mxu0 %v9882_v11 }
 0x261   : > { %v8748_v2 = vpop.f32.mrb[44].mxu0  ;;  %9071 = vmatpush3.bf16.msra.mxu1 %v9881_v8 }
 0x262   : > { %v8749_v4 = vpop.f32.mrb[45].mxu0  ;;  %9072 = vmatprep.subr.bf16.mxu1 %v9884_v16 }
 0x263   : > { %v8750_v6 = vadd.f32 %v8749_v4, %v8748_v2  ;;  %v8751_v7 = vpop.f32.mrb[46].mxu0  ;;  %v8770_v9 = vpop.f32.mrb[44].mxu1  ;;  %9051 = vmatpush3.bf16.msra.mxu0 %v9883_v13  ;;  %v7597_v4 = vcombine.low %v316_v50, %v316_v50  ;;  %v9926_v50 = vld [vmem:[%s12184_s5] sm:$0xff]  }
 0x264   : > { %v8752_v12 = vpop.f32.mrb[47].mxu0  ;;  %v8771_v14 = vpop.f32.mrb[45].mxu1  ;;  %9052 = vmatprep.subr.bf16.mxu0 %v9886_v21 }
 0x265   : > { %v6520_v10 = vadd.f32 %v8750_v6, %v11871_v33  ;;  %v8772_v15 = vadd.f32 %v8771_v14, %v8770_v9  ;;  %v8773_v17 = vpop.f32.mrb[46].mxu1  ;;  %9073 = vmatpush3.bf16.msra.mxu1 %v9885_v18  ;;  %v315_v33 = vld [vmem:[%s10185_s19 + $0x128] sm:$0xff]  ;;  %s269_s19 = sand.u32 1, %s9992_s25  }
 0x266   : > { %v8774_v19 = vpop.f32.mrb[47].mxu1  ;;  %9074 = vmatprep.subr.bf16.mxu1 %v9888_v23  ;;  %v7595_v34 = vcombine.low %v315_v33, %v315_v33  ;;  %v7596_v35 = vcombine.high %v315_v33, %v315_v33  ;;  %v9922_v33 = vld [vmem:[%s12182_s3 + $0x20] sm:$0xff]   ;;  %s7518_s22 = sshll.u32 %s269_s19, 3  ;;  %s7442_s18 = scalar_lea.sflag [#allocation3], %s269_s19 }
 0x267   : > { %v11972_v20 = vadd.f32 %v8772_v15, %v6520_v10  ;;  %9053 = vmatpush3.bf16.msra.mxu0 %v9887_v22  ;;  %s271_s14 = scalar_lea.vmem [#allocation2], %s7518_s22 }
 0x268   : > { %9054 = vmatprep.subr.bf16.mxu0 %v9890_v25  ;;  %7117 = vmatprep.mubr.bf16.mxu1 %v7596_v35  ;;  %s7455_s15 = sshll.u32 %s271_s14, 4  ;;  %s12139_s15 = int_to_ptr.vmem [resolvable:$true] %s7455_s15 }
 0x269   : > { %9075 = vmatpush3.bf16.msra.mxu1 %v9889_v24  ;;  %s9938_s20 = scalar_lea.vmem %s12139_s15, 128  ;;  %p9945_p0 = scmp.lt.s32.totalorder %s12139_s15, %s9943_s21 }
 0x26a   : > { %9076 = vmatprep.subr.bf16.mxu1 %v9892_v27  ;;  %p9939_p11 = scmp.ne.s32.totalorder %s12139_s15, %s9938_s20  ;;  %p9946_p1 = scmp.lt.s32.totalorder %s9944_s23, %s9938_s20 }
 0x26b   : > { %9055 = vmatpush3.bf16.msra.mxu0 %v9891_v26 }
 0x26c   : > { %9084 = vmatprep.subr.bf16.mxu0 %v9896_v32  ;;  %v9921_v32 = vld [vmem:[%s12182_s3 + $0x18] sm:$0xff]   ;;  %p9940_p12 = pnand %p9939_p11, %p10083_p5  ;;  %p9947_p2 = por %p9946_p1, %p9945_p0 }
 0x26d   : > { %9077 = vmatpush3.bf16.msra.mxu1 %v9895_v31  ;;  %v9920_v31 = vld [vmem:[%s12182_s3 + $0x10] sm:$0xff]  }
 0x26e   : > { %7078 = vmatmul.mubr.bf16.vlgmr.msra.gmra.mrb[72].mxu0 %v7593_v29  ;;  %9126 = vmatprep.subr.bf16.mxu1 %v10002_v40  ;;  %v9918_v29 = vld [vmem:[%s12182_s3] sm:$0xff]   ;;  %p9941_p13 = pneg %p9940_p12 }
 0x26f   : > { %9085 = vmatpush3.bf16.msra.mxu0 %v9899_v36  ;;  %7157 = vmatprep.mubr.bf16.mxu0 %v7598_v54  ;;  %v9923_v36 = vld [vmem:[%s12182_s3 + $0x28] sm:$0xff]   ;;  %v9930_v54 = vld [vmem:[%s12184_s5 + $0x20] sm:$0xff]  }
 0x270   : > { %7118 = vmatmul.mubr.bf16.vlgmr.msra.gmra.mrb[72].mxu1 %v7595_v34  ;;  %9086 = vmatprep.subr.bf16.mxu0 %v9900_v37  ;;  %p9948_p3 = pnand %p9947_p2, %p9941_p13 }
 0x271   : > { %9128 = vmatprep.mubr.msk.bf16.mxu1 %vm10003_vm0, %v10002_v40  ;;  %9127 = vmatpush3.bf16.msra.mxu1 %v9914_v47  ;;  %v9924_v47 = vld [vmem:[%s12182_s3 + $0x30] sm:$0xff]  }
 0x272   : > { %9132 = vmatprep.subr.bf16.mxu1 %v10002_v40 }
 0x273   : > { %9087 = vmatpush3.bf16.msra.mxu0 %v9901_v38 }
 0x274   : > { %9088 = vmatprep.subr.bf16.mxu0 %v9902_v39 }
 0x277   : > { %9089 = vmatpush3.bf16.msra.mxu0 %v9903_v41 }
 0x278   : > { %9090 = vmatprep.subr.bf16.mxu0 %v9904_v42  ;;  %9129 = vmatmul.mubr.msk.bf16.vlgmr.msra.gmra.mrb[76].mxu1 %vm5601_vm1, %v9917_v51  ;;  %v9927_v51 = vld [vmem:[%s12184_s5 + $0x8] sm:$0xff]  }
 0x279   : > { %9148 = vmatprep.mubr.msk.bf16.mxu1 %vm10003_vm0, %v10002_v40  ;;  %9133 = vmatpush3.bf16.msra.mxu1 %v9918_v29 }
 0x27a   : > { %9134 = vmatprep.subr.bf16.mxu1 %v10002_v40 }
 0x27b   : > { %9091 = vmatpush3.bf16.msra.mxu0 %v9905_v43 }
 0x27c   : > { %9092 = vmatprep.subr.bf16.mxu0 %v9906_v44 }
 0x27d   : > { %9135 = vmatpush3.bf16.msra.mxu1 %v9919_v30 }
 0x27e   : > { %9136 = vmatprep.subr.bf16.mxu1 %v10002_v40 }
 0x27f   : > { %9093 = vmatpush3.bf16.msra.mxu0 %v9907_v45 }
 0x280   : > { %9094 = vmatprep.subr.bf16.mxu0 %v9908_v46 }
 0x281   : > { %v8792_v48 = vpop.f32.mrb[48].mxu0  ;;  %9137 = vmatpush3.bf16.msra.mxu1 %v9920_v31 }
 0x282   : > { %v8793_v52 = vpop.f32.mrb[49].mxu0  ;;  %9138 = vmatprep.subr.bf16.mxu1 %v10002_v40 }
 0x283   : > { %v8794_v55 = vadd.f32 %v8793_v52, %v8792_v48  ;;  %v8795_v56 = vpop.f32.mrb[50].mxu0  ;;  %v8814_v57 = vpop.f32.mrb[48].mxu1  ;;  %9095 = vmatpush3.bf16.msra.mxu0 %v9909_v49  ;;  %v9925_v49 = vld [vmem:[%s12182_s3 + $0x38] sm:$0xff]   ;;  %v9928_v52 = vld [vmem:[%s12184_s5 + $0x10] sm:$0xff]  }
 0x284   : > { %v8796_v58 = vpop.f32.mrb[51].mxu0  ;;  %v8815_v59 = vpop.f32.mrb[49].mxu1  ;;  %9096 = vmatprep.subr.bf16.mxu0 %v9910_v53  ;;  %v9929_v53 = vld [vmem:[%s12184_s5 + $0x18] sm:$0xff]  }
 0x285   : > { %v6600_v60 = vadd.f32 %v8794_v55, %v11972_v20  ;;  %v8816_v61 = vadd.f32 %v8815_v59, %v8814_v57  ;;  %v8817_v63 = vpop.f32.mrb[50].mxu1  ;;  %9139 = vmatpush3.bf16.msra.mxu1 %v9921_v32  ;;  %v9931_v55 = vld [vmem:[%s12184_s5 + $0x28] sm:$0xff]  }
 0x286   : > { %v8818_v1 = vpop.f32.mrb[51].mxu1  ;;  %9140 = vmatprep.subr.bf16.mxu1 %v10002_v40 }
 0x287   : > { %v6640_v2 = vadd.f32 %v8816_v61, %v6600_v60  ;;  %9097 = vmatpush3.bf16.msra.mxu0 %v9911_v62 }
 0x288   : > { %9098 = vmatprep.subr.bf16.mxu0 %v9912_v0 }
 0x289   : > { %9141 = vmatpush3.bf16.msra.mxu1 %v9922_v33 }
 0x28a   : > { %9142 = vmatprep.subr.bf16.mxu1 %v10002_v40 }
 0x28b   : > { %9099 = vmatpush3.bf16.msra.mxu0 %v9913_v3 }
 0x28c   : > { %9152 = vmatprep.subr.bf16.mxu0 %v10002_v40 }
 0x28d   : > { %9143 = vmatpush3.bf16.msra.mxu1 %v9923_v36 }
 0x28e   : > { %7158 = vmatmul.mubr.bf16.vlgmr.msra.gmra.mrb[76].mxu0 %v7597_v4  ;;  %9144 = vmatprep.subr.bf16.mxu1 %v10002_v40 }
 0x28f   : > { %9168 = vmatprep.mubr.msk.bf16.mxu0 %vm10003_vm0, %v10002_v40  ;;  %9153 = vmatpush3.bf16.msra.mxu0 %v9926_v50 }
 0x290   : > { %9154 = vmatprep.subr.bf16.mxu0 %v10002_v40 }
 0x291   : > { %9145 = vmatpush3.bf16.msra.mxu1 %v9924_v47 }
 0x292   : > { %9146 = vmatprep.subr.bf16.mxu1 %v10002_v40 }
 0x293   : > { %9155 = vmatpush3.bf16.msra.mxu0 %v9927_v51 }
 0x294   : > { %9156 = vmatprep.subr.bf16.mxu0 %v10002_v40 }
 0x295   : > { %9147 = vmatpush3.bf16.msra.mxu1 %v9925_v49 }
 0x297   : > { %9157 = vmatpush3.bf16.msra.mxu0 %v9928_v52 }
 0x298   : > { %9158 = vmatprep.subr.bf16.mxu0 %v10002_v40 }
 0x29b   : > { %9159 = vmatpush3.bf16.msra.mxu0 %v9929_v53 }
 0x29c   : > { %9160 = vmatprep.subr.bf16.mxu0 %v10002_v40 }
 0x29f   : > { %9161 = vmatpush3.bf16.msra.mxu0 %v9930_v54 }
 0x2a0   : > { %9162 = vmatprep.subr.bf16.mxu0 %v10002_v40 }
 0x2a1   : > { %v8836_v5 = vpop.f32.mrb[52].mxu0 }
 0x2a2   : > { %v8837_v6 = vpop.f32.mrb[53].mxu0 }
 0x2a3   : > { %v8838_v7 = vadd.f32 %v8837_v6, %v8836_v5  ;;  %v8839_v8 = vpop.f32.mrb[54].mxu0  ;;  %v8858_v9 = vpop.f32.mrb[52].mxu1  ;;  %9163 = vmatpush3.bf16.msra.mxu0 %v9931_v55 }
 0x2a4   : > { %v8840_v10 = vpop.f32.mrb[55].mxu0  ;;  %v8859_v11 = vpop.f32.mrb[53].mxu1  ;;  %9164 = vmatprep.subr.bf16.mxu0 %v10002_v40 }
 0x2a5   : > { %v6680_v12 = vadd.f32 %v8838_v7, %v6640_v2  ;;  %v8860_v13 = vadd.f32 %v8859_v11, %v8858_v9  ;;  %v8861_v14 = vpop.f32.mrb[54].mxu1 }
 0x2a6   : > { %v8862_v15 = vpop.f32.mrb[55].mxu1 }
 0x2a7   : > { %v6720_v16 = vadd.f32 %v8860_v13, %v6680_v12 }
 0x2c1   : > { %v8880_v17 = vpop.f32.mrb[56].mxu0 }
 0x2c2   : > { %v8881_v18 = vpop.f32.mrb[57].mxu0 }
 0x2c3   : > { %v8882_v19 = vadd.f32 %v8881_v18, %v8880_v17  ;;  %v8883_v20 = vpop.f32.mrb[58].mxu0  ;;  %v8902_v21 = vpop.f32.mrb[56].mxu1 }
 0x2c4   : > { %v8884_v22 = vpop.f32.mrb[59].mxu0  ;;  %v8903_v24 = vpop.f32.mrb[57].mxu1 }
 0x2c5   : > { %v6760_v23 = vadd.f32 %v8882_v19, %v6720_v16  ;;  %v8904_v25 = vadd.f32 %v8903_v24, %v8902_v21  ;;  %v8905_v26 = vpop.f32.mrb[58].mxu1 }
 0x2c6   : > { %v8906_v27 = vpop.f32.mrb[59].mxu1 }
 0x2c7   : > { %v6800_v28 = vadd.f32 %v8904_v25, %v6760_v23 }
 0x2e1   : > { %v8924_v34 = vpop.f32.mrb[60].mxu0 }
 0x2e2   : > { %v8925_v35 = vpop.f32.mrb[61].mxu0 }
 0x2e3   : > { %v8926_v37 = vadd.f32 %v8925_v35, %v8924_v34  ;;  %v8927_v38 = vpop.f32.mrb[62].mxu0  ;;  %v8946_v39 = vpop.f32.mrb[60].mxu1 }
 0x2e4   : > { %v8928_v41 = vpop.f32.mrb[63].mxu0  ;;  %v8947_v42 = vpop.f32.mrb[61].mxu1 }
 0x2e5   : > { %v6840_v43 = vadd.f32 %v8926_v37, %v6800_v28  ;;  %v8948_v44 = vadd.f32 %v8947_v42, %v8946_v39  ;;  %v8949_v45 = vpop.f32.mrb[62].mxu1  ;;  %v9932_v42 = vld [vmem:[%s12184_s5 + $0x30] sm:$0xff]  }
 0x2e6   : > { %v8950_v46 = vpop.f32.mrb[63].mxu1  ;;  %9165 = vmatpush3.bf16.msra.mxu0 %v9932_v42 }
 0x2e7   : > { %v6880_v48 = vadd.f32 %v8948_v44, %v6840_v43  ;;  %9166 = vmatprep.subr.bf16.mxu0 %v10002_v40  ;;  %v9933_v43 = vld [vmem:[%s12184_s5 + $0x38] sm:$0xff]   ;;  %v8226_v44 = vld [vmem:[%s12183_s4] ss:$0 sm:$0xff] }
 0x2e8   : > { %v8235_v40 = vld [vmem:[%s12185_s6] ss:$0 sm:$0xff] }
 0x2ea   : > { %9167 = vmatpush3.bf16.msra.mxu0 %v9933_v43 }
 0x301   : > { %v8968_v56 = vpop.f32.mrb[64].mxu0 }
 0x302   : > { %v8969_v57 = vpop.f32.mrb[65].mxu0 }
 0x303   : > { %v8970_v58 = vadd.f32 %v8969_v57, %v8968_v56  ;;  %v8971_v59 = vpop.f32.mrb[66].mxu0  ;;  %v8990_v60 = vpop.f32.mrb[64].mxu1 }
 0x304   : > { %v8972_v61 = vpop.f32.mrb[67].mxu0  ;;  %v8991_v62 = vpop.f32.mrb[65].mxu1 }
 0x305   : > { %v6920_v63 = vadd.f32 %v8970_v58, %v6880_v48  ;;  %v8992_v0 = vadd.f32 %v8991_v62, %v8990_v60  ;;  %v8993_v1 = vpop.f32.mrb[66].mxu1 }
 0x306   : > { %v8994_v2 = vpop.f32.mrb[67].mxu1 }
 0x307   : > { %v6960_v3 = vadd.f32 %v8992_v0, %v6920_v63 }
 0x321   : > { %v9012_v4 = vpop.f32.mrb[68].mxu0 }
 0x322   : > { %v9013_v5 = vpop.f32.mrb[69].mxu0 }
 0x323   : > { %v9014_v6 = vadd.f32 %v9013_v5, %v9012_v4  ;;  %v9015_v7 = vpop.f32.mrb[70].mxu0  ;;  %v9034_v8 = vpop.f32.mrb[68].mxu1 }
 0x324   : > { %v9016_v9 = vpop.f32.mrb[71].mxu0  ;;  %v9035_v11 = vpop.f32.mrb[69].mxu1 }
 0x325   : > { %v7000_v10 = vadd.f32 %v9014_v6, %v6960_v3  ;;  %v9036_v12 = vadd.f32 %v9035_v11, %v9034_v8  ;;  %v9037_v13 = vpop.f32.mrb[70].mxu1 }
 0x326   : > { %v9038_v14 = vpop.f32.mrb[71].mxu1 }
 0x327   : > { %v7040_v15 = vadd.f32 %v9036_v12, %v7000_v10 }
 0x341   : > { %v9056_v16 = vpop.f32.mrb[72].mxu0 }
 0x342   : > { %v9057_v17 = vpop.f32.mrb[73].mxu0 }
 0x343   : > { %v9058_v18 = vadd.f32 %v9057_v17, %v9056_v16  ;;  %v9059_v19 = vpop.f32.mrb[74].mxu0  ;;  %v9078_v20 = vpop.f32.mrb[72].mxu1 }
 0x344   : > { %v9060_v21 = vpop.f32.mrb[75].mxu0  ;;  %v9079_v22 = vpop.f32.mrb[73].mxu1 }
 0x345   : > { %v7080_v23 = vadd.f32 %v9058_v18, %v7040_v15  ;;  %v9080_v24 = vadd.f32 %v9079_v22, %v9078_v20  ;;  %v9081_v25 = vpop.f32.mrb[74].mxu1 }
 0x346   : > { %v9082_v26 = vpop.f32.mrb[75].mxu1 }
 0x347   : > { %v7120_v27 = vadd.f32 %v9080_v24, %v7080_v23 }
 0x34b   : > { %v7199_v28 = vpop.f32.mrb[76].mxu1 }
 0x34c   : > { %v9130_v29 = vpop.f32.mrb[77].mxu1 }
 0x34d   : > { %v7202_v30 = vpop.f32.mrb[78].mxu1 }
 0x34e   : > { %v9131_v31 = vpop.f32.mrb[79].mxu1 }
 0x361   : > { %v9100_v32 = vpop.f32.mrb[76].mxu0 }
 0x362   : > { %v9101_v33 = vpop.f32.mrb[77].mxu0 }
 0x363   : > { %v9102_v34 = vadd.f32 %v9101_v33, %v9100_v32  ;;  %v9103_v35 = vpop.f32.mrb[78].mxu0 }
 0x364   : > { %v9104_v36 = vpop.f32.mrb[79].mxu0 }
 0x365   : > { %v7160_v37 = vadd.f32 %v9102_v34, %v7120_v27 }
 0x367   : > { %v7200_v38 = vadd.f32 %v7199_v28, %v7160_v37 }
 0x369   : > { %v7205_v39 = vmax.f32 %v7200_v38, 0.0 }
 0x36b   : > { %v7206_v41 = vpack.c.bf16 %v7205_v39, %v7205_v39 }
 0x36d   : > { %9149 = vmatmul.mubr.bf16.vlgmr.msra.gmra.mrb[80].mxu1 %v7206_v41 }
 0x440   : > { %v7312_v45 = vpop.f32.mrb[80].mxu1 }
 0x441   : > { %v7313_v46 = vadd.f32 %v8226_v44, %v7312_v45  ;;  %v9150_v47 = vpop.f32.mrb[81].mxu1 }
 0x442   : > { %v7315_v48 = vpop.f32.mrb[82].mxu1 }
 0x443   : > { %v7318_v49 = vmax.f32 %v7313_v46, 0.0  ;;  %v9151_v50 = vpop.f32.mrb[83].mxu1 }
 0x445   : > { %v7319_v51 = vpack.c.bf16 %v7318_v49, %v7318_v49 }
 0x447   : > { %9169 = vmatmul.mubr.bf16.vlgmr.msra.gmra.mrb[80].mxu0 %v7319_v51 }
 0x51a   : > { %v7425_v52 = vpop.f32.mrb[80].mxu0 }
 0x51b   : > { %v7426_v53 = vadd.f32 %v8235_v40, %v7425_v52  ;;  %v9170_v54 = vpop.f32.mrb[81].mxu0 }
 0x51c   : > { %v7428_v55 = vpop.f32.mrb[82].mxu0 }
 0x51d   : > { %7431 = vmax.xlane.f32.xlu0 %v7426_v53  ;;  %v9171_v56 = vpop.f32.mrb[83].mxu0 }
 0x5aa   : > { %v7432_v57 = vpop.xlane.xlu0 %7431 }
 0x5ab   : > { %v7433_v58 = vsub.f32 %v7426_v53, %v7432_v57 }
 0x5ad   : > { %v7434_v59 = vmul.f32 1.442695, %v7433_v58 }
 0x5af   : > { %9934 = vpow2.f32 %v7434_v59 }
 0x5b9   : > { %v9935_v60 = vpop.eup %9934 }
 0x5ba   : > { %7436 = vadd.xlane.f32.xlu0 %v9935_v60 }
 0x647   : > { %v7437_v61 = vpop.xlane.xlu0 %7436 }
 0x648   : > { %9936 = vrcp.f32 %v7437_v61 }
 0x652   : > { %v9937_v62 = vpop.eup %9936 }
 0x653   : > { %v7439_v63 = vmul.f32 %v9937_v62, %v9935_v60 }
 0x655   : > { %7440 = vst [vmem:[%s271_s14] sm:$0xff] %v7439_v63 }
 0x656   : > { %9951 = shalt.err (!%p9948_p3)
}
 0x657   : > { %s9952_s29 = scalar_lea.hbm %s12137_s13, 128  ;;  %s9956_s22 = scalar_lea.hbm %s12186_s7, 256 }
 0x658   : > { %p9953_p4 = scmp.ne.s32.totalorder %s12137_s13, %s9952_s29  ;;  %p9957_p9 = scmp.lt.u32.totalorder %s12137_s13, %s12186_s7 }
 0x659   : > { %p9958_p10 = scmp.lt.u32.totalorder %s9956_s22, %s9952_s29  ;;  %p9960_p12 = scmp.lt.u32.totalorder %s9952_s29, %s12137_s13 }
 0x65a   : > { %p9954_p7 = pnand %p9953_p4, %p10083_p5 }
 0x65b   : > { %p9959_p11 = por %p9958_p10, %p9957_p9 }
 0x65c   : > { %p9955_p8 = pneg %p9954_p7 }
 0x65d   : > { %p9961_p13 = por %p9960_p12, %p9959_p11 }
 0x65f   : > { %p9962_p0 = pnand %p9961_p13, %p9955_p8 }
 0x661   : > { %9965 = shalt.err (!%p9962_p0)
}
 0x662   : > { %9173 = dma.vmem_to_hbm [thread:$0]  (%p10083_p5), %s12139_s15, 128, %s12137_s13, %s7442_s18  }
 0x663 PF: > { %p9179_p1 = scmp.ge.s32.totalorder %s10000_s27, 2  ;;  %s7467_s16 = sand.u32 1, %s9988_s24  }
 0x664   : > { %s7468_s17 = scalar_lea.sflag [#allocation3], %s7467_s16 }
 0x665   : > { %p9176_p2 = pnand %p9179_p1, %p10087_p6 }
 0x667   : > { %9983 = dma.done.wait (!%p9176_p2), %s7468_s17, 128  }
 0x668   : > { %9985 = vsyncadd (!%p9176_p2), %s7468_s17, 4294967168  ;;  %p17_p3 = scmp.ge.s32.totalorder %s10070_s30, 4   ;;  %s12189_s24 = smov %s9992_s25 }
 0x669   : > { %s12190_s25 = smov %s9996_s26  ;;  %s12191_s26 = smov %s10081_s10 }
 0x66a   : > { %s12192_s27 = smov %s10070_s30  ;;  %19 = sbr.rel (!%p17_p3) target bundleno = 3 (0x3), region = 83 }
 0x671   :  { %7473 = vsyncpa [#allocation3], 1 }
 0x672   :  { %7475 = vsyncpa [#allocation3 + $0x1], 1 }

</bundles_post_ra>
